<compile_context>
chip_gen: v5e
topology: v5e:2x2
jax: 0.10.0
libtpu: 0.0.40
codegen_flags: <defaults>
</compile_context>

<pallas_src>
import functools
import math

import jax
import jax.numpy as jnp
import numpy as np
from jax.experimental import pallas as pl
from jax.experimental.pallas import tpu as pltpu


def _round_up(x, m):
    return (x + m - 1) // m * m


def _fold_weights(w_hwio):
    """Fold the 3x3 kernel into 2x2 taps per output phase.

    out[2I+a, 2J+b, :] = sum_{dy,dx in {0,1}} X[I+a+dy-1, J+b+dx-1, :] @ Wf[a,b,dy,dx]
    (X zero padded by 1).  Returns Wf reshaped to (16, Cin, Cout), flat index
    ((a*2 + b)*2 + dy)*2 + dx, folded in f32.
    """
    w = w_hwio.astype(jnp.float32)
    cin, cout = w.shape[2], w.shape[3]
    wf = jnp.zeros((2, 2, 2, 2, cin, cout), jnp.float32)
    for a in range(2):
        for b in range(2):
            for p in range(3):
                dy = (a + p - 1) // 2 - a + 1
                for q in range(3):
                    dx = (b + q - 1) // 2 - b + 1
                    wf = wf.at[a, b, dy, dx].add(w[p, q])
    return wf.reshape(16, cin, cout)


def _up_conv_kernel(xm_ref, xh_ref, wf_ref, b_ref, o_ref):
    """Fused nearest-2x upsample + 3x3 conv for one (batch, row-strip, Cout-tile).

    xm_ref: (1, KI, Wp+2, Cin)  zero-padded original-resolution rows (main)
    xh_ref: (1, 2,  Wp+2, Cin)  2-row halo below the main rows
    wf_ref: (16, Cin, TC)       folded weights for this Cout tile
    b_ref : (1, TC)             bias (f32)
    o_ref : (1, 4, KI, Wp, TC)  4 output phases (2a+b) for KI original rows
    """
    ki = xm_ref.shape[1]
    wp = o_ref.shape[3]
    cin = xm_ref.shape[3]
    tc = o_ref.shape[4]

    # Full strip: KI + 2 zero-padded original rows.
    xs = jnp.concatenate([xm_ref[0], xh_ref[0]], axis=0)          # (KI+2, Wp+2, Cin)

    # Three column-shifted, row-flattened copies of the strip (one relayout
    # each); every later tap is then a cheap aligned row slice.
    cols = [xs[:, c:c + wp, :].reshape((ki + 2) * wp, cin) for c in range(3)]

    # Hoisted bias: one broadcast per grid step (JAX does not CSE
    # broadcast_in_dim); it initialises all four phase accumulators.
    bias = jnp.broadcast_to(b_ref[...].astype(jnp.float32), (ki * wp, tc))

    for pa in range(2):                 # output row phase
        for pb in range(2):             # output col phase
            acc = bias
            for dy in range(2):
                for dx in range(2):
                    lhs = cols[pb + dx][(pa + dy) * wp:(pa + dy + ki) * wp, :]
                    idx = ((pa * 2 + pb) * 2 + dy) * 2 + dx
                    acc = acc + jnp.dot(lhs, wf_ref[idx],
                                        preferred_element_type=jnp.float32)
            # Lane-dense (TC = multiple of 128) full-tile store.
            o_ref[0, pa * 2 + pb] = acc.reshape(ki, wp, tc).astype(o_ref.dtype)


def _vmem_estimate(ki, tc, wp, cin_p, itemsize):
    """Rough per-step VMEM footprint (double-buffered blocks + kernel temps)."""
    in_main = 2 * ki * (wp + 2) * cin_p * itemsize
    in_halo = 2 * 2 * (wp + 2) * cin_p * itemsize
    weights = 2 * 16 * cin_p * tc * itemsize
    out_blk = 2 * 4 * ki * wp * tc * itemsize
    strip = (ki + 2) * (wp + 2) * cin_p * itemsize        # in-kernel concat
    cols = 3 * (ki + 2) * wp * cin_p * itemsize           # shifted copies
    acc = 2 * ki * wp * tc * 4                            # f32 acc + hoisted bias
    return in_main + in_halo + weights + out_blk + strip + cols + acc


def _choose_tiles(n, h, w, cin_p, cout_p, itemsize, row_tile, cout_tile, budget):
    wp = _round_up(w, 16)
    tc = min(_round_up(cout_tile, 128), cout_p)

    # Fill the 256-row MXU: aim for M = ki*wp >= 256 without exceeding the
    # (rounded) image height.
    ki = max(2, row_tile, -(-256 // wp))
    ki = min(ki, _round_up(h, 4))
    ki += ki % 2                                          # halo index needs even ki

    # v7x has two TensorCores: keep >= 2 parallel grid blocks even at batch 1.
    if n == 1 and cout_p // tc < 2:
        ki = min(ki, max(2, _round_up(h, 4) // 2))

    # VMEM budget (v7x: 64 MiB total).  If the double-buffered weight block
    # alone would dominate, drop the Cout tile first; then shrink the row tile.
    if tc > 128 and 2 * 16 * cin_p * tc * itemsize > budget // 2:
        tc = 128
    while _vmem_estimate(ki, tc, wp, cin_p, itemsize) > budget:
        if ki > 4:
            ki = max(4, ki // 2)
            ki -= ki % 2
        elif tc > 128:
            tc = 128
        else:
            break
    return ki, wp, tc


def upsample_conv3x3(x_nchw, wf16, bias, *, row_tile=16, cout_tile=256):
    """Fused nearest-2x upsample + 3x3 'same' conv.  NCHW in / NCHW out."""
    n, cin, h, w = x_nchw.shape
    cout = wf16.shape[2]
    dt = x_nchw.dtype
    itemsize = jnp.dtype(dt).itemsize

    cin_p = _round_up(cin, 128)
    cout_p = _round_up(cout, 128)

    try:
        info = pltpu.get_tpu_info()
        vmem_cap = int(getattr(info, "vmem_capacity_bytes", 64 * 1024 * 1024))
    except Exception:
        vmem_cap = 64 * 1024 * 1024
    vmem_limit = min(vmem_cap * 3 // 4, 96 * 1024 * 1024)
    budget = int(vmem_limit * 0.85)

    ki, wp, tc = _choose_tiles(n, h, w, cin_p, cout_p, itemsize,
                               row_tile, cout_tile, budget)
    hp = _round_up(h, ki)

    # NCHW -> NHWC (original size), then one zero pad that provides: the conv's
    # 'same' halo, spatial alignment padding, and lane-dense channel padding.
    # No upsampled tensor is ever materialized in HBM.
    # TODO(synk): if the surrounding model can consume NHWC (or the
    # phase-separated kernel layout) directly, both wrapper transposes drop out
    # and this becomes a single-pass op even on v5e.
    x = jnp.transpose(x_nchw, (0, 2, 3, 1))
    xz = jnp.pad(x, ((0, 0), (1, 1 + hp - h), (1, 1 + wp - w), (0, cin_p - cin)))

    # Folded weights follow the activation dtype: bf16 activations -> bf16
    # weights -> native bf16 MXU path; f32 stays f32 for accuracy.
    wf_p = jnp.pad(wf16.astype(dt), ((0, 0), (0, cin_p - cin), (0, cout_p - cout)))
    b_p = jnp.pad(bias.astype(jnp.float32), (0, cout_p - cout)).reshape(1, cout_p)

    grid = (cout_p // tc, n, hp // ki)    # Cout tile outermost -> weights resident

    flops = 2 * 16 * n * hp * wp * cin_p * cout_p
    bytes_accessed = (xz.size * xz.dtype.itemsize * (cout_p // tc)
                      + wf_p.size * wf_p.dtype.itemsize
                      + b_p.size * b_p.dtype.itemsize
                      + n * 4 * hp * wp * cout_p * itemsize)

    y5 = pl.pallas_call(
        _up_conv_kernel,
        out_shape=jax.ShapeDtypeStruct((n, 4, hp, wp, cout_p), dt),
        grid_spec=pltpu.PrefetchScalarGridSpec(
            num_scalar_prefetch=0,
            grid=grid,
            in_specs=[
                # main KI rows of the padded original-resolution input
                pl.BlockSpec((1, ki, wp + 2, cin_p),
                             lambda co, nb, jh: (nb, jh, 0, 0)),
                # 2-row halo immediately below them (same array, tiny block)
                pl.BlockSpec((1, 2, wp + 2, cin_p),
                             lambda co, nb, jh: (nb, (jh + 1) * (ki // 2), 0, 0)),
                # folded weights for this Cout tile (resident across nb/jh)
                pl.BlockSpec((16, cin_p, tc), lambda co, nb, jh: (0, 0, co)),
                # bias tile
                pl.BlockSpec((1, tc), lambda co, nb, jh: (0, co)),
            ],
            out_specs=pl.BlockSpec((1, 4, ki, wp, tc),
                                   lambda co, nb, jh: (nb, 0, jh, 0, co)),
        ),
        compiler_params=pltpu.CompilerParams(
            dimension_semantics=("parallel", "parallel", "parallel"),
            vmem_limit_bytes=vmem_limit),
        cost_estimate=pl.CostEstimate(flops=flops, transcendentals=0,
                                      bytes_accessed=bytes_accessed),
    )(xz, xz, wf_p, b_p)

    # Phase-separated (n, 2a+b, i, j, c) -> NCHW.  The phase un-interleave rides
    # the single output transpose we need anyway (one HBM pass).
    y = y5[:, :, :h, :w, :cout]
    y = y.reshape(n, 2, 2, h, w, cout)
    y = jnp.transpose(y, (0, 5, 3, 1, 4, 2))          # (n, c, i, a, j, b)
    return y.reshape(n, cout, 2 * h, 2 * w)


class Upsample:
    """Pallas/JAX port of injectfusion's Upsample. NCHW in / NCHW out."""

    def __init__(self, in_channels, with_conv, key=None, dtype=jnp.float32):
        self.with_conv = with_conv
        self.in_channels = in_channels
        if self.with_conv:
            if key is None:
                key = jax.random.PRNGKey(0)
            kw, kb = jax.random.split(key)
            # Same shapes/init style as torch.nn.Conv2d(C, C, 3, 1, 1).
            fan_in = in_channels * 9
            bound = 1.0 / math.sqrt(fan_in)
            w_oihw = jax.random.uniform(kw, (in_channels, in_channels, 3, 3),
                                        dtype, minval=-bound, maxval=bound)
            self.w_hwio = jnp.transpose(w_oihw, (2, 3, 1, 0))     # (3, 3, Cin, Cout)
            self.bias = jax.random.uniform(kb, (in_channels,), jnp.float32,
                                           minval=-bound, maxval=bound)
            self.wf16 = _fold_weights(self.w_hwio)                # (16, Cin, Cout) f32
            self._fwd = jax.jit(
                functools.partial(upsample_conv3x3, row_tile=16, cout_tile=256))

    def __call__(self, x_nchw):
        if self.with_conv:
            return self._fwd(x_nchw, self.wf16, self.bias)
        n, c, h, w = x_nchw.shape
        # TODO(synk): pure nearest-2x (no conv) is plain data replication; a
        # single XLA broadcast+reshape is already a one-pass HBM copy, so no
        # Pallas kernel is used for this branch.
        y = jnp.broadcast_to(x_nchw[:, :, :, None, :, None], (n, c, h, 2, w, 2))
        return y.reshape(n, c, 2 * h, 2 * w)


def _conv_reference(x_nchw, w_hwio, bias):
    """Pure-JAX reference: nearest-2x upsample then 3x3 'same' conv."""
    up = jnp.repeat(jnp.repeat(x_nchw, 2, axis=2), 2, axis=3)
    up_nhwc = jnp.transpose(up, (0, 2, 3, 1))
    ref = jax.lax.conv_general_dilated(
        up_nhwc, w_hwio, (1, 1), "SAME",
        dimension_numbers=("NHWC", "HWIO", "NHWC"),
        precision=jax.lax.Precision.HIGHEST) + bias
    return jnp.transpose(ref, (0, 3, 1, 2))


if __name__ == "__main__":
    key = jax.random.PRNGKey(0)
    kx, kp, kx2, kp2 = jax.random.split(key, 4)
    N, C, H, W = 2, 4, 16, 16
    x = jax.random.normal(kx, (N, C, H, W), jnp.float32)

    # with_conv=True: fused nearest-2x upsample + 3x3 conv Pallas kernel.
    mod = Upsample(C, with_conv=True, key=kp)
    y = jax.block_until_ready(mod(x))
    assert y.shape == (N, C, 2 * H, 2 * W)
    ref = _conv_reference(x, mod.w_hwio, mod.bias)
    np.testing.assert_allclose(np.asarray(y), np.asarray(ref), atol=1e-2, rtol=1e-2)

    # bf16 activation/weight path (f32 accumulation) - the intended fast path.
    y_bf16 = jax.block_until_ready(mod(x.astype(jnp.bfloat16)))
    assert y_bf16.shape == (N, C, 2 * H, 2 * W)
    np.testing.assert_allclose(np.asarray(y_bf16.astype(jnp.float32)),
                               np.asarray(ref), atol=1e-1, rtol=1e-1)

    # Ragged shapes (non-multiple H/W, C < 128, batch 1) - exercises the spatial
    # padding, the last-strip halo block and the >=2-grid-block logic.
    Cr, Hr, Wr = 5, 13, 17
    xr = jax.random.normal(kx2, (1, Cr, Hr, Wr), jnp.float32)
    modr = Upsample(Cr, with_conv=True, key=kp2)
    yr = jax.block_until_ready(modr(xr))
    assert yr.shape == (1, Cr, 2 * Hr, 2 * Wr)
    refr = _conv_reference(xr, modr.w_hwio, modr.bias)
    np.testing.assert_allclose(np.asarray(yr), np.asarray(refr),
                               atol=1e-2, rtol=1e-2)

    # with_conv=False path (upsample only), exact.
    mod2 = Upsample(C, with_conv=False)
    y2 = jax.block_until_ready(mod2(x))
    assert y2.shape == (N, C, 2 * H, 2 * W)
    up = jnp.repeat(jnp.repeat(x, 2, axis=2), 2, axis=3)
    np.testing.assert_allclose(np.asarray(y2), np.asarray(up), atol=0, rtol=0)

    print("KERNEL_OK")
</pallas_src>

<mosaic_0001>
module attributes {stable_mosaic.version = 11 : i64} {
  func.func @_up_conv_kernel(%arg0: i32, %arg1: i32, %arg2: i32, %arg3: memref<1x16x18x128xf32, #tpu.memory_space<vmem>>, %arg4: memref<1x2x18x128xf32, #tpu.memory_space<vmem>>, %arg5: memref<16x128x128xf32, #tpu.memory_space<vmem>>, %arg6: memref<1x128xf32, #tpu.memory_space<vmem>>, %arg7: memref<1x4x16x16x128xf32, #tpu.memory_space<vmem>>) attributes {dimension_semantics = [#tpu.dimension_semantics<parallel>, #tpu.dimension_semantics<parallel>, #tpu.dimension_semantics<parallel>], iteration_bounds = array<i64: 1, 2, 1>, scalar_prefetch = 0 : i64, scratch_operands = 0 : i64, tpu.core_type = #tpu.core_type<tc>, window_params = [{transform_indices = @transform_0, window_bounds = array<i64: 1, 16, 18, 128>}, {transform_indices = @transform_1, window_bounds = array<i64: 1, 2, 18, 128>}, {transform_indices = @transform_2, window_bounds = array<i64: 16, 128, 128>}, {transform_indices = @transform_3, window_bounds = array<i64: 1, 128>}, {transform_indices = @transform_4, window_bounds = array<i64: 1, 4, 16, 16, 128>}]} {
    %c0 = arith.constant 0 : index
    %c0_0 = arith.constant 0 : index
    %c0_1 = arith.constant 0 : index
    %c0_2 = arith.constant 0 : index
    %0 = vector.load %arg3[%c0, %c0_0, %c0_1, %c0_2] : memref<1x16x18x128xf32, #tpu.memory_space<vmem>>, vector<1x16x18x128xf32>
    %1 = vector.shape_cast %0 : vector<1x16x18x128xf32> to vector<16x18x128xf32>
    %c0_3 = arith.constant 0 : index
    %c0_4 = arith.constant 0 : index
    %c0_5 = arith.constant 0 : index
    %c0_6 = arith.constant 0 : index
    %2 = vector.load %arg4[%c0_3, %c0_4, %c0_5, %c0_6] : memref<1x2x18x128xf32, #tpu.memory_space<vmem>>, vector<1x2x18x128xf32>
    %3 = vector.shape_cast %2 : vector<1x2x18x128xf32> to vector<2x18x128xf32>
    %4 = tpu.concatenate %1, %3 in 0 : vector<16x18x128xf32>, vector<2x18x128xf32> -> vector<18x18x128xf32>
    %5 = vector.extract_strided_slice %4 {offsets = [0, 0, 0], sizes = [18, 16, 128], strides = [1, 1, 1]} : vector<18x18x128xf32> to vector<18x16x128xf32>
    %6 = vector.shape_cast %5 : vector<18x16x128xf32> to vector<288x128xf32>
    %7 = vector.extract_strided_slice %4 {offsets = [0, 1, 0], sizes = [18, 16, 128], strides = [1, 1, 1]} : vector<18x18x128xf32> to vector<18x16x128xf32>
    %8 = vector.shape_cast %7 : vector<18x16x128xf32> to vector<288x128xf32>
    %9 = vector.extract_strided_slice %4 {offsets = [0, 2, 0], sizes = [18, 16, 128], strides = [1, 1, 1]} : vector<18x18x128xf32> to vector<18x16x128xf32>
    %10 = vector.shape_cast %9 : vector<18x16x128xf32> to vector<288x128xf32>
    %c0_7 = arith.constant 0 : index
    %c0_8 = arith.constant 0 : index
    %11 = vector.load %arg6[%c0_7, %c0_8] : memref<1x128xf32, #tpu.memory_space<vmem>>, vector<1x128xf32>
    %12 = vector.shape_cast %11 : vector<1x128xf32> to vector<1x128xf32>
    %13 = vector.broadcast %12 : vector<1x128xf32> to vector<256x128xf32>
    %14 = vector.extract_strided_slice %6 {offsets = [0, 0], sizes = [256, 128], strides = [1, 1]} : vector<288x128xf32> to vector<256x128xf32>
    %c0_9 = arith.constant 0 : index
    %c0_10 = arith.constant 0 : index
    %c0_11 = arith.constant 0 : index
    %15 = vector.load %arg5[%c0_9, %c0_10, %c0_11] : memref<16x128x128xf32, #tpu.memory_space<vmem>>, vector<1x128x128xf32>
    %16 = vector.shape_cast %15 : vector<1x128x128xf32> to vector<128x128xf32>
    %cst = arith.constant dense<0.000000e+00> : vector<256x128xf32>
    %17 = tpu.matmul %14, %16, %cst {dimension_numbers = #tpu.dot_dimension_numbers<[1], [0], [0], [1], [0, 0, 1, 1], [], []>} : vector<256x128xf32>, vector<128x128xf32>, vector<256x128xf32> -> vector<256x128xf32>
    %18 = arith.addf %13, %17 : vector<256x128xf32>
    %19 = vector.extract_strided_slice %8 {offsets = [0, 0], sizes = [256, 128], strides = [1, 1]} : vector<288x128xf32> to vector<256x128xf32>
    %c1 = arith.constant 1 : index
    %c0_12 = arith.constant 0 : index
    %c0_13 = arith.constant 0 : index
    %20 = vector.load %arg5[%c1, %c0_12, %c0_13] : memref<16x128x128xf32, #tpu.memory_space<vmem>>, vector<1x128x128xf32>
    %21 = vector.shape_cast %20 : vector<1x128x128xf32> to vector<128x128xf32>
    %cst_14 = arith.constant dense<0.000000e+00> : vector<256x128xf32>
    %22 = tpu.matmul %19, %21, %cst_14 {dimension_numbers = #tpu.dot_dimension_numbers<[1], [0], [0], [1], [0, 0, 1, 1], [], []>} : vector<256x128xf32>, vector<128x128xf32>, vector<256x128xf32> -> vector<256x128xf32>
    %23 = arith.addf %18, %22 : vector<256x128xf32>
    %24 = vector.extract_strided_slice %6 {offsets = [16, 0], sizes = [256, 128], strides = [1, 1]} : vector<288x128xf32> to vector<256x128xf32>
    %c2 = arith.constant 2 : index
    %c0_15 = arith.constant 0 : index
    %c0_16 = arith.constant 0 : index
    %25 = vector.load %arg5[%c2, %c0_15, %c0_16] : memref<16x128x128xf32, #tpu.memory_space<vmem>>, vector<1x128x128xf32>
    %26 = vector.shape_cast %25 : vector<1x128x128xf32> to vector<128x128xf32>
    %cst_17 = arith.constant dense<0.000000e+00> : vector<256x128xf32>
    %27 = tpu.matmul %24, %26, %cst_17 {dimension_numbers = #tpu.dot_dimension_numbers<[1], [0], [0], [1], [0, 0, 1, 1], [], []>} : vector<256x128xf32>, vector<128x128xf32>, vector<256x128xf32> -> vector<256x128xf32>
    %28 = arith.addf %23, %27 : vector<256x128xf32>
    %29 = vector.extract_strided_slice %8 {offsets = [16, 0], sizes = [256, 128], strides = [1, 1]} : vector<288x128xf32> to vector<256x128xf32>
    %c3 = arith.constant 3 : index
    %c0_18 = arith.constant 0 : index
    %c0_19 = arith.constant 0 : index
    %30 = vector.load %arg5[%c3, %c0_18, %c0_19] : memref<16x128x128xf32, #tpu.memory_space<vmem>>, vector<1x128x128xf32>
    %31 = vector.shape_cast %30 : vector<1x128x128xf32> to vector<128x128xf32>
    %cst_20 = arith.constant dense<0.000000e+00> : vector<256x128xf32>
    %32 = tpu.matmul %29, %31, %cst_20 {dimension_numbers = #tpu.dot_dimension_numbers<[1], [0], [0], [1], [0, 0, 1, 1], [], []>} : vector<256x128xf32>, vector<128x128xf32>, vector<256x128xf32> -> vector<256x128xf32>
    %33 = arith.addf %28, %32 : vector<256x128xf32>
    %34 = vector.shape_cast %33 : vector<256x128xf32> to vector<16x16x128xf32>
    %c0_21 = arith.constant 0 : index
    %c0_22 = arith.constant 0 : index
    %c0_23 = arith.constant 0 : index
    %c0_24 = arith.constant 0 : index
    %c0_25 = arith.constant 0 : index
    %35 = vector.load %arg7[%c0_21, %c0_22, %c0_23, %c0_24, %c0_25] : memref<1x4x16x16x128xf32, #tpu.memory_space<vmem>>, vector<1x1x16x16x128xf32>
    %36 = vector.shape_cast %35 : vector<1x1x16x16x128xf32> to vector<16x16x128xf32>
    %37 = vector.shape_cast %34 : vector<16x16x128xf32> to vector<1x1x16x16x128xf32>
    tpu.vector_store %arg7[%c0_21, %c0_22, %c0_23, %c0_24, %c0_25], %37 {strides = array<i32>} : memref<1x4x16x16x128xf32, #tpu.memory_space<vmem>>, vector<1x1x16x16x128xf32>,
    %38 = vector.extract_strided_slice %8 {offsets = [0, 0], sizes = [256, 128], strides = [1, 1]} : vector<288x128xf32> to vector<256x128xf32>
    %c4 = arith.constant 4 : index
    %c0_26 = arith.constant 0 : index
    %c0_27 = arith.constant 0 : index
    %39 = vector.load %arg5[%c4, %c0_26, %c0_27] : memref<16x128x128xf32, #tpu.memory_space<vmem>>, vector<1x128x128xf32>
    %40 = vector.shape_cast %39 : vector<1x128x128xf32> to vector<128x128xf32>
    %cst_28 = arith.constant dense<0.000000e+00> : vector<256x128xf32>
    %41 = tpu.matmul %38, %40, %cst_28 {dimension_numbers = #tpu.dot_dimension_numbers<[1], [0], [0], [1], [0, 0, 1, 1], [], []>} : vector<256x128xf32>, vector<128x128xf32>, vector<256x128xf32> -> vector<256x128xf32>
    %42 = arith.addf %13, %41 : vector<256x128xf32>
    %43 = vector.extract_strided_slice %10 {offsets = [0, 0], sizes = [256, 128], strides = [1, 1]} : vector<288x128xf32> to vector<256x128xf32>
    %c5 = arith.constant 5 : index
    %c0_29 = arith.constant 0 : index
    %c0_30 = arith.constant 0 : index
    %44 = vector.load %arg5[%c5, %c0_29, %c0_30] : memref<16x128x128xf32, #tpu.memory_space<vmem>>, vector<1x128x128xf32>
    %45 = vector.shape_cast %44 : vector<1x128x128xf32> to vector<128x128xf32>
    %cst_31 = arith.constant dense<0.000000e+00> : vector<256x128xf32>
    %46 = tpu.matmul %43, %45, %cst_31 {dimension_numbers = #tpu.dot_dimension_numbers<[1], [0], [0], [1], [0, 0, 1, 1], [], []>} : vector<256x128xf32>, vector<128x128xf32>, vector<256x128xf32> -> vector<256x128xf32>
    %47 = arith.addf %42, %46 : vector<256x128xf32>
    %48 = vector.extract_strided_slice %8 {offsets = [16, 0], sizes = [256, 128], strides = [1, 1]} : vector<288x128xf32> to vector<256x128xf32>
    %c6 = arith.constant 6 : index
    %c0_32 = arith.constant 0 : index
    %c0_33 = arith.constant 0 : index
    %49 = vector.load %arg5[%c6, %c0_32, %c0_33] : memref<16x128x128xf32, #tpu.memory_space<vmem>>, vector<1x128x128xf32>
    %50 = vector.shape_cast %49 : vector<1x128x128xf32> to vector<128x128xf32>
    %cst_34 = arith.constant dense<0.000000e+00> : vector<256x128xf32>
    %51 = tpu.matmul %48, %50, %cst_34 {dimension_numbers = #tpu.dot_dimension_numbers<[1], [0], [0], [1], [0, 0, 1, 1], [], []>} : vector<256x128xf32>, vector<128x128xf32>, vector<256x128xf32> -> vector<256x128xf32>
    %52 = arith.addf %47, %51 : vector<256x128xf32>
    %53 = vector.extract_strided_slice %10 {offsets = [16, 0], sizes = [256, 128], strides = [1, 1]} : vector<288x128xf32> to vector<256x128xf32>
    %c7 = arith.constant 7 : index
    %c0_35 = arith.constant 0 : index
    %c0_36 = arith.constant 0 : index
    %54 = vector.load %arg5[%c7, %c0_35, %c0_36] : memref<16x128x128xf32, #tpu.memory_space<vmem>>, vector<1x128x128xf32>
    %55 = vector.shape_cast %54 : vector<1x128x128xf32> to vector<128x128xf32>
    %cst_37 = arith.constant dense<0.000000e+00> : vector<256x128xf32>
    %56 = tpu.matmul %53, %55, %cst_37 {dimension_numbers = #tpu.dot_dimension_numbers<[1], [0], [0], [1], [0, 0, 1, 1], [], []>} : vector<256x128xf32>, vector<128x128xf32>, vector<256x128xf32> -> vector<256x128xf32>
    %57 = arith.addf %52, %56 : vector<256x128xf32>
    %58 = vector.shape_cast %57 : vector<256x128xf32> to vector<16x16x128xf32>
    %c0_38 = arith.constant 0 : index
    %c1_39 = arith.constant 1 : index
    %c0_40 = arith.constant 0 : index
    %c0_41 = arith.constant 0 : index
    %c0_42 = arith.constant 0 : index
    %59 = vector.load %arg7[%c0_38, %c1_39, %c0_40, %c0_41, %c0_42] : memref<1x4x16x16x128xf32, #tpu.memory_space<vmem>>, vector<1x1x16x16x128xf32>
    %60 = vector.shape_cast %59 : vector<1x1x16x16x128xf32> to vector<16x16x128xf32>
    %61 = vector.shape_cast %58 : vector<16x16x128xf32> to vector<1x1x16x16x128xf32>
    tpu.vector_store %arg7[%c0_38, %c1_39, %c0_40, %c0_41, %c0_42], %61 {strides = array<i32>} : memref<1x4x16x16x128xf32, #tpu.memory_space<vmem>>, vector<1x1x16x16x128xf32>,
    %62 = vector.extract_strided_slice %6 {offsets = [16, 0], sizes = [256, 128], strides = [1, 1]} : vector<288x128xf32> to vector<256x128xf32>
    %c8 = arith.constant 8 : index
    %c0_43 = arith.constant 0 : index
    %c0_44 = arith.constant 0 : index
    %63 = vector.load %arg5[%c8, %c0_43, %c0_44] : memref<16x128x128xf32, #tpu.memory_space<vmem>>, vector<1x128x128xf32>
    %64 = vector.shape_cast %63 : vector<1x128x128xf32> to vector<128x128xf32>
    %cst_45 = arith.constant dense<0.000000e+00> : vector<256x128xf32>
    %65 = tpu.matmul %62, %64, %cst_45 {dimension_numbers = #tpu.dot_dimension_numbers<[1], [0], [0], [1], [0, 0, 1, 1], [], []>} : vector<256x128xf32>, vector<128x128xf32>, vector<256x128xf32> -> vector<256x128xf32>
    %66 = arith.addf %13, %65 : vector<256x128xf32>
    %67 = vector.extract_strided_slice %8 {offsets = [16, 0], sizes = [256, 128], strides = [1, 1]} : vector<288x128xf32> to vector<256x128xf32>
    %c9 = arith.constant 9 : index
    %c0_46 = arith.constant 0 : index
    %c0_47 = arith.constant 0 : index
    %68 = vector.load %arg5[%c9, %c0_46, %c0_47] : memref<16x128x128xf32, #tpu.memory_space<vmem>>, vector<1x128x128xf32>
    %69 = vector.shape_cast %68 : vector<1x128x128xf32> to vector<128x128xf32>
    %cst_48 = arith.constant dense<0.000000e+00> : vector<256x128xf32>
    %70 = tpu.matmul %67, %69, %cst_48 {dimension_numbers = #tpu.dot_dimension_numbers<[1], [0], [0], [1], [0, 0, 1, 1], [], []>} : vector<256x128xf32>, vector<128x128xf32>, vector<256x128xf32> -> vector<256x128xf32>
    %71 = arith.addf %66, %70 : vector<256x128xf32>
    %72 = vector.extract_strided_slice %6 {offsets = [32, 0], sizes = [256, 128], strides = [1, 1]} : vector<288x128xf32> to vector<256x128xf32>
    %c10 = arith.constant 10 : index
    %c0_49 = arith.constant 0 : index
    %c0_50 = arith.constant 0 : index
    %73 = vector.load %arg5[%c10, %c0_49, %c0_50] : memref<16x128x128xf32, #tpu.memory_space<vmem>>, vector<1x128x128xf32>
    %74 = vector.shape_cast %73 : vector<1x128x128xf32> to vector<128x128xf32>
    %cst_51 = arith.constant dense<0.000000e+00> : vector<256x128xf32>
    %75 = tpu.matmul %72, %74, %cst_51 {dimension_numbers = #tpu.dot_dimension_numbers<[1], [0], [0], [1], [0, 0, 1, 1], [], []>} : vector<256x128xf32>, vector<128x128xf32>, vector<256x128xf32> -> vector<256x128xf32>
    %76 = arith.addf %71, %75 : vector<256x128xf32>
    %77 = vector.extract_strided_slice %8 {offsets = [32, 0], sizes = [256, 128], strides = [1, 1]} : vector<288x128xf32> to vector<256x128xf32>
    %c11 = arith.constant 11 : index
    %c0_52 = arith.constant 0 : index
    %c0_53 = arith.constant 0 : index
    %78 = vector.load %arg5[%c11, %c0_52, %c0_53] : memref<16x128x128xf32, #tpu.memory_space<vmem>>, vector<1x128x128xf32>
    %79 = vector.shape_cast %78 : vector<1x128x128xf32> to vector<128x128xf32>
    %cst_54 = arith.constant dense<0.000000e+00> : vector<256x128xf32>
    %80 = tpu.matmul %77, %79, %cst_54 {dimension_numbers = #tpu.dot_dimension_numbers<[1], [0], [0], [1], [0, 0, 1, 1], [], []>} : vector<256x128xf32>, vector<128x128xf32>, vector<256x128xf32> -> vector<256x128xf32>
    %81 = arith.addf %76, %80 : vector<256x128xf32>
    %82 = vector.shape_cast %81 : vector<256x128xf32> to vector<16x16x128xf32>
    %c0_55 = arith.constant 0 : index
    %c2_56 = arith.constant 2 : index
    %c0_57 = arith.constant 0 : index
    %c0_58 = arith.constant 0 : index
    %c0_59 = arith.constant 0 : index
    %83 = vector.load %arg7[%c0_55, %c2_56, %c0_57, %c0_58, %c0_59] : memref<1x4x16x16x128xf32, #tpu.memory_space<vmem>>, vector<1x1x16x16x128xf32>
    %84 = vector.shape_cast %83 : vector<1x1x16x16x128xf32> to vector<16x16x128xf32>
    %85 = vector.shape_cast %82 : vector<16x16x128xf32> to vector<1x1x16x16x128xf32>
    tpu.vector_store %arg7[%c0_55, %c2_56, %c0_57, %c0_58, %c0_59], %85 {strides = array<i32>} : memref<1x4x16x16x128xf32, #tpu.memory_space<vmem>>, vector<1x1x16x16x128xf32>,
    %86 = vector.extract_strided_slice %8 {offsets = [16, 0], sizes = [256, 128], strides = [1, 1]} : vector<288x128xf32> to vector<256x128xf32>
    %c12 = arith.constant 12 : index
    %c0_60 = arith.constant 0 : index
    %c0_61 = arith.constant 0 : index
    %87 = vector.load %arg5[%c12, %c0_60, %c0_61] : memref<16x128x128xf32, #tpu.memory_space<vmem>>, vector<1x128x128xf32>
    %88 = vector.shape_cast %87 : vector<1x128x128xf32> to vector<128x128xf32>
    %cst_62 = arith.constant dense<0.000000e+00> : vector<256x128xf32>
    %89 = tpu.matmul %86, %88, %cst_62 {dimension_numbers = #tpu.dot_dimension_numbers<[1], [0], [0], [1], [0, 0, 1, 1], [], []>} : vector<256x128xf32>, vector<128x128xf32>, vector<256x128xf32> -> vector<256x128xf32>
    %90 = arith.addf %13, %89 : vector<256x128xf32>
    %91 = vector.extract_strided_slice %10 {offsets = [16, 0], sizes = [256, 128], strides = [1, 1]} : vector<288x128xf32> to vector<256x128xf32>
    %c13 = arith.constant 13 : index
    %c0_63 = arith.constant 0 : index
    %c0_64 = arith.constant 0 : index
    %92 = vector.load %arg5[%c13, %c0_63, %c0_64] : memref<16x128x128xf32, #tpu.memory_space<vmem>>, vector<1x128x128xf32>
    %93 = vector.shape_cast %92 : vector<1x128x128xf32> to vector<128x128xf32>
    %cst_65 = arith.constant dense<0.000000e+00> : vector<256x128xf32>
    %94 = tpu.matmul %91, %93, %cst_65 {dimension_numbers = #tpu.dot_dimension_numbers<[1], [0], [0], [1], [0, 0, 1, 1], [], []>} : vector<256x128xf32>, vector<128x128xf32>, vector<256x128xf32> -> vector<256x128xf32>
    %95 = arith.addf %90, %94 : vector<256x128xf32>
    %96 = vector.extract_strided_slice %8 {offsets = [32, 0], sizes = [256, 128], strides = [1, 1]} : vector<288x128xf32> to vector<256x128xf32>
    %c14 = arith.constant 14 : index
    %c0_66 = arith.constant 0 : index
    %c0_67 = arith.constant 0 : index
    %97 = vector.load %arg5[%c14, %c0_66, %c0_67] : memref<16x128x128xf32, #tpu.memory_space<vmem>>, vector<1x128x128xf32>
    %98 = vector.shape_cast %97 : vector<1x128x128xf32> to vector<128x128xf32>
    %cst_68 = arith.constant dense<0.000000e+00> : vector<256x128xf32>
    %99 = tpu.matmul %96, %98, %cst_68 {dimension_numbers = #tpu.dot_dimension_numbers<[1], [0], [0], [1], [0, 0, 1, 1], [], []>} : vector<256x128xf32>, vector<128x128xf32>, vector<256x128xf32> -> vector<256x128xf32>
    %100 = arith.addf %95, %99 : vector<256x128xf32>
    %101 = vector.extract_strided_slice %10 {offsets = [32, 0], sizes = [256, 128], strides = [1, 1]} : vector<288x128xf32> to vector<256x128xf32>
    %c15 = arith.constant 15 : index
    %c0_69 = arith.constant 0 : index
    %c0_70 = arith.constant 0 : index
    %102 = vector.load %arg5[%c15, %c0_69, %c0_70] : memref<16x128x128xf32, #tpu.memory_space<vmem>>, vector<1x128x128xf32>
    %103 = vector.shape_cast %102 : vector<1x128x128xf32> to vector<128x128xf32>
    %cst_71 = arith.constant dense<0.000000e+00> : vector<256x128xf32>
    %104 = tpu.matmul %101, %103, %cst_71 {dimension_numbers = #tpu.dot_dimension_numbers<[1], [0], [0], [1], [0, 0, 1, 1], [], []>} : vector<256x128xf32>, vector<128x128xf32>, vector<256x128xf32> -> vector<256x128xf32>
    %105 = arith.addf %100, %104 : vector<256x128xf32>
    %106 = vector.shape_cast %105 : vector<256x128xf32> to vector<16x16x128xf32>
    %c0_72 = arith.constant 0 : index
    %c3_73 = arith.constant 3 : index
    %c0_74 = arith.constant 0 : index
    %c0_75 = arith.constant 0 : index
    %c0_76 = arith.constant 0 : index
    %107 = vector.load %arg7[%c0_72, %c3_73, %c0_74, %c0_75, %c0_76] : memref<1x4x16x16x128xf32, #tpu.memory_space<vmem>>, vector<1x1x16x16x128xf32>
    %108 = vector.shape_cast %107 : vector<1x1x16x16x128xf32> to vector<16x16x128xf32>
    %109 = vector.shape_cast %106 : vector<16x16x128xf32> to vector<1x1x16x16x128xf32>
    tpu.vector_store %arg7[%c0_72, %c3_73, %c0_74, %c0_75, %c0_76], %109 {strides = array<i32>} : memref<1x4x16x16x128xf32, #tpu.memory_space<vmem>>, vector<1x1x16x16x128xf32>,
    return
  }
  func.func @transform_0(%arg0: i32, %arg1: i32, %arg2: i32) -> (i32, i32, i32, i32) {
    %c0_i32 = arith.constant 0 : i32
    %c0_i32_0 = arith.constant 0 : i32
    %c0_i32_1 = arith.constant 0 : i32
    return %arg1, %arg2, %c0_i32, %c0_i32_0 : i32, i32, i32, i32
  }
  func.func @transform_1(%arg0: i32, %arg1: i32, %arg2: i32) -> (i32, i32, i32, i32) {
    %c1_i32 = arith.constant 1 : i32
    %0 = arith.addi %arg2, %c1_i32 : i32
    %c8_i32 = arith.constant 8 : i32
    %1 = arith.muli %0, %c8_i32 : i32
    %c0_i32 = arith.constant 0 : i32
    %c0_i32_0 = arith.constant 0 : i32
    %c0_i32_1 = arith.constant 0 : i32
    return %arg1, %1, %c0_i32, %c0_i32_0 : i32, i32, i32, i32
  }
  func.func @transform_2(%arg0: i32, %arg1: i32, %arg2: i32) -> (i32, i32, i32) {
    %c0_i32 = arith.constant 0 : i32
    %c0_i32_0 = arith.constant 0 : i32
    %c0_i32_1 = arith.constant 0 : i32
    return %c0_i32, %c0_i32_0, %arg0 : i32, i32, i32
  }
  func.func @transform_3(%arg0: i32, %arg1: i32, %arg2: i32) -> (i32, i32) {
    %c0_i32 = arith.constant 0 : i32
    %c0_i32_0 = arith.constant 0 : i32
    return %c0_i32, %arg0 : i32, i32
  }
  func.func @transform_4(%arg0: i32, %arg1: i32, %arg2: i32) -> (i32, i32, i32, i32, i32) {
    %c0_i32 = arith.constant 0 : i32
    %c0_i32_0 = arith.constant 0 : i32
    %c0_i32_1 = arith.constant 0 : i32
    return %arg1, %c0_i32, %arg2, %c0_i32_0, %arg0 : i32, i32, i32, i32, i32
  }
}

</mosaic_0001>

<bundles_post_ra>
// kernel: upsample_conv3x3.1
= control target key start
LH: loop header
LB: loop body
LE: loop exit
PB: predicated region body
PF: predicated region fallthrough
CT: control target
= control target key end

     0   :  { %s4126_s15 = smov 0   ;;  %s4128_s16 = smov 0   ;;  %s6019_s0 = inlined_call_operand.vmem [shape: f32[2,18,18,128], index: 0, kind: input, shape index: {}, may-alias: {0,1}]   ;;  %s6020_s1 = inlined_call_operand.vmem [shape: f32[2,18,18,128], index: 1, kind: input, shape index: {}, may-alias: {0,1}]   ;;  %s6021_s2 = inlined_call_operand.vmem [shape: f32[16,128,128], index: 2, kind: input, shape index: {}]   ;;  %s6022_s3 = inlined_call_operand.vmem [shape: f32[1,128], index: 3, kind: input, shape index: {}]   ;;  %s6023_s4 = inlined_call_operand.vmem [shape: f32[2,4,16,16,128], index: 4, kind: output, shape index: {}]  }
   0x1   :  { %s4130_s17 = smov 0  }
   0x2 LB: > { %s29_s18 = sadd.s32 1, %s4095_s16  ;;  %p3617_p0 = scmp.ge.s32.totalorder %s4099_s17, 1  ;;  %s4099_s17 = sphi %s4130_s17, %s14_s17   ;;  %s4095_s16 = sphi %s4128_s16, %s6100_s16   ;;  %s4091_s15 = sphi %s4126_s15, %s6099_s15  }
   0x3   : > { %p31_p1 = scmp.ge.s32.totalorder %s29_s18, 2  ;;  %p246_p2 = scmp.lt.s32.totalorder %s4099_s17, 3 }
   0x5   : > { %s6102_s18 = smov (%p31_p1, %s29_s18), 0  ;;  %p247_p3 = pnand %p3617_p0, %p246_p2 }
   0x7   : > { %250 = sbr.rel (%p247_p3) target bundleno = 1198 (0x4ae), region = 36 }
   0xc   : > { %v3653_v0 = vld [vmem:[%s6021_s2 + $0x178] sm:$0xff]  ;;  %v3652_v2 = vld [vmem:[%s6021_s2 + $0x170] sm:$0xff]  ;;  %p315_p4 = scmp.lt.s32.totalorder %s4091_s15, 1  ;;  %v3651_v6 = vld [vmem:[%s6021_s2 + $0x168] sm:$0xff]  ;;  %vm474_vm0 = vcmask 1046528   ;;  %vm601_vm1 = vcmask 1045504  }
   0xd   : > { %v747_v1 = vld [vmem:[%s6021_s2 + $0x78] sm:$0xff]  ;;  %1072 = vmatpush.msra.mxu2 %v3653_v0  ;;  %v746_v4 = vld [vmem:[%s6021_s2 + $0x70] sm:$0xff]  ;;  %v745_v8 = vld [vmem:[%s6021_s2 + $0x68] sm:$0xff] }
   0xe   : > { %748 = vmatpush.msra.mxu0 %v747_v1  ;;  %v3669_v3 = vld [vmem:[%s6021_s2 + $0x1f8] sm:$0xff]  ;;  %v3668_v7 = vld [vmem:[%s6021_s2 + $0x1f0] sm:$0xff]  ;;  %v3667_v10 = vld [vmem:[%s6021_s2 + $0x1e8] sm:$0xff]  ;;  %s6104_s15 = smov (!%p315_p4, %s4091_s15), 1 }
   0xf   : > { %v3637_v5 = vld [vmem:[%s6021_s2 + $0xf8] sm:$0xff]  ;;  %1234 = vmatpush.msra.mxu3 %v3669_v3  ;;  %1073 = vmatpush.msra.mxu2 %v3652_v2  ;;  %v3636_v9 = vld [vmem:[%s6021_s2 + $0xf0] sm:$0xff]  ;;  %v3650_v11 = vld [vmem:[%s6021_s2 + $0x160] sm:$0xff]  ;;  %s3963_s7 = smul.u32 432, %s6104_s15  ;;  %s3962_s26 = sshll.u32 %s6104_s15, 10 }
  0x10   : > { %910 = vmatpush.msra.mxu1 %v3637_v5  ;;  %749 = vmatpush.msra.mxu0 %v746_v4  ;;  %v744_v12 = vld [vmem:[%s6021_s2 + $0x60] sm:$0xff]  ;;  %v3635_v13 = vld [vmem:[%s6021_s2 + $0xe8] sm:$0xff]  ;;  %v3649_v16 = vld [vmem:[%s6021_s2 + $0x158] sm:$0xff]  ;;  %s4631_s11 = scalar_lea.vmem %s6023_s4, %s3962_s26 }
  0x11   : > { %1235 = vmatpush.msra.mxu3 %v3668_v7  ;;  %1074 = vmatpush.msra.mxu2 %v3651_v6  ;;  %v3666_v14 = vld [vmem:[%s6021_s2 + $0x1e0] sm:$0xff]  ;;  %v743_v17 = vld [vmem:[%s6021_s2 + $0x58] sm:$0xff]  ;;  %v3648_v20 = vld [vmem:[%s6021_s2 + $0x150] sm:$0xff]  ;;  %s4297_s30 = scalar_lea.vmem %s6019_s0, %s3963_s7  ;;  %s3961_s20 = sadd.s32 384, %s3963_s7 }
  0x12   : > { %911 = vmatpush.msra.mxu1 %v3636_v9  ;;  %750 = vmatpush.msra.mxu0 %v745_v8  ;;  %v3634_v15 = vld [vmem:[%s6021_s2 + $0xe0] sm:$0xff]  ;;  %v3665_v18 = vld [vmem:[%s6021_s2 + $0x1d8] sm:$0xff]  ;;  %v742_v21 = vld [vmem:[%s6021_s2 + $0x50] sm:$0xff]  ;;  %s4846_s27 = scalar_lea.vmem %s6020_s1, %s3961_s20 }
  0x13   : > { %1236 = vmatpush.msra.mxu3 %v3667_v10  ;;  %1075 = vmatpush.msra.mxu2 %v3650_v11  ;;  %v3633_v19 = vld [vmem:[%s6021_s2 + $0xd8] sm:$0xff]  ;;  %v3664_v22 = vld [vmem:[%s6021_s2 + $0x1d0] sm:$0xff]  ;;  %v3647_v24 = vld [vmem:[%s6021_s2 + $0x148] sm:$0xff] }
  0x14   : > { %912 = vmatpush.msra.mxu1 %v3635_v13  ;;  %751 = vmatpush.msra.mxu0 %v744_v12  ;;  %v3632_v23 = vld [vmem:[%s6021_s2 + $0xd0] sm:$0xff]  ;;  %v741_v25 = vld [vmem:[%s6021_s2 + $0x48] sm:$0xff]  ;;  %v3646_v28 = vld [vmem:[%s6021_s2 + $0x140] sm:$0xff] }
  0x15   : > { %1237 = vmatpush.msra.mxu3 %v3666_v14  ;;  %1076 = vmatpush.msra.mxu2 %v3649_v16  ;;  %v3663_v26 = vld [vmem:[%s6021_s2 + $0x1c8] sm:$0xff]  ;;  %v740_v29 = vld [vmem:[%s6021_s2 + $0x40] sm:$0xff]  ;;  %v3645_v32 = vld [vmem:[%s6021_s2 + $0x138] sm:$0xff] }
  0x16   : > { %913 = vmatpush.msra.mxu1 %v3634_v15  ;;  %752 = vmatpush.msra.mxu0 %v743_v17  ;;  %v3631_v27 = vld [vmem:[%s6021_s2 + $0xc8] sm:$0xff]  ;;  %v3662_v30 = vld [vmem:[%s6021_s2 + $0x1c0] sm:$0xff]  ;;  %v739_v33 = vld [vmem:[%s6021_s2 + $0x38] sm:$0xff] }
  0x17   : > { %1238 = vmatpush.msra.mxu3 %v3665_v18  ;;  %1077 = vmatpush.msra.mxu2 %v3648_v20  ;;  %v3630_v31 = vld [vmem:[%s6021_s2 + $0xc0] sm:$0xff]  ;;  %v3661_v34 = vld [vmem:[%s6021_s2 + $0x1b8] sm:$0xff]  ;;  %v3644_v36 = vld [vmem:[%s6021_s2 + $0x130] sm:$0xff] }
  0x18   : > { %914 = vmatpush.msra.mxu1 %v3633_v19  ;;  %753 = vmatpush.msra.mxu0 %v742_v21  ;;  %v3629_v35 = vld [vmem:[%s6021_s2 + $0xb8] sm:$0xff]  ;;  %v738_v37 = vld [vmem:[%s6021_s2 + $0x30] sm:$0xff]  ;;  %v3643_v40 = vld [vmem:[%s6021_s2 + $0x128] sm:$0xff] }
  0x19   : > { %1239 = vmatpush.msra.mxu3 %v3664_v22  ;;  %1078 = vmatpush.msra.mxu2 %v3647_v24  ;;  %v3660_v38 = vld [vmem:[%s6021_s2 + $0x1b0] sm:$0xff]  ;;  %v737_v41 = vld [vmem:[%s6021_s2 + $0x28] sm:$0xff]  ;;  %v3642_v44 = vld [vmem:[%s6021_s2 + $0x120] sm:$0xff] }
  0x1a   : > { %915 = vmatpush.msra.mxu1 %v3632_v23  ;;  %754 = vmatpush.msra.mxu0 %v741_v25  ;;  %v3628_v39 = vld [vmem:[%s6021_s2 + $0xb0] sm:$0xff]  ;;  %v3659_v42 = vld [vmem:[%s6021_s2 + $0x1a8] sm:$0xff]  ;;  %v736_v45 = vld [vmem:[%s6021_s2 + $0x20] sm:$0xff] }
  0x1b   : > { %1240 = vmatpush.msra.mxu3 %v3663_v26  ;;  %1079 = vmatpush.msra.mxu2 %v3646_v28  ;;  %v3627_v43 = vld [vmem:[%s6021_s2 + $0xa8] sm:$0xff]  ;;  %v3658_v46 = vld [vmem:[%s6021_s2 + $0x1a0] sm:$0xff]  ;;  %v3641_v48 = vld [vmem:[%s6021_s2 + $0x118] sm:$0xff] }
  0x1c   : > { %916 = vmatpush.msra.mxu1 %v3631_v27  ;;  %755 = vmatpush.msra.mxu0 %v740_v29  ;;  %v3626_v47 = vld [vmem:[%s6021_s2 + $0xa0] sm:$0xff]  ;;  %v735_v49 = vld [vmem:[%s6021_s2 + $0x18] sm:$0xff]  ;;  %v3640_v50 = vld [vmem:[%s6021_s2 + $0x110] sm:$0xff] }
  0x1d   : > { %1241 = vmatpush.msra.mxu3 %v3662_v30  ;;  %1080 = vmatpush.msra.mxu2 %v3645_v32  ;;  %v3657_v51 = vld [vmem:[%s6021_s2 + $0x198] sm:$0xff]  ;;  %v734_v53 = vld [vmem:[%s6021_s2 + $0x10] sm:$0xff]  ;;  %v4321_v55 = vld [vmem:[%s4297_s30 + $0x20] sm:$0xff] }
  0x1e   : > { %917 = vmatpush.msra.mxu1 %v3630_v31  ;;  %756 = vmatpush.msra.mxu0 %v739_v33  ;;  %v3625_v52 = vld [vmem:[%s6021_s2 + $0x98] sm:$0xff]  ;;  %v3639_v56 = vld [vmem:[%s6021_s2 + $0x108] sm:$0xff]  ;;  %v3656_v57 = vld [vmem:[%s6021_s2 + $0x190] sm:$0xff]  ;;  %v481_v1 = vrot.slane %v4321_v55, 1 }
  0x1f   : > { %1242 = vmatpush.msra.mxu3 %v3661_v34  ;;  %1081 = vmatpush.msra.mxu2 %v3644_v36  ;;  %v4318_v54 = vld [vmem:[%s4297_s30 + $0x18] sm:$0xff]  ;;  %v3624_v58 = vld [vmem:[%s6021_s2 + $0x90] sm:$0xff]  ;;  %v733_v59 = vld [vmem:[%s6021_s2 + $0x8] sm:$0xff] }
  0x20   : > { %918 = vmatpush.msra.mxu1 %v3629_v35  ;;  %757 = vmatpush.msra.mxu0 %v738_v37  ;;  %v366_v60 = vld [vmem:[%s4297_s30] sm:$0xff]  ;;  %v4337_v61 = vld [vmem:[%s4297_s30 + $0x8] sm:$0xff]  ;;  %v480_v63 = vrot.slane %v4318_v54, 1  ;;  %v3717_v7 = vld [vmem:[%s6021_s2 + $0x378] sm:$0xff] }
  0x21   : > { %1243 = vmatpush.msra.mxu3 %v3660_v38  ;;  %1082 = vmatpush.msra.mxu2 %v3643_v40  ;;  %v3655_v62 = vld [vmem:[%s6021_s2 + $0x188] sm:$0xff]  ;;  %v3638_v2 = vld [vmem:[%s6021_s2 + $0x100] sm:$0xff]  ;;  %v475_v5 = vrot.slane %v366_v60, 1  ;;  %v476_v6 = vrot.slane %v4337_v61, 1  ;;  %v3685_v9 = vld [vmem:[%s6021_s2 + $0x278] sm:$0xff] }
  0x22   : > { %919 = vmatpush.msra.mxu1 %v3628_v39  ;;  %758 = vmatpush.msra.mxu0 %v737_v41  ;;  %v3623_v0 = vld [vmem:[%s6021_s2 + $0x88] sm:$0xff]  ;;  %v732_v3 = vld [vmem:[%s6021_s2] sm:$0xff]  ;;  %v4361_v8 = vsel %vm474_vm0, %v480_v63, %v481_v1  ;;  %v3733_v10 = vld [vmem:[%s6021_s2 + $0x3f8] sm:$0xff] }
  0x23   : > { %1244 = vmatpush.msra.mxu3 %v3659_v42  ;;  %1083 = vmatpush.msra.mxu2 %v3642_v44  ;;  %v3654_v4 = vld [vmem:[%s6021_s2 + $0x180] sm:$0xff]  ;;  %v371_v12 = vld [vmem:[%s4297_s30 + $0x28] sm:$0x3]  ;;  %v4375_v13 = vsel %vm474_vm0, %v475_v5, %v476_v6  ;;  %v3716_v14 = vld [vmem:[%s6021_s2 + $0x370] sm:$0xff] }
  0x24   : > { %920 = vmatpush.msra.mxu1 %v3627_v43  ;;  %759 = vmatpush.msra.mxu0 %v736_v45  ;;  %v3622_v11 = vld [vmem:[%s6021_s2 + $0x80] sm:$0xff]  ;;  %v3701_v15 = vld [vmem:[%s6021_s2 + $0x2f8] sm:$0xff]  ;;  %v368_v16 = vld [vmem:[%s4297_s30 + $0x10] sm:$0x3]  ;;  %v483_v18 = vrot.slane %v371_v12, 1 }
  0x25   : > { %1245 = vmatpush.msra.mxu3 %v3658_v46  ;;  %1084 = vmatpush.msra.mxu2 %v3641_v48  ;;  %v3684_v17 = vld [vmem:[%s6021_s2 + $0x270] sm:$0xff]  ;;  %v3715_v20 = vld [vmem:[%s6021_s2 + $0x368] sm:$0xff]  ;;  %v478_v23 = vrot.slane %v368_v16, 1  ;;  %v373_v28 = vld [vmem:[%s4297_s30 + $0x38] sm:$0xff] }
  0x26   : > { %921 = vmatpush.msra.mxu1 %v3626_v47  ;;  %760 = vmatpush.msra.mxu0 %v735_v49  ;;  %v3732_v19 = vld [vmem:[%s6021_s2 + $0x3f0] sm:$0xff]  ;;  %v3683_v22 = vld [vmem:[%s6021_s2 + $0x268] sm:$0xff]  ;;  %v4408_v26 = vsel %vm474_vm0, %v481_v1, %v483_v18  ;;  %v486_v31 = vrot.slane %v373_v28, 1  ;;  %v374_v33 = vld [vmem:[%s4297_s30 + $0x40] sm:$0x3] }
  0x27   : > { %1246 = vmatpush.msra.mxu3 %v3657_v51  ;;  %1085 = vmatpush.msra.mxu2 %v3640_v50  ;;  %v3700_v21 = vld [vmem:[%s6021_s2 + $0x2f0] sm:$0xff]  ;;  %v3731_v24 = vld [vmem:[%s6021_s2 + $0x3e8] sm:$0xff]  ;;  %v4415_v29 = vsel %vm474_vm0, %v476_v6, %v478_v23  ;;  %v3714_v34 = vld [vmem:[%s6021_s2 + $0x360] sm:$0xff]  ;;  %v488_v37 = vrot.slane %v374_v33, 1 }
  0x28   : > { %922 = vmatpush.msra.mxu1 %v3625_v52  ;;  %761 = vmatpush.msra.mxu0 %v734_v53  ;;  %v3699_v25 = vld [vmem:[%s6021_s2 + $0x2e8] sm:$0xff]  ;;  %v372_v27 = vld [vmem:[%s4297_s30 + $0x30] sm:$0xff]  ;;  %v3682_v35 = vld [vmem:[%s6021_s2 + $0x260] sm:$0xff] }
  0x29   : > { %1247 = vmatpush.msra.mxu3 %v3656_v57  ;;  %1086 = vmatpush.msra.mxu2 %v3639_v56  ;;  %v485_v30 = vrot.slane %v372_v27, 1  ;;  %v3730_v36 = vld [vmem:[%s6021_s2 + $0x3e0] sm:$0xff]  ;;  %v4439_v39 = vsel %vm474_vm0, %v486_v31, %v488_v37  ;;  %v375_v40 = vld [vmem:[%s4297_s30 + $0x48] sm:$0xff]  ;;  %v376_v41 = vld [vmem:[%s4297_s30 + $0x50] sm:$0xff] }
  0x2a   : > { %923 = vmatpush.msra.mxu1 %v3624_v58  ;;  %762 = vmatpush.msra.mxu0 %v733_v59  ;;  %v3698_v38 = vld [vmem:[%s6021_s2 + $0x2e0] sm:$0xff]  ;;  %v490_v42 = vrot.slane %v375_v40, 1  ;;  %v491_v43 = vrot.slane %v376_v41, 1  ;;  %v377_v45 = vld [vmem:[%s4297_s30 + $0x58] sm:$0x3]  ;;  %v379_v53 = vld [vmem:[%s4297_s30 + $0x68] sm:$0xff] }
  0x2b   : > { %1248 = vmatpush.msra.mxu3 %v3655_v62  ;;  %1087 = vmatpush.msra.mxu2 %v3638_v2  ;;  %v4420_v32 = vsel %vm474_vm0, %v485_v30, %v486_v31  ;;  %v3713_v46 = vld [vmem:[%s6021_s2 + $0x358] sm:$0xff]  ;;  %v493_v49 = vrot.slane %v377_v45, 1  ;;  %v378_v52 = vld [vmem:[%s4297_s30 + $0x60] sm:$0xff]  ;;  %v380_v57 = vld [vmem:[%s4297_s30 + $0x70] sm:$0x3] }
  0x2c   : > { %924 = vmatpush.msra.mxu1 %v3623_v0  ;;  %763 = vmatpush.msra.mxu0 %v732_v3  ;;  %v4447_v44 = vsel %vm474_vm0, %v490_v42, %v491_v43  ;;  %v3681_v47 = vld [vmem:[%s6021_s2 + $0x258] sm:$0xff]  ;;  %v3712_v58 = vld [vmem:[%s6021_s2 + $0x350] sm:$0xff]  ;;  %v382_v1 = vld [vmem:[%s4297_s30 + $0x80] sm:$0xff] }
  0x2d   : > { %1088 = vmatmul.f32.vlgmr.msra.gmra.mxu2 %v4318_v54  ;;  %1249 = vmatpush.msra.mxu3 %v3654_v4  ;;  %v3729_v48 = vld [vmem:[%s6021_s2 + $0x3d8] sm:$0xff]  ;;  %v4465_v51 = vsel %vm474_vm0, %v491_v43, %v493_v49  ;;  %v3680_v59 = vld [vmem:[%s6021_s2 + $0x250] sm:$0xff]  ;;  %v501_v3 = vrot.slane %v382_v1, 1  ;;  %v383_v5 = vld [vmem:[%s4297_s30 + $0x88] sm:$0x3] }
  0x2e   : > { %1752 = vmatpush.msrb.mxu2 %v3717_v7  ;;  %764 = vmatmul.f32.vlgmr.msra.gmra.mxu0 %v366_v60  ;;  %v3697_v50 = vld [vmem:[%s6021_s2 + $0x2d8] sm:$0xff]  ;;  %v3728_v60 = vld [vmem:[%s6021_s2 + $0x3d0] sm:$0xff]  ;;  %v3711_v6 = vld [vmem:[%s6021_s2 + $0x348] sm:$0xff] }
  0x2f   : > { %1250 = vmatmul.f32.vlgmr.msra.gmra.mxu3 %v4361_v8  ;;  %1428 = vmatpush.msrb.mxu0 %v3685_v9  ;;  %v3696_v62 = vld [vmem:[%s6021_s2 + $0x2d0] sm:$0xff]  ;;  %v381_v0 = vld [vmem:[%s4297_s30 + $0x78] sm:$0xff]  ;;  %v3679_v7 = vld [vmem:[%s6021_s2 + $0x248] sm:$0xff] }
  0x30   : > { %1914 = vmatpush.msrb.mxu3 %v3733_v10  ;;  %925 = vmatpush.msra.mxu1 %v3622_v11  ;;  %v500_v2 = vrot.slane %v381_v0, 1  ;;  %v3727_v9 = vld [vmem:[%s6021_s2 + $0x3c8] sm:$0xff]  ;;  %v503_v10 = vrot.slane %v383_v5, 1  ;;  %v3725_v37 = vld [vmem:[%s6021_s2 + $0x3b8] sm:$0xff]  ;;  %v390_v42 = vld [vmem:[%s4297_s30 + $0xc0] sm:$0xff] }
  0x31   : > { %926 = vmatmul.f32.vlgmr.msra.gmra.mxu1 %v4375_v13  ;;  %1753 = vmatpush.msrb.mxu2 %v3716_v14  ;;  %v3695_v11 = vld [vmem:[%s6021_s2 + $0x2c8] sm:$0xff]  ;;  %v384_v14 = vld [vmem:[%s4297_s30 + $0x90] sm:$0xff]  ;;  %v515_v45 = vrot.slane %v390_v42, 1 }
  0x32   : > { %1590 = vmatpush.msrb.mxu1 %v3701_v15  ;;  %1429 = vmatpush.msrb.mxu0 %v3684_v17  ;;  %v4497_v4 = vsel %vm474_vm0, %v500_v2, %v501_v3  ;;  %v4515_v12 = vsel %vm474_vm0, %v501_v3, %v503_v10  ;;  %v385_v15 = vld [vmem:[%s4297_s30 + $0x98] sm:$0xff]  ;;  %v505_v16 = vrot.slane %v384_v14, 1  ;;  %v4569_v43 = vld [vmem:[%s4297_s30 + $0xc8] sm:$0xff]  ;;  %v3708_v49 = vld [vmem:[%s6021_s2 + $0x330] sm:$0xff] }
  0x33   : > { %1915 = vmatpush.msrb.mxu3 %v3732_v19  ;;  %1754 = vmatpush.msrb.mxu2 %v3715_v20  ;;  %v506_v17 = vrot.slane %v385_v15, 1  ;;  %v386_v19 = vld [vmem:[%s4297_s30 + $0xa0] sm:$0x3]  ;;  %v395_v2 = vld [vmem:[%s4297_s30 + $0xe8] sm:$0x3] }
  0x34   : > { %1591 = vmatpush.msrb.mxu1 %v3700_v21  ;;  %1430 = vmatpush.msrb.mxu0 %v3683_v22  ;;  %v3710_v20 = vld [vmem:[%s6021_s2 + $0x340] sm:$0xff]  ;;  %v508_v23 = vrot.slane %v386_v19, 1  ;;  %v3707_v3 = vld [vmem:[%s6021_s2 + $0x328] sm:$0xff] }
  0x35   : > { %1091 = vmatmul.f32.gmra.mxu2 %v4321_v55  ;;  %1916 = vmatpush.msrb.mxu3 %v3731_v24  ;;  %v4522_v18 = vsel %vm474_vm0, %v505_v16, %v506_v17  ;;  %v3678_v21 = vld [vmem:[%s6021_s2 + $0x240] sm:$0xff] }
  0x36   : > { %767 = vmatmul.f32.gmra.mxu0 %v4337_v61  ;;  %1592 = vmatpush.msrb.mxu1 %v3699_v25  ;;  %v498_v61 = vrot.slane %v380_v57, 1  ;;  %v3726_v22 = vld [vmem:[%s6021_s2 + $0x3c0] sm:$0xff]  ;;  %v4540_v25 = vsel %vm474_vm0, %v506_v17, %v508_v23  ;;  %v393_v57 = vld [vmem:[%s4297_s30 + $0xd8] sm:$0xff] }
  0x37   : > { %1253 = vmatmul.f32.gmra.mxu3 %v4408_v26  ;;  %1755 = vmatpush.msrb.mxu2 %v3714_v34  ;;  %v3694_v24 = vld [vmem:[%s6021_s2 + $0x2c0] sm:$0xff]  ;;  %v389_v34 = vld [vmem:[%s4297_s30 + $0xb8] sm:$0x3] }
  0x38   : > { %1431 = vmatpush.msrb.mxu0 %v3682_v35  ;;  %1917 = vmatpush.msrb.mxu3 %v3730_v36  ;;  %v3709_v35 = vld [vmem:[%s6021_s2 + $0x338] sm:$0xff] }
  0x39   : > { %929 = vmatmul.f32.gmra.mxu1 %v4415_v29  ;;  %1756 = vmatpush.msrb.mxu2 %v3713_v46  ;;  %v3677_v36 = vld [vmem:[%s6021_s2 + $0x238] sm:$0xff]  ;;  %v516_v46 = vrot.slane %v4569_v43, 1 }
  0x3a   : > { %1593 = vmatpush.msrb.mxu1 %v3698_v38  ;;  %1432 = vmatpush.msrb.mxu0 %v3681_v47  ;;  %v513_v38 = vrot.slane %v389_v34, 1  ;;  %v4641_v23 = vld [vmem:[%s4297_s30 + $0xf8] sm:$0xff] }
  0x3b   : > { %1918 = vmatpush.msrb.mxu3 %v3729_v48  ;;  %1757 = vmatpush.msrb.mxu2 %v3712_v58  ;;  %v4575_v47 = vsel %vm474_vm0, %v515_v45, %v516_v46  ;;  %v392_v48 = vld [vmem:[%s4297_s30 + $0xd0] sm:$0x3]  ;;  %v4598_v58 = vld [vmem:[%s4297_s30 + $0xe0] sm:$0xff] }
  0x3c   : > { %1594 = vmatpush.msrb.mxu1 %v3697_v50  ;;  %1433 = vmatpush.msrb.mxu0 %v3680_v59  ;;  %v3676_v50 = vld [vmem:[%s6021_s2 + $0x230] sm:$0xff]  ;;  %v4604_v59 = vld [vmem:[%s6022_s3] ss:$0 sm:$0xff] }
  0x3d   : > { %1094 = vmatmul.f32.gmra.mxu2 %v372_v27  ;;  %1919 = vmatpush.msrb.mxu3 %v3728_v60  ;;  %v520_v60 = vrot.slane %v393_v57, 1 }
  0x3e   : > { %770 = vmatmul.f32.gmra.mxu0 %v4318_v54  ;;  %v495_v54 = vrot.slane %v378_v52, 1  ;;  %1595 = vmatpush.msrb.mxu1 %v3696_v62 }
  0x3f   : > { %1256 = vmatmul.f32.gmra.mxu3 %v4420_v32  ;;  %1758 = vmatpush.msrb.mxu2 %v3711_v6 }
  0x40   : > { %1434 = vmatpush.msrb.mxu0 %v3679_v7  ;;  %1920 = vmatpush.msrb.mxu3 %v3727_v9  ;;  %v3675_v7 = vld [vmem:[%s6021_s2 + $0x228] sm:$0xff] }
  0x41   : > { %932 = vmatmul.f32.gmra.mxu1 %v4361_v8  ;;  %1759 = vmatpush.msrb.mxu2 %v3710_v20  ;;  %v3723_v9 = vld [vmem:[%s6021_s2 + $0x3a8] sm:$0xff] }
  0x42   : > { %1596 = vmatpush.msrb.mxu1 %v3695_v11  ;;  %1435 = vmatpush.msrb.mxu0 %v3678_v21  ;;  %v523_v11 = vrot.slane %v395_v2, 1  ;;  %v399_v2 = vld [vmem:[%s4297_s30 + $0x108] sm:$0xff] }
  0x43   : > { %1921 = vmatpush.msrb.mxu3 %v3726_v22  ;;  %1760 = vmatpush.msrb.mxu2 %v3709_v35  ;;  %v396_v22 = vld [vmem:[%s4297_s30 + $0xf0] sm:$0xff] }
  0x44   : > { %1597 = vmatpush.msrb.mxu1 %v3694_v24  ;;  %1436 = vmatpush.msrb.mxu0 %v3677_v36 }
  0x45   : > { %1097 = vmatmul.f32.gmra.mxu2 %v373_v28  ;;  %1922 = vmatpush.msrb.mxu3 %v3725_v37 }
  0x46   : > { %773 = vmatmul.f32.gmra.mxu0 %v4321_v55  ;;  %v496_v55 = vrot.slane %v379_v53, 1  ;;  %1761 = vmatpush.msrb.mxu2 %v3708_v49  ;;  %v3722_v49 = vld [vmem:[%s6021_s2 + $0x3a0] sm:$0xff] }
  0x47   : > { %1259 = vmatmul.f32.gmra.mxu3 %v4439_v39  ;;  %1437 = vmatpush.msrb.mxu0 %v3676_v50 }
  0x48   : > { %v4472_v56 = vsel %vm474_vm0, %v495_v54, %v496_v55  ;;  %v4490_v63 = vsel %vm474_vm0, %v496_v55, %v498_v61  ;;  %v3692_v54 = vld [vmem:[%s6021_s2 + $0x2b0] sm:$0xff]  ;;  %v521_v61 = vrot.slane %v4598_v58, 1  ;;  %1762 = vmatpush.msrb.mxu2 %v3707_v3 }
  0x49   : > { %935 = vmatmul.f32.gmra.mxu1 %v4408_v26  ;;  %1438 = vmatpush.msrb.mxu0 %v3675_v7  ;;  %v4675_v3 = vld [vmem:[%s4297_s30 + $0x110] sm:$0xff] }
  0x4a   : > { %v4635_v21 = vsel %vm474_vm0, %v521_v61, %v523_v11 }
  0x4d   : > { %1100 = vmatmul.f32.gmra.mxu2 %v375_v40 }
  0x4e   : > { %776 = vmatmul.f32.gmra.mxu0 %v372_v27  ;;  %v387_v27 = vld [vmem:[%s4297_s30 + $0xa8] sm:$0xff] }
  0x4f   : > { %1262 = vmatmul.f32.gmra.mxu3 %v4447_v44  ;;  %v510_v30 = vrot.slane %v387_v27, 1 }
  0x51   : > { %938 = vmatmul.f32.gmra.mxu1 %v4420_v32 }
  0x55   : > { %1103 = vmatmul.f32.gmra.mxu2 %v376_v41 }
  0x56   : > { %779 = vmatmul.f32.gmra.mxu0 %v373_v28  ;;  %v388_v28 = vld [vmem:[%s4297_s30 + $0xb0] sm:$0xff] }
  0x57   : > { %1265 = vmatmul.f32.gmra.mxu3 %v4465_v51  ;;  %v511_v31 = vrot.slane %v388_v28, 1 }
  0x59   : > { %941 = vmatmul.f32.gmra.mxu1 %v4439_v39  ;;  %v4547_v33 = vsel %vm474_vm0, %v510_v30, %v511_v31  ;;  %v525_v30 = vrot.slane %v396_v22, 1 }
  0x5d   : > { %1106 = vmatmul.f32.gmra.mxu2 %v378_v52 }
  0x5e   : > { %782 = vmatmul.f32.gmra.mxu0 %v375_v40  ;;  %v3693_v40 = vld [vmem:[%s6021_s2 + $0x2b8] sm:$0xff] }
  0x5f   : > { %1268 = vmatmul.f32.gmra.mxu3 %v4472_v56  ;;  %1598 = vmatpush.msrb.mxu1 %v3693_v40 }
  0x61   : > { %944 = vmatmul.f32.gmra.mxu1 %v4447_v44 }
  0x62   : > { %1599 = vmatpush.msrb.mxu1 %v3692_v54  ;;  %v3690_v54 = vld [vmem:[%s6021_s2 + $0x2a0] sm:$0xff] }
  0x65   : > { %1109 = vmatmul.f32.gmra.mxu2 %v379_v53 }
  0x66   : > { %785 = vmatmul.f32.gmra.mxu0 %v376_v41  ;;  %v4565_v41 = vsel %vm474_vm0, %v511_v31, %v513_v38  ;;  %v526_v31 = vrot.slane %v4641_v23, 1 }
  0x67   : > { %1271 = vmatmul.f32.gmra.mxu3 %v4490_v63 }
  0x68   : > { %v4649_v40 = vsel %vm474_vm0, %v525_v30, %v526_v31  ;;  %v3721_v30 = vld [vmem:[%s6021_s2 + $0x398] sm:$0xff] }
  0x69   : > { %947 = vmatmul.f32.gmra.mxu1 %v4465_v51 }
  0x6d   : > { %1112 = vmatmul.f32.gmra.mxu2 %v381_v0 }
  0x6e   : > { %788 = vmatmul.f32.gmra.mxu0 %v378_v52  ;;  %v3724_v52 = vld [vmem:[%s6021_s2 + $0x3b0] sm:$0xff] }
  0x6f   : > { %1274 = vmatmul.f32.gmra.mxu3 %v4497_v4 }
  0x70   : > { %1923 = vmatpush.msrb.mxu3 %v3724_v52 }
  0x71   : > { %950 = vmatmul.f32.gmra.mxu1 %v4472_v56 }
  0x72   : > { %1924 = vmatpush.msrb.mxu3 %v3723_v9  ;;  %v530_v9 = vrot.slane %v399_v2, 1 }
  0x74   : > { %1925 = vmatpush.msrb.mxu3 %v3722_v49 }
  0x75   : > { %1115 = vmatmul.f32.gmra.mxu2 %v382_v1 }
  0x76   : > { %791 = vmatmul.f32.gmra.mxu0 %v379_v53  ;;  %v518_v53 = vrot.slane %v392_v48, 1  ;;  %v3674_v48 = vld [vmem:[%s6021_s2 + $0x220] sm:$0xff]  ;;  %1926 = vmatpush.msrb.mxu3 %v3721_v30 }
  0x77   : > { %1277 = vmatmul.f32.gmra.mxu3 %v4515_v12  ;;  %1439 = vmatpush.msrb.mxu0 %v3674_v48  ;;  %v4743_v30 = vld [vmem:[%s4297_s30 + $0x140] sm:$0xff] }
  0x78   : > { %v4593_v55 = vsel %vm474_vm0, %v516_v46, %v518_v53 }
  0x79   : > { %953 = vmatmul.f32.gmra.mxu1 %v4490_v63 }
  0x7d   : > { %1118 = vmatmul.f32.gmra.mxu2 %v384_v14 }
  0x7e   : > { %794 = vmatmul.f32.gmra.mxu0 %v381_v0 }
  0x7f   : > { %1280 = vmatmul.f32.gmra.mxu3 %v4522_v18 }
  0x81   : > { %956 = vmatmul.f32.gmra.mxu1 %v4497_v4 }
  0x85   : > { %1121 = vmatmul.f32.gmra.mxu2 %v385_v15 }
  0x86   : > { %797 = vmatmul.f32.gmra.mxu0 %v382_v1  ;;  %v4610_v1 = vsel %vm474_vm0, %v520_v60, %v521_v61 }
  0x87   : > { %1283 = vmatmul.f32.gmra.mxu3 %v4540_v25 }
  0x89   : > { %959 = vmatmul.f32.gmra.mxu1 %v4515_v12 }
  0x8d   : > { %1124 = vmatmul.f32.gmra.mxu2 %v387_v27 }
  0x8e   : > { %800 = vmatmul.f32.gmra.mxu0 %v384_v14 }
  0x8f   : > { %1286 = vmatmul.f32.gmra.mxu3 %v4547_v33 }
  0x91   : > { %962 = vmatmul.f32.gmra.mxu1 %v4522_v18 }
  0x95   : > { %1127 = vmatmul.f32.gmra.mxu2 %v388_v28 }
  0x96   : > { %803 = vmatmul.f32.gmra.mxu0 %v385_v15  ;;  %v3691_v15 = vld [vmem:[%s6021_s2 + $0x2a8] sm:$0xff] }
  0x97   : > { %1289 = vmatmul.f32.gmra.mxu3 %v4565_v41  ;;  %1600 = vmatpush.msrb.mxu1 %v3691_v15 }
  0x99   : > { %965 = vmatmul.f32.gmra.mxu1 %v4540_v25 }
  0x9a   : > { %1601 = vmatpush.msrb.mxu1 %v3690_v54 }
  0x9d   : > { %1130 = vmatmul.f32.gmra.mxu2 %v390_v42 }
  0x9e   : > { %806 = vmatmul.f32.gmra.mxu0 %v387_v27 }
  0x9f   : > { %1292 = vmatmul.f32.gmra.mxu3 %v4575_v47 }
  0xa1   : > { %968 = vmatmul.f32.gmra.mxu1 %v4547_v33 }
  0xa5   : > { %1133 = vmatmul.f32.gmra.mxu2 %v4569_v43 }
  0xa6   : > { %809 = vmatmul.f32.gmra.mxu0 %v388_v28 }
  0xa7   : > { %1295 = vmatmul.f32.gmra.mxu3 %v4593_v55 }
  0xa9   : > { %971 = vmatmul.f32.gmra.mxu1 %v4565_v41 }
  0xab   : > { %v765_v62 = vpop.f32.mrf.mxu0 }
  0xac   : > { %v861_v0 = vadd.f32 %v4604_v59, %v765_v62 }
  0xad   : > { %1136 = vmatmul.f32.gmra.mxu2 %v393_v57 }
  0xae   : > { %v927_v5 = vpop.f32.mrf.mxu1  ;;  %812 = vmatmul.f32.gmra.mxu0 %v390_v42  ;;  %v398_v42 = vld [vmem:[%s4297_s30 + $0x100] sm:$0x3] }
  0xaf   : > { %v1023_v6 = vadd.f32 %v927_v5, %v861_v0  ;;  %1298 = vmatmul.f32.gmra.mxu3 %v4610_v1  ;;  %v528_v52 = vrot.slane %v398_v42, 1 }
  0xb0   : > { %v1089_v10 = vpop.f32.mrf.mxu2 }
  0xb1   : > { %v1185_v14 = vadd.f32 %v1089_v10, %v1023_v6  ;;  %974 = vmatmul.f32.gmra.mxu1 %v4575_v47  ;;  %v4669_v0 = vsel %vm474_vm0, %v526_v31, %v528_v52  ;;  %v531_v10 = vrot.slane %v4675_v3, 1 }
  0xb2   : > { %v1251_v16 = vpop.f32.mrf.mxu3 }
  0xb3   : > { %v1347_v17 = vadd.f32 %v1251_v16, %v1185_v14  ;;  %v768_v19 = vpop.f32.mrf.mxu0 }
  0xb4   : > { %v862_v20 = vadd.f32 %v4604_v59, %v768_v19  ;;  %v4683_v19 = vsel %vm474_vm0, %v530_v9, %v531_v10 }
  0xb5   : > { %1379 = vst [vmem:[%s4631_s11] sm:$0xff] %v1347_v17  ;;  %1139 = vmatmul.f32.gmra.mxu2 %v4598_v58 }
  0xb6   : > { %v930_v24 = vpop.f32.mrf.mxu1  ;;  %815 = vmatmul.f32.gmra.mxu0 %v4569_v43  ;;  %v3706_v43 = vld [vmem:[%s6021_s2 + $0x320] sm:$0xff] }
  0xb7   : > { %v1024_v27 = vadd.f32 %v930_v24, %v862_v20  ;;  %1301 = vmatmul.f32.gmra.mxu3 %v4635_v21  ;;  %1763 = vmatpush.msrb.mxu2 %v3706_v43  ;;  %v3705_v20 = vld [vmem:[%s6021_s2 + $0x318] sm:$0xff] }
  0xb8   : > { %v1092_v28 = vpop.f32.mrf.mxu2 }
  0xb9   : > { %v1186_v34 = vadd.f32 %v1092_v28, %v1024_v27  ;;  %977 = vmatmul.f32.gmra.mxu1 %v4593_v55  ;;  %1764 = vmatpush.msrb.mxu2 %v3705_v20  ;;  %v3673_v28 = vld [vmem:[%s6021_s2 + $0x218] sm:$0xff] }
  0xba   : > { %v1254_v35 = vpop.f32.mrf.mxu3  ;;  %1440 = vmatpush.msrb.mxu0 %v3673_v28  ;;  %v405_v28 = vld [vmem:[%s4297_s30 + $0x138] sm:$0xff] }
  0xbb   : > { %v1348_v36 = vadd.f32 %v1254_v35, %v1186_v34  ;;  %v771_v37 = vpop.f32.mrf.mxu0  ;;  %v3689_v35 = vld [vmem:[%s6021_s2 + $0x298] sm:$0xff] }
  0xbc   : > { %v863_v38 = vadd.f32 %v4604_v59, %v771_v37  ;;  %1602 = vmatpush.msrb.mxu1 %v3689_v35  ;;  %v540_v35 = vrot.slane %v405_v28, 1 }
  0xbd   : > { %1380 = vst [vmem:[%s4631_s11 + $0x8] sm:$0xff] %v1348_v36  ;;  %1142 = vmatmul.f32.gmra.mxu2 %v396_v22 }
  0xbe   : > { %v933_v45 = vpop.f32.mrf.mxu1  ;;  %818 = vmatmul.f32.gmra.mxu0 %v393_v57 }
  0xbf   : > { %v1025_v46 = vadd.f32 %v933_v45, %v863_v38  ;;  %1304 = vmatmul.f32.gmra.mxu3 %v4649_v40  ;;  %v402_v45 = vld [vmem:[%s4297_s30 + $0x120] sm:$0xff] }
  0xc0   : > { %v1095_v50 = vpop.f32.mrf.mxu2  ;;  %v535_v52 = vrot.slane %v402_v45, 1 }
  0xc1   : > { %v1187_v53 = vadd.f32 %v1095_v50, %v1025_v46  ;;  %980 = vmatmul.f32.gmra.mxu1 %v4610_v1  ;;  %v4709_v46 = vld [vmem:[%s4297_s30 + $0x128] sm:$0xff] }
  0xc2   : > { %v1257_v57 = vpop.f32.mrf.mxu3 }
  0xc3   : > { %v1349_v60 = vadd.f32 %v1257_v57, %v1187_v53  ;;  %v774_v61 = vpop.f32.mrf.mxu0  ;;  %v536_v53 = vrot.slane %v4709_v46, 1 }
  0xc4   : > { %v864_v62 = vadd.f32 %v4604_v59, %v774_v61 }
  0xc5   : > { %1381 = vst [vmem:[%s4631_s11 + $0x10] sm:$0xff] %v1349_v60  ;;  %1145 = vmatmul.f32.gmra.mxu2 %v4641_v23 }
  0xc6   : > { %v936_v5 = vpop.f32.mrf.mxu1  ;;  %821 = vmatmul.f32.gmra.mxu0 %v4598_v58  ;;  %v401_v58 = vld [vmem:[%s4297_s30 + $0x118] sm:$0x3] }
  0xc7   : > { %v1026_v6 = vadd.f32 %v936_v5, %v864_v62  ;;  %1307 = vmatmul.f32.gmra.mxu3 %v4669_v0  ;;  %v533_v34 = vrot.slane %v401_v58, 1  ;;  %v4717_v5 = vsel %vm474_vm0, %v535_v52, %v536_v53  ;;  %v3703_v52 = vld [vmem:[%s6021_s2 + $0x308] sm:$0xff] }
  0xc8   : > { %v1098_v7 = vpop.f32.mrf.mxu2 }
  0xc9   : > { %v1188_v11 = vadd.f32 %v1098_v7, %v1026_v6  ;;  %983 = vmatmul.f32.gmra.mxu1 %v4635_v21  ;;  %v4703_v43 = vsel %vm474_vm0, %v531_v10, %v533_v34  ;;  %v3704_v6 = vld [vmem:[%s6021_s2 + $0x310] sm:$0xff] }
  0xca   : > { %v1260_v14 = vpop.f32.mrf.mxu3  ;;  %1765 = vmatpush.msrb.mxu2 %v3704_v6  ;;  %v3672_v10 = vld [vmem:[%s6021_s2 + $0x210] sm:$0xff] }
  0xcb   : > { %v1350_v15 = vadd.f32 %v1260_v14, %v1188_v11  ;;  %v777_v16 = vpop.f32.mrf.mxu0  ;;  %v3720_v11 = vld [vmem:[%s6021_s2 + $0x390] sm:$0xff]  ;;  %1441 = vmatpush.msrb.mxu0 %v3672_v10 }
  0xcc   : > { %v865_v17 = vadd.f32 %v4604_v59, %v777_v16  ;;  %1927 = vmatpush.msrb.mxu3 %v3720_v11  ;;  %v3688_v16 = vld [vmem:[%s6021_s2 + $0x290] sm:$0xff]  ;;  %1766 = vmatpush.msrb.mxu2 %v3703_v52 }
  0xcd   : > { %1382 = vst [vmem:[%s4631_s11 + $0x18] sm:$0xff] %v1350_v15  ;;  %1148 = vmatmul.f32.gmra.mxu2 %v399_v2  ;;  %1603 = vmatpush.msrb.mxu1 %v3688_v16 }
  0xce   : > { %v939_v24 = vpop.f32.mrf.mxu1  ;;  %824 = vmatmul.f32.gmra.mxu0 %v396_v22 }
  0xcf   : > { %v1027_v27 = vadd.f32 %v939_v24, %v865_v17  ;;  %1310 = vmatmul.f32.gmra.mxu3 %v4683_v19 }
  0xd0   : > { %v1101_v31 = vpop.f32.mrf.mxu2 }
  0xd1   : > { %v1189_v22 = vadd.f32 %v1101_v31, %v1027_v27  ;;  %986 = vmatmul.f32.gmra.mxu1 %v4649_v40 }
  0xd2   : > { %v1263_v36 = vpop.f32.mrf.mxu3 }
  0xd3   : > { %v1351_v37 = vadd.f32 %v1263_v36, %v1189_v22  ;;  %v780_v38 = vpop.f32.mrf.mxu0  ;;  %v541_v36 = vrot.slane %v4743_v30, 1 }
  0xd4   : > { %v866_v42 = vadd.f32 %v4604_v59, %v780_v38 }
  0xd5   : > { %1383 = vst [vmem:[%s4631_s11 + $0x20] sm:$0xff] %v1351_v37  ;;  %1151 = vmatmul.f32.gmra.mxu2 %v4675_v3 }
  0xd6   : > { %v942_v48 = vpop.f32.mrf.mxu1  ;;  %827 = vmatmul.f32.gmra.mxu0 %v4641_v23  ;;  %v404_v23 = vld [vmem:[%s4297_s30 + $0x130] sm:$0x3] }
  0xd7   : > { %v1028_v49 = vadd.f32 %v942_v48, %v866_v42  ;;  %1313 = vmatmul.f32.gmra.mxu3 %v4703_v43  ;;  %v538_v15 = vrot.slane %v404_v23, 1  ;;  %v3687_v23 = vld [vmem:[%s6021_s2 + $0x288] sm:$0xff] }
  0xd8   : > { %v1104_v50 = vpop.f32.mrf.mxu2  ;;  %1604 = vmatpush.msrb.mxu1 %v3687_v23  ;;  %v4813_v23 = vld [vmem:[%s4297_s30 + $0x170] sm:$0xff] }
  0xd9   : > { %v1190_v54 = vadd.f32 %v1104_v50, %v1028_v49  ;;  %989 = vmatmul.f32.gmra.mxu1 %v4669_v0  ;;  %v4737_v27 = vsel %vm474_vm0, %v536_v53, %v538_v15  ;;  %v4751_v50 = vsel %vm474_vm0, %v540_v35, %v541_v36  ;;  %v4777_v15 = vld [vmem:[%s4297_s30 + $0x158] sm:$0xff] }
  0xda   : > { %v1266_v57 = vpop.f32.mrf.mxu3 }
  0xdb   : > { %v1352_v60 = vadd.f32 %v1266_v57, %v1190_v54  ;;  %v783_v61 = vpop.f32.mrf.mxu0  ;;  %v3671_v57 = vld [vmem:[%s6021_s2 + $0x208] sm:$0xff] }
  0xdc   : > { %v867_v62 = vadd.f32 %v4604_v59, %v783_v61  ;;  %1442 = vmatpush.msrb.mxu0 %v3671_v57 }
  0xdd   : > { %1384 = vst [vmem:[%s4631_s11 + $0x28] sm:$0xff] %v1352_v60  ;;  %1154 = vmatmul.f32.gmra.mxu2 %v402_v45  ;;  %v3719_v60 = vld [vmem:[%s6021_s2 + $0x388] sm:$0xff] }
  0xde   : > { %v945_v7 = vpop.f32.mrf.mxu1  ;;  %830 = vmatmul.f32.gmra.mxu0 %v399_v2  ;;  %1928 = vmatpush.msrb.mxu3 %v3719_v60 }
  0xdf   : > { %v1029_v9 = vadd.f32 %v945_v7, %v867_v62  ;;  %1316 = vmatmul.f32.gmra.mxu3 %v4717_v5 }
  0xe0   : > { %v1107_v14 = vpop.f32.mrf.mxu2 }
  0xe1   : > { %v1191_v2 = vadd.f32 %v1107_v14, %v1029_v9  ;;  %992 = vmatmul.f32.gmra.mxu1 %v4683_v19  ;;  %v408_v14 = vld [vmem:[%s4297_s30 + $0x150] sm:$0xff] }
  0xe2   : > { %v1269_v17 = vpop.f32.mrf.mxu3 }
  0xe3   : > { %v1353_v58 = vadd.f32 %v1269_v17, %v1191_v2  ;;  %v786_v20 = vpop.f32.mrf.mxu0 }
  0xe4   : > { %v868_v24 = vadd.f32 %v4604_v59, %v786_v20  ;;  %v546_v20 = vrot.slane %v4777_v15, 1 }
  0xe5   : > { %1385 = vst [vmem:[%s4631_s11 + $0x30] sm:$0xff] %v1353_v58  ;;  %1157 = vmatmul.f32.gmra.mxu2 %v4709_v46  ;;  %v545_v58 = vrot.slane %v408_v14, 1 }
  0xe6   : > { %v948_v31 = vpop.f32.mrf.mxu1  ;;  %833 = vmatmul.f32.gmra.mxu0 %v4675_v3  ;;  %v407_v3 = vld [vmem:[%s4297_s30 + $0x148] sm:$0x3] }
  0xe7   : > { %v1030_v34 = vadd.f32 %v948_v31, %v868_v24  ;;  %1319 = vmatmul.f32.gmra.mxu3 %v4737_v27  ;;  %v543_v62 = vrot.slane %v407_v3, 1 }
  0xe8   : > { %v1110_v22 = vpop.f32.mrf.mxu2 }
  0xe9   : > { %v1192_v37 = vadd.f32 %v1110_v22, %v1030_v34  ;;  %995 = vmatmul.f32.gmra.mxu1 %v4703_v43  ;;  %v4771_v11 = vsel %vm474_vm0, %v541_v36, %v543_v62  ;;  %v4785_v36 = vsel %vm474_vm0, %v545_v58, %v546_v20 }
  0xea   : > { %v1272_v38 = vpop.f32.mrf.mxu3 }
  0xeb   : > { %v1354_v42 = vadd.f32 %v1272_v38, %v1192_v37  ;;  %v789_v48 = vpop.f32.mrf.mxu0  ;;  %v3702_v37 = vld [vmem:[%s6021_s2 + $0x300] sm:$0xff] }
  0xec   : > { %v869_v49 = vadd.f32 %v4604_v59, %v789_v48  ;;  %1767 = vmatpush.msrb.mxu2 %v3702_v37  ;;  %v3670_v48 = vld [vmem:[%s6021_s2 + $0x200] sm:$0xff]  ;;  %v3829_v37 = vld [vmem:[%s6021_s2 + $0x5f8] sm:$0xff] }
  0xed   : > { %1386 = vst [vmem:[%s4631_s11 + $0x38] sm:$0xff] %v1354_v42  ;;  %1160 = vmatmul.f32.gmra.mxu2 %v405_v28  ;;  %1443 = vmatpush.msrb.mxu0 %v3670_v48  ;;  %v3797_v48 = vld [vmem:[%s6021_s2 + $0x4f8] sm:$0xff] }
  0xee   : > { %v951_v53 = vpop.f32.mrf.mxu1  ;;  %836 = vmatmul.f32.gmra.mxu0 %v402_v45 }
  0xef   : > { %v1031_v54 = vadd.f32 %v951_v53, %v869_v49  ;;  %1322 = vmatmul.f32.gmra.mxu3 %v4751_v50  ;;  %v3718_v49 = vld [vmem:[%s6021_s2 + $0x380] sm:$0xff] }
  0xf0   : > { %v1113_v61 = vpop.f32.mrf.mxu2  ;;  %1929 = vmatpush.msrb.mxu3 %v3718_v49  ;;  %v3686_v53 = vld [vmem:[%s6021_s2 + $0x280] sm:$0xff] }
  0xf1   : > { %v1193_v45 = vadd.f32 %v1113_v61, %v1031_v54  ;;  %998 = vmatmul.f32.gmra.mxu1 %v4717_v5 }
  0xf2   : > { %v1275_v6 = vpop.f32.mrf.mxu3  ;;  %1605 = vmatpush.msrb.mxu1 %v3686_v53  ;;  %2595 = vmatpush.msra.mxu3 %v3829_v37 }
  0xf3   : > { %v1355_v7 = vadd.f32 %v1275_v6, %v1193_v45  ;;  %v792_v9 = vpop.f32.mrf.mxu0  ;;  %v4810_v45 = vld [vmem:[%s4297_s30 + $0x168] sm:$0xff] }
  0xf4   : > { %v870_v10 = vadd.f32 %v4604_v59, %v792_v9  ;;  %2271 = vmatpush.msra.mxu1 %v3797_v48 }
  0xf5   : > { %1387 = vst [vmem:[%s4631_s11 + $0x40] sm:$0xff] %v1355_v7  ;;  %1163 = vmatmul.f32.gmra.mxu2 %v4743_v30 }
  0xf6   : > { %v954_v2 = vpop.f32.mrf.mxu1  ;;  %839 = vmatmul.f32.gmra.mxu0 %v4709_v46  ;;  %v410_v46 = vld [vmem:[%s4297_s30 + $0x160] sm:$0x3] }
  0xf7   : > { %v1032_v16 = vadd.f32 %v954_v2, %v870_v10  ;;  %1325 = vmatmul.f32.gmra.mxu3 %v4771_v11  ;;  %v548_v52 = vrot.slane %v410_v46, 1  ;;  %v550_v10 = vrot.slane %v4810_v45, 1  ;;  %v551_v2 = vrot.slane %v4813_v23, 1  ;;  %v3781_v46 = vld [vmem:[%s6021_s2 + $0x478] sm:$0xff] }
  0xf8   : > { %v1116_v17 = vpop.f32.mrf.mxu2  ;;  %2109 = vmatpush.msra.mxu0 %v3781_v46 }
  0xf9   : > { %v1194_v24 = vadd.f32 %v1116_v17, %v1032_v16  ;;  %1001 = vmatmul.f32.gmra.mxu1 %v4737_v27  ;;  %v4805_v62 = vsel %vm474_vm0, %v546_v20, %v548_v52 }
  0xfa   : > { %v1278_v31 = vpop.f32.mrf.mxu3 }
  0xfb   : > { %v1356_v34 = vadd.f32 %v1278_v31, %v1194_v24  ;;  %v795_v22 = vpop.f32.mrf.mxu0  ;;  %v4822_v31 = vsel %vm474_vm0, %v550_v10, %v551_v2 }
  0xfc   : > { %v871_v35 = vadd.f32 %v4604_v59, %v795_v22  ;;  %6061 = vst [vmem:[#allocation2_spill] sm:$0xff] %v4822_v31 }
  0xfd   : > { %1388 = vst [vmem:[%s4631_s11 + $0x48] sm:$0xff] %v1356_v34  ;;  %1166 = vmatmul.f32.gmra.mxu2 %v408_v14  ;;  %v3813_v34 = vld [vmem:[%s6021_s2 + $0x578] sm:$0xff] }
  0xfe   : > { %v957_v38 = vpop.f32.mrf.mxu1  ;;  %842 = vmatmul.f32.gmra.mxu0 %v405_v28  ;;  %2433 = vmatpush.msra.mxu2 %v3813_v34 }
  0xff   : > { %v1033_v42 = vadd.f32 %v957_v38, %v871_v35  ;;  %1328 = vmatmul.f32.gmra.mxu3 %v4785_v36 }
 0x100   : > { %v1119_v3 = vpop.f32.mrf.mxu2 }
 0x101   : > { %v1195_v28 = vadd.f32 %v1119_v3, %v1033_v42  ;;  %1004 = vmatmul.f32.gmra.mxu1 %v4751_v50 }
 0x102   : > { %v1281_v54 = vpop.f32.mrf.mxu3 }
 0x103   : > { %v1357_v57 = vadd.f32 %v1281_v54, %v1195_v28  ;;  %v798_v60 = vpop.f32.mrf.mxu0  ;;  %v414_v54 = vld [vmem:[%s4846_s27] sm:$0xff] }
 0x104   : > { %v872_v61 = vadd.f32 %v4604_v59, %v798_v60 }
 0x105   : > { %1389 = vst [vmem:[%s4631_s11 + $0x50] sm:$0xff] %v1357_v57  ;;  %1169 = vmatmul.f32.gmra.mxu2 %v4777_v15  ;;  %v415_v57 = vld [vmem:[%s4846_s27 + $0x8] sm:$0xff] }
 0x106   : > { %v960_v6 = vpop.f32.mrf.mxu1  ;;  %845 = vmatmul.f32.gmra.mxu0 %v4743_v30  ;;  %v413_v30 = vld [vmem:[%s4297_s30 + $0x178] sm:$0x3] }
 0x107   : > { %v1034_v7 = vadd.f32 %v960_v6, %v872_v61  ;;  %1331 = vmatmul.f32.gmra.mxu3 %v4805_v62  ;;  %v553_v42 = vrot.slane %v413_v30, 1 }
 0x108   : > { %v1122_v9 = vpop.f32.mrf.mxu2 }
 0x109   : > { %v1196_v16 = vadd.f32 %v1122_v9, %v1034_v7  ;;  %1007 = vmatmul.f32.gmra.mxu1 %v4771_v11  ;;  %v4850_v53 = vsel %vm474_vm0, %v551_v2, %v553_v42  ;;  %v555_v7 = vrot.slane %v414_v54, 1  ;;  %v556_v9 = vrot.slane %v415_v57, 1 }
 0x10a   : > { %v1284_v17 = vpop.f32.mrf.mxu3 }
 0x10b   : > { %v1358_v58 = vadd.f32 %v1284_v17, %v1196_v16  ;;  %v801_v20 = vpop.f32.mrf.mxu0 }
 0x10c   : > { %v873_v24 = vadd.f32 %v4604_v59, %v801_v20  ;;  %v4861_v20 = vsel %vm474_vm0, %v555_v7, %v556_v9 }
 0x10d   : > { %1390 = vst [vmem:[%s4631_s11 + $0x58] sm:$0xff] %v1358_v58  ;;  %1172 = vmatmul.f32.gmra.mxu2 %v4810_v45 }
 0x10e   : > { %v963_v22 = vpop.f32.mrf.mxu1  ;;  %848 = vmatmul.f32.gmra.mxu0 %v408_v14 }
 0x10f   : > { %v1035_v35 = vadd.f32 %v963_v22, %v873_v24  ;;  %1334 = vmatmul.f32.gmra.mxu3 %v4822_v31  ;;  %v3812_v24 = vld [vmem:[%s6021_s2 + $0x570] sm:$0xff] }
 0x110   : > { %v1125_v38 = vpop.f32.mrf.mxu2  ;;  %2434 = vmatpush.msra.mxu2 %v3812_v24  ;;  %v3780_v22 = vld [vmem:[%s6021_s2 + $0x470] sm:$0xff] }
 0x111   : > { %v1197_v14 = vadd.f32 %v1125_v38, %v1035_v35  ;;  %1010 = vmatmul.f32.gmra.mxu1 %v4785_v36  ;;  %v3828_v35 = vld [vmem:[%s6021_s2 + $0x5f0] sm:$0xff]  ;;  %2110 = vmatpush.msra.mxu0 %v3780_v22 }
 0x112   : > { %v1287_v49 = vpop.f32.mrf.mxu3  ;;  %2596 = vmatpush.msra.mxu3 %v3828_v35 }
 0x113   : > { %v1359_v3 = vadd.f32 %v1287_v49, %v1197_v14  ;;  %v804_v52 = vpop.f32.mrf.mxu0 }
 0x114   : > { %v874_v28 = vadd.f32 %v4604_v59, %v804_v52 }
 0x115   : > { %1391 = vst [vmem:[%s4631_s11 + $0x60] sm:$0xff] %v1359_v3  ;;  %1175 = vmatmul.f32.gmra.mxu2 %v4813_v23 }
 0x116   : > { %v966_v60 = vpop.f32.mrf.mxu1  ;;  %851 = vmatmul.f32.gmra.mxu0 %v4777_v15  ;;  %v416_v15 = vld [vmem:[%s4846_s27 + $0x10] sm:$0x3] }
 0x117   : > { %v1036_v61 = vadd.f32 %v966_v60, %v874_v28  ;;  %1337 = vmatmul.f32.gmra.mxu3 %v4850_v53  ;;  %v558_v37 = vrot.slane %v416_v15, 1  ;;  %v3991_v60 = vld [vmem:[%s4297_s30 + $0x18] sm:$0xff] }
 0x118   : > { %v1128_v6 = vpop.f32.mrf.mxu2 }
 0x119   : > { %v1198_v10 = vadd.f32 %v1128_v6, %v1036_v61  ;;  %1013 = vmatmul.f32.gmra.mxu1 %v4805_v62  ;;  %v4882_v3 = vsel %vm474_vm0, %v556_v9, %v558_v37  ;;  %v607_v61 = vrot.slane %v3991_v60, 2  ;;  %v3992_v6 = vld [vmem:[%s4297_s30 + $0x20] sm:$0xff]  ;;  %v3827_v37 = vld [vmem:[%s6021_s2 + $0x5e8] sm:$0xff] }
 0x11a   : > { %v1290_v2 = vpop.f32.mrf.mxu3  ;;  %v608_v7 = vrot.slane %v3992_v6, 2  ;;  %v3993_v9 = vld [vmem:[%s4297_s30] sm:$0xff]  ;;  %2597 = vmatpush.msra.mxu3 %v3827_v37 }
 0x11b   : > { %v1360_v16 = vadd.f32 %v1290_v2, %v1198_v10  ;;  %v807_v17 = vpop.f32.mrf.mxu0  ;;  %v602_v2 = vrot.slane %v3993_v9, 2  ;;  %v3778_v37 = vld [vmem:[%s6021_s2 + $0x460] sm:$0xff] }
 0x11c   : > { %v875_v58 = vadd.f32 %v4604_v59, %v807_v17  ;;  %v4894_v24 = vsel %vm601_vm1, %v607_v61, %v608_v7 }
 0x11d   : > { %1392 = vst [vmem:[%s4631_s11 + $0x68] sm:$0xff] %v1360_v16  ;;  %1178 = vmatmul.f32.gmra.mxu2 %v414_v54  ;;  %v3994_v16 = vld [vmem:[%s4297_s30 + $0x8] sm:$0xff] }
 0x11e   : > { %v969_v30 = vpop.f32.mrf.mxu1  ;;  %854 = vmatmul.f32.gmra.mxu0 %v4810_v45  ;;  %v3796_v45 = vld [vmem:[%s6021_s2 + $0x4f0] sm:$0xff]  ;;  %v603_v17 = vrot.slane %v3994_v16, 2 }
 0x11f   : > { %v1037_v34 = vadd.f32 %v969_v30, %v875_v58  ;;  %1340 = vmatmul.f32.gmra.mxu3 %v4861_v20  ;;  %2272 = vmatpush.msra.mxu1 %v3796_v45  ;;  %v3811_v30 = vld [vmem:[%s6021_s2 + $0x568] sm:$0xff] }
 0x120   : > { %v1131_v46 = vpop.f32.mrf.mxu2  ;;  %v604_v22 = vsel %vm601_vm1, %v602_v2, %v603_v17  ;;  %2435 = vmatpush.msra.mxu2 %v3811_v30  ;;  %v3995_v45 = vld [vmem:[%s4297_s30 + $0x28] sm:$0x3] }
 0x121   : > { %v1199_v38 = vadd.f32 %v1131_v46, %v1037_v34  ;;  %1016 = vmatmul.f32.gmra.mxu1 %v4822_v31  ;;  %v3779_v46 = vld [vmem:[%s6021_s2 + $0x468] sm:$0xff] }
 0x122   : > { %v1293_v42 = vpop.f32.mrf.mxu3  ;;  %2111 = vmatpush.msra.mxu0 %v3779_v46 }
 0x123   : > { %v1361_v14 = vadd.f32 %v1293_v42, %v1199_v38  ;;  %v810_v48 = vpop.f32.mrf.mxu0  ;;  %v610_v42 = vrot.slane %v3995_v45, 2 }
 0x124   : > { %v876_v49 = vadd.f32 %v4604_v59, %v810_v48  ;;  %2112 = vmatpush.msra.mxu0 %v3778_v37  ;;  %v3777_v37 = vld [vmem:[%s6021_s2 + $0x458] sm:$0xff] }
 0x125   : > { %1393 = vst [vmem:[%s4631_s11 + $0x70] sm:$0xff] %v1361_v14  ;;  %1181 = vmatmul.f32.gmra.mxu2 %v415_v57  ;;  %v3795_v14 = vld [vmem:[%s6021_s2 + $0x4e8] sm:$0xff]  ;;  %v4917_v61 = vsel %vm601_vm1, %v608_v7, %v610_v42  ;;  %v3999_v42 = vld [vmem:[%s4297_s30 + $0x40] sm:$0x3] }
 0x126   : > { %v972_v52 = vpop.f32.mrf.mxu1  ;;  %857 = vmatmul.f32.gmra.mxu0 %v4813_v23  ;;  %2273 = vmatpush.msra.mxu1 %v3795_v14 }
 0x127   : > { %v1038_v28 = vadd.f32 %v972_v52, %v876_v49  ;;  %1343 = vmatmul.f32.gmra.mxu3 %v4882_v3  ;;  %v3996_v49 = vld [vmem:[%s4297_s30 + $0x10] sm:$0x3]  ;;  %2113 = vmatpush.msra.mxu0 %v3777_v37 }
 0x128   : > { %v1134_v54 = vpop.f32.mrf.mxu2  ;;  %v605_v52 = vrot.slane %v3996_v49, 2 }
 0x129   : > { %v1200_v10 = vadd.f32 %v1134_v54, %v1038_v28  ;;  %1019 = vmatmul.f32.gmra.mxu1 %v4850_v53 }
 0x12a   : > { %v1296_v57 = vpop.f32.mrf.mxu3 }
 0x12b   : > { %v1362_v58 = vadd.f32 %v1296_v57, %v1200_v10  ;;  %v813_v23 = vpop.f32.mrf.mxu0  ;;  %v606_v10 = vsel %vm601_vm1, %v603_v17, %v605_v52  ;;  %v3997_v57 = vld [vmem:[%s4297_s30 + $0x30] sm:$0xff]  ;;  %v3810_v17 = vld [vmem:[%s6021_s2 + $0x560] sm:$0xff] }
 0x12c   : > { %v877_v15 = vadd.f32 %v4604_v59, %v813_v23  ;;  %v612_v16 = vrot.slane %v3997_v57, 2  ;;  %2436 = vmatpush.msra.mxu2 %v3810_v17  ;;  %v3809_v17 = vld [vmem:[%s6021_s2 + $0x558] sm:$0xff] }
 0x12d   : > { %1394 = vst [vmem:[%s4631_s11 + $0x78] sm:$0xff] %v1362_v58  ;;  %1768 = vmatmul.f32.vlgmr.msrb.gmra.mxu2 %v4361_v8  ;;  %v3998_v58 = vld [vmem:[%s4297_s30 + $0x38] sm:$0xff] }
 0x12e   : > { %v975_v34 = vpop.f32.mrf.mxu1  ;;  %1444 = vmatmul.f32.vlgmr.msrb.gmra.mxu0 %v4375_v13  ;;  %v613_v23 = vrot.slane %v3998_v58, 2  ;;  %2437 = vmatpush.msra.mxu2 %v3809_v17 }
 0x12f   : > { %v1039_v35 = vadd.f32 %v975_v34, %v877_v15  ;;  %1930 = vmatmul.f32.vlgmr.msrb.gmra.mxu3 %v4894_v24 }
 0x130   : > { %v1137_v38 = vpop.f32.mrf.mxu2 }
 0x131   : > { %v1201_v13 = vadd.f32 %v1137_v38, %v1039_v35  ;;  %1606 = vmatmul.f32.vlgmr.msrb.gmra.mxu1 %v604_v22  ;;  %v3826_v38 = vld [vmem:[%s6021_s2 + $0x5e0] sm:$0xff] }
 0x132   : > { %v1299_v48 = vpop.f32.mrf.mxu3  ;;  %2598 = vmatpush.msra.mxu3 %v3826_v38  ;;  %v3825_v38 = vld [vmem:[%s6021_s2 + $0x5d8] sm:$0xff] }
 0x133   : > { %v1363_v28 = vadd.f32 %v1299_v48, %v1201_v13  ;;  %v816_v54 = vpop.f32.mrf.mxu0  ;;  %v615_v13 = vrot.slane %v3999_v42, 2  ;;  %v3794_v48 = vld [vmem:[%s6021_s2 + $0x4e0] sm:$0xff]  ;;  %v4002_v42 = vld [vmem:[%s4297_s30 + $0x58] sm:$0x3] }
 0x134   : > { %v878_v60 = vadd.f32 %v4604_v59, %v816_v54  ;;  %2274 = vmatpush.msra.mxu1 %v3794_v48  ;;  %2599 = vmatpush.msra.mxu3 %v3825_v38  ;;  %v3793_v48 = vld [vmem:[%s6021_s2 + $0x4d8] sm:$0xff] }
 0x135   : > { %1395 = vst [vmem:[%s4631_s11 + $0x80] sm:$0xff] %v1363_v28  ;;  %1771 = vmatmul.f32.gmra.mxu2 %v4408_v26 }
 0x136   : > { %v978_v6 = vpop.f32.mrf.mxu1  ;;  %1447 = vmatmul.f32.gmra.mxu0 %v4415_v29  ;;  %v4928_v29 = vsel %vm601_vm1, %v612_v16, %v613_v23  ;;  %v4001_v16 = vld [vmem:[%s4297_s30 + $0x50] sm:$0xff]  ;;  %2275 = vmatpush.msra.mxu1 %v3793_v48 }
 0x137   : > { %v1040_v9 = vadd.f32 %v978_v6, %v878_v60  ;;  %1933 = vmatmul.f32.gmra.mxu3 %v4917_v61  ;;  %v4950_v60 = vsel %vm601_vm1, %v613_v23, %v615_v13  ;;  %v618_v58 = vrot.slane %v4001_v16, 2  ;;  %v620_v13 = vrot.slane %v4002_v42, 2  ;;  %v3824_v42 = vld [vmem:[%s6021_s2 + $0x5d0] sm:$0xff] }
 0x138   : > { %v1140_v2 = vpop.f32.mrf.mxu2  ;;  %2600 = vmatpush.msra.mxu3 %v3824_v42  ;;  %v3807_v42 = vld [vmem:[%s6021_s2 + $0x548] sm:$0xff] }
 0x139   : > { %v1202_v15 = vadd.f32 %v1140_v2, %v1040_v9  ;;  %1609 = vmatmul.f32.gmra.mxu1 %v606_v10  ;;  %v4000_v2 = vld [vmem:[%s4297_s30 + $0x48] sm:$0xff] }
 0x13a   : > { %v1302_v7 = vpop.f32.mrf.mxu3  ;;  %v617_v57 = vrot.slane %v4000_v2, 2 }
 0x13b   : > { %v1364_v30 = vadd.f32 %v1302_v7, %v1202_v15  ;;  %v819_v34 = vpop.f32.mrf.mxu0 }
 0x13c   : > { %v879_v22 = vadd.f32 %v4604_v59, %v819_v34 }
 0x13d   : > { %1396 = vst [vmem:[%s4631_s11 + $0x88] sm:$0xff] %v1364_v30  ;;  %1774 = vmatmul.f32.gmra.mxu2 %v4420_v32 }
 0x13e   : > { %v981_v35 = vpop.f32.mrf.mxu1  ;;  %1450 = vmatmul.f32.gmra.mxu0 %v4361_v8 }
 0x13f   : > { %v1041_v46 = vadd.f32 %v981_v35, %v879_v22  ;;  %1936 = vmatmul.f32.gmra.mxu3 %v4928_v29  ;;  %v4961_v22 = vsel %vm601_vm1, %v617_v57, %v618_v58  ;;  %v4003_v57 = vld [vmem:[%s4297_s30 + $0x60] sm:$0xff] }
 0x140   : > { %v1143_v45 = vpop.f32.mrf.mxu2  ;;  %v622_v16 = vrot.slane %v4003_v57, 2 }
 0x141   : > { %v1203_v14 = vadd.f32 %v1143_v45, %v1041_v46  ;;  %1612 = vmatmul.f32.gmra.mxu1 %v4894_v24 }
 0x142   : > { %v1305_v49 = vpop.f32.mrf.mxu3 }
 0x143   : > { %v1365_v52 = vadd.f32 %v1305_v49, %v1203_v14  ;;  %v822_v28 = vpop.f32.mrf.mxu0 }
 0x144   : > { %v880_v54 = vadd.f32 %v4604_v59, %v822_v28 }
 0x145   : > { %1397 = vst [vmem:[%s4631_s11 + $0x90] sm:$0xff] %v1365_v52  ;;  %1777 = vmatmul.f32.gmra.mxu2 %v4439_v39 }
 0x146   : > { %v984_v6 = vpop.f32.mrf.mxu1  ;;  %1453 = vmatmul.f32.gmra.mxu0 %v4408_v26 }
 0x147   : > { %v1042_v10 = vadd.f32 %v984_v6, %v880_v54  ;;  %1939 = vmatmul.f32.gmra.mxu3 %v4950_v60  ;;  %v4983_v6 = vsel %vm601_vm1, %v618_v58, %v620_v13 }
 0x148   : > { %v1146_v9 = vpop.f32.mrf.mxu2 }
 0x149   : > { %v1204_v15 = vadd.f32 %v1146_v9, %v1042_v10  ;;  %1615 = vmatmul.f32.gmra.mxu1 %v4917_v61 }
 0x14a   : > { %v1308_v23 = vpop.f32.mrf.mxu3 }
 0x14b   : > { %v1366_v7 = vadd.f32 %v1308_v23, %v1204_v15  ;;  %v825_v30 = vpop.f32.mrf.mxu0  ;;  %v4004_v15 = vld [vmem:[%s4297_s30 + $0x68] sm:$0xff] }
 0x14c   : > { %v881_v34 = vadd.f32 %v4604_v59, %v825_v30  ;;  %v623_v23 = vrot.slane %v4004_v15, 2 }
 0x14d   : > { %1398 = vst [vmem:[%s4631_s11 + $0x98] sm:$0xff] %v1366_v7  ;;  %1780 = vmatmul.f32.gmra.mxu2 %v4447_v44 }
 0x14e   : > { %v987_v35 = vpop.f32.mrf.mxu1  ;;  %1456 = vmatmul.f32.gmra.mxu0 %v4420_v32 }
 0x14f   : > { %v1043_v46 = vadd.f32 %v987_v35, %v881_v34  ;;  %1942 = vmatmul.f32.gmra.mxu3 %v4961_v22  ;;  %v4994_v35 = vsel %vm601_vm1, %v622_v16, %v623_v23 }
 0x150   : > { %v1149_v45 = vpop.f32.mrf.mxu2 }
 0x151   : > { %v1205_v14 = vadd.f32 %v1149_v45, %v1043_v46  ;;  %1618 = vmatmul.f32.gmra.mxu1 %v4928_v29  ;;  %v3808_v46 = vld [vmem:[%s6021_s2 + $0x550] sm:$0xff] }
 0x152   : > { %v1311_v49 = vpop.f32.mrf.mxu3  ;;  %2438 = vmatpush.msra.mxu2 %v3808_v46  ;;  %v3776_v45 = vld [vmem:[%s6021_s2 + $0x450] sm:$0xff] }
 0x153   : > { %v1367_v52 = vadd.f32 %v1311_v49, %v1205_v14  ;;  %v828_v28 = vpop.f32.mrf.mxu0  ;;  %v4005_v14 = vld [vmem:[%s4297_s30 + $0x70] sm:$0x3]  ;;  %2114 = vmatpush.msra.mxu0 %v3776_v45 }
 0x154   : > { %v882_v54 = vadd.f32 %v4604_v59, %v828_v28  ;;  %v625_v48 = vrot.slane %v4005_v14, 2  ;;  %2439 = vmatpush.msra.mxu2 %v3807_v42 }
 0x155   : > { %1399 = vst [vmem:[%s4631_s11 + $0xa0] sm:$0xff] %v1367_v52  ;;  %1783 = vmatmul.f32.gmra.mxu2 %v4465_v51  ;;  %v3792_v52 = vld [vmem:[%s6021_s2 + $0x4d0] sm:$0xff] }
 0x156   : > { %v990_v10 = vpop.f32.mrf.mxu1  ;;  %1459 = vmatmul.f32.gmra.mxu0 %v4439_v39  ;;  %2276 = vmatpush.msra.mxu1 %v3792_v52  ;;  %v4008_v52 = vld [vmem:[%s4297_s30 + $0x88] sm:$0x3] }
 0x157   : > { %v1044_v9 = vadd.f32 %v990_v10, %v882_v54  ;;  %1945 = vmatmul.f32.gmra.mxu3 %v4983_v6 }
 0x158   : > { %v1152_v2 = vpop.f32.mrf.mxu2 }
 0x159   : > { %v1206_v7 = vadd.f32 %v1152_v2, %v1044_v9  ;;  %1621 = vmatmul.f32.gmra.mxu1 %v4950_v60  ;;  %v5016_v2 = vsel %vm601_vm1, %v623_v23, %v625_v48  ;;  %v3823_v48 = vld [vmem:[%s6021_s2 + $0x5c8] sm:$0xff] }
 0x15a   : > { %v1314_v58 = vpop.f32.mrf.mxu3  ;;  %2601 = vmatpush.msra.mxu3 %v3823_v48 }
 0x15b   : > { %v1368_v30 = vadd.f32 %v1314_v58, %v1206_v7  ;;  %v831_v34 = vpop.f32.mrf.mxu0  ;;  %v4006_v7 = vld [vmem:[%s4297_s30 + $0x78] sm:$0xff] }
 0x15c   : > { %v883_v17 = vadd.f32 %v4604_v59, %v831_v34  ;;  %v627_v58 = vrot.slane %v4006_v7, 2 }
 0x15d   : > { %1400 = vst [vmem:[%s4631_s11 + $0xa8] sm:$0xff] %v1368_v30  ;;  %1786 = vmatmul.f32.gmra.mxu2 %v4472_v56  ;;  %v4007_v30 = vld [vmem:[%s4297_s30 + $0x80] sm:$0xff] }
 0x15e   : > { %v993_v37 = vpop.f32.mrf.mxu1  ;;  %1462 = vmatmul.f32.gmra.mxu0 %v4447_v44  ;;  %v628_v34 = vrot.slane %v4007_v30, 2 }
 0x15f   : > { %v1045_v38 = vadd.f32 %v993_v37, %v883_v17  ;;  %1948 = vmatmul.f32.gmra.mxu3 %v4994_v35 }
 0x160   : > { %v1155_v13 = vpop.f32.mrf.mxu2  ;;  %v5027_v45 = vsel %vm601_vm1, %v627_v58, %v628_v34 }
 0x161   : > { %v1207_v49 = vadd.f32 %v1155_v13, %v1045_v38  ;;  %1624 = vmatmul.f32.gmra.mxu1 %v4961_v22 }
 0x162   : > { %v1317_v28 = vpop.f32.mrf.mxu3 }
 0x163   : > { %v1369_v54 = vadd.f32 %v1317_v28, %v1207_v49  ;;  %v834_v10 = vpop.f32.mrf.mxu0  ;;  %v630_v28 = vrot.slane %v4008_v52, 2  ;;  %v3806_v52 = vld [vmem:[%s6021_s2 + $0x540] sm:$0xff] }
 0x164   : > { %v884_v9 = vadd.f32 %v4604_v59, %v834_v10  ;;  %v3791_v10 = vld [vmem:[%s6021_s2 + $0x4c8] sm:$0xff]  ;;  %2440 = vmatpush.msra.mxu2 %v3806_v52 }
 0x165   : > { %1401 = vst [vmem:[%s4631_s11 + $0xb0] sm:$0xff] %v1369_v54  ;;  %1789 = vmatmul.f32.gmra.mxu2 %v4490_v63  ;;  %2277 = vmatpush.msra.mxu1 %v3791_v10  ;;  %v5054_v58 = vsel %vm601_vm1, %v628_v34, %v630_v28  ;;  %v3774_v10 = vld [vmem:[%s6021_s2 + $0x440] sm:$0xff] }
 0x166   : > { %v996_v57 = vpop.f32.mrf.mxu1  ;;  %1465 = vmatmul.f32.gmra.mxu0 %v4465_v51 }
 0x167   : > { %v1046_v16 = vadd.f32 %v996_v57, %v884_v9  ;;  %1951 = vmatmul.f32.gmra.mxu3 %v5016_v2 }
 0x168   : > { %v1158_v15 = vpop.f32.mrf.mxu2 }
 0x169   : > { %v1208_v17 = vadd.f32 %v1158_v15, %v1046_v16  ;;  %1627 = vmatmul.f32.gmra.mxu1 %v4983_v6  ;;  %v5050_v15 = vld [vmem:[%s6022_s3] ss:$0 sm:$0xff] }
 0x16a   : > { %v1320_v23 = vpop.f32.mrf.mxu3 }
 0x16b   : > { %v1370_v46 = vadd.f32 %v1320_v23, %v1208_v17  ;;  %v837_v37 = vpop.f32.mrf.mxu0 }
 0x16c   : > { %v885_v38 = vadd.f32 %v4604_v59, %v837_v37  ;;  %v3775_v59 = vld [vmem:[%s6021_s2 + $0x448] sm:$0xff] }
 0x16d   : > { %1402 = vst [vmem:[%s4631_s11 + $0xb8] sm:$0xff] %v1370_v46  ;;  %1792 = vmatmul.f32.gmra.mxu2 %v4497_v4  ;;  %2115 = vmatpush.msra.mxu0 %v3775_v59  ;;  %v4010_v46 = vld [vmem:[%s4297_s30 + $0x90] sm:$0xff] }
 0x16e   : > { %v999_v13 = vpop.f32.mrf.mxu1  ;;  %1468 = vmatmul.f32.gmra.mxu0 %v4472_v56  ;;  %v632_v37 = vrot.slane %v4010_v46, 2 }
 0x16f   : > { %v1047_v14 = vadd.f32 %v999_v13, %v885_v38  ;;  %1954 = vmatmul.f32.gmra.mxu3 %v5027_v45  ;;  %v4011_v38 = vld [vmem:[%s4297_s30 + $0x98] sm:$0xff]  ;;  %2116 = vmatpush.msra.mxu0 %v3774_v10 }
 0x170   : > { %v1161_v49 = vpop.f32.mrf.mxu2  ;;  %v633_v42 = vrot.slane %v4011_v38, 2 }
 0x171   : > { %v1209_v54 = vadd.f32 %v1161_v49, %v1047_v14  ;;  %1630 = vmatmul.f32.gmra.mxu1 %v4994_v35 }
 0x172   : > { %v1323_v9 = vpop.f32.mrf.mxu3  ;;  %v5065_v49 = vsel %vm601_vm1, %v632_v37, %v633_v42 }
 0x173   : > { %v1371_v57 = vadd.f32 %v1323_v9, %v1209_v54  ;;  %v840_v16 = vpop.f32.mrf.mxu0  ;;  %v3822_v9 = vld [vmem:[%s6021_s2 + $0x5c0] sm:$0xff] }
 0x174   : > { %v886_v7 = vadd.f32 %v5050_v15, %v840_v16  ;;  %v4012_v16 = vld [vmem:[%s4297_s30 + $0xa0] sm:$0x3]  ;;  %2602 = vmatpush.msra.mxu3 %v3822_v9 }
 0x175   : > { %1403 = vst [vmem:[%s4631_s11 + $0xc0] sm:$0xff] %v1371_v57  ;;  %1795 = vmatmul.f32.gmra.mxu2 %v4515_v12 }
 0x176   : > { %v1002_v30 = vpop.f32.mrf.mxu1  ;;  %1471 = vmatmul.f32.gmra.mxu0 %v4490_v63 }
 0x177   : > { %v1048_v17 = vadd.f32 %v1002_v30, %v886_v7  ;;  %1957 = vmatmul.f32.gmra.mxu3 %v5054_v58  ;;  %v635_v7 = vrot.slane %v4012_v16, 2 }
 0x178   : > { %v1164_v23 = vpop.f32.mrf.mxu2 }
 0x179   : > { %v1210_v13 = vadd.f32 %v1164_v23, %v1048_v17  ;;  %1633 = vmatmul.f32.gmra.mxu1 %v5016_v2  ;;  %v3790_v17 = vld [vmem:[%s6021_s2 + $0x4c0] sm:$0xff] }
 0x17a   : > { %v1326_v34 = vpop.f32.mrf.mxu3  ;;  %2278 = vmatpush.msra.mxu1 %v3790_v17 }
 0x17b   : > { %v1372_v14 = vadd.f32 %v1326_v34, %v1210_v13  ;;  %v843_v59 = vpop.f32.mrf.mxu0  ;;  %v5087_v13 = vsel %vm601_vm1, %v633_v42, %v635_v7 }
 0x17c   : > { %v887_v48 = vadd.f32 %v5050_v15, %v843_v59 }
 0x17d   : > { %1404 = vst [vmem:[%s4631_s11 + $0xc8] sm:$0xff] %v1372_v14  ;;  %1798 = vmatmul.f32.gmra.mxu2 %v4522_v18 }
 0x17e   : > { %v1005_v28 = vpop.f32.mrf.mxu1  ;;  %1474 = vmatmul.f32.gmra.mxu0 %v4497_v4 }
 0x17f   : > { %v1049_v54 = vadd.f32 %v1005_v28, %v887_v48  ;;  %1960 = vmatmul.f32.gmra.mxu3 %v5065_v49  ;;  %v4013_v48 = vld [vmem:[%s4297_s30 + $0xa8] sm:$0xff]  ;;  %v4014_v28 = vld [vmem:[%s4297_s30 + $0xb0] sm:$0xff] }
 0x180   : > { %v1167_v57 = vpop.f32.mrf.mxu2  ;;  %v637_v52 = vrot.slane %v4013_v48, 2  ;;  %v3789_v48 = vld [vmem:[%s6021_s2 + $0x4b8] sm:$0xff] }
 0x181   : > { %v1211_v30 = vadd.f32 %v1167_v57, %v1049_v54  ;;  %1636 = vmatmul.f32.gmra.mxu1 %v5027_v45  ;;  %v638_v54 = vrot.slane %v4014_v28, 2 }
 0x182   : > { %v1329_v23 = vpop.f32.mrf.mxu3  ;;  %2279 = vmatpush.msra.mxu1 %v3789_v48 }
 0x183   : > { %v1373_v46 = vadd.f32 %v1329_v23, %v1211_v30  ;;  %v846_v37 = vpop.f32.mrf.mxu0  ;;  %v5098_v7 = vsel %vm601_vm1, %v637_v52, %v638_v54  ;;  %v3805_v30 = vld [vmem:[%s6021_s2 + $0x538] sm:$0xff] }
 0x184   : > { %v888_v38 = vadd.f32 %v5050_v15, %v846_v37  ;;  %2441 = vmatpush.msra.mxu2 %v3805_v30  ;;  %v3821_v37 = vld [vmem:[%s6021_s2 + $0x5b8] sm:$0xff] }
 0x185   : > { %1405 = vst [vmem:[%s4631_s11 + $0xd0] sm:$0xff] %v1373_v46  ;;  %1801 = vmatmul.f32.gmra.mxu2 %v4540_v25  ;;  %v3773_v46 = vld [vmem:[%s6021_s2 + $0x438] sm:$0xff]  ;;  %2603 = vmatpush.msra.mxu3 %v3821_v37 }
 0x186   : > { %v1008_v34 = vpop.f32.mrf.mxu1  ;;  %1477 = vmatmul.f32.gmra.mxu0 %v4515_v12 }
 0x187   : > { %v1050_v14 = vadd.f32 %v1008_v34, %v888_v38  ;;  %1963 = vmatmul.f32.gmra.mxu3 %v5087_v13  ;;  %v4015_v34 = vld [vmem:[%s4297_s30 + $0xb8] sm:$0x3]  ;;  %2117 = vmatpush.msra.mxu0 %v3773_v46  ;;  %v4017_v46 = vld [vmem:[%s4297_s30 + $0xc8] sm:$0xff] }
 0x188   : > { %v1170_v59 = vpop.f32.mrf.mxu2  ;;  %v643_v37 = vrot.slane %v4017_v46, 2  ;;  %v3788_v46 = vld [vmem:[%s6021_s2 + $0x4b0] sm:$0xff] }
 0x189   : > { %v1212_v10 = vadd.f32 %v1170_v59, %v1050_v14  ;;  %1639 = vmatmul.f32.gmra.mxu1 %v5054_v58  ;;  %v640_v14 = vrot.slane %v4015_v34, 2 }
 0x18a   : > { %v1332_v42 = vpop.f32.mrf.mxu3  ;;  %2280 = vmatpush.msra.mxu1 %v3788_v46 }
 0x18b   : > { %v1374_v9 = vadd.f32 %v1332_v42, %v1212_v10  ;;  %v849_v57 = vpop.f32.mrf.mxu0 }
 0x18c   : > { %v889_v16 = vadd.f32 %v5050_v15, %v849_v57 }
 0x18d   : > { %1406 = vst [vmem:[%s4631_s11 + $0xd8] sm:$0xff] %v1374_v9  ;;  %1804 = vmatmul.f32.gmra.mxu2 %v4547_v33  ;;  %v5120_v9 = vsel %vm601_vm1, %v638_v54, %v640_v14 }
 0x18e   : > { %v1011_v17 = vpop.f32.mrf.mxu1  ;;  %1480 = vmatmul.f32.gmra.mxu0 %v4522_v18 }
 0x18f   : > { %v1051_v23 = vadd.f32 %v1011_v17, %v889_v16  ;;  %1966 = vmatmul.f32.gmra.mxu3 %v5098_v7  ;;  %v4016_v17 = vld [vmem:[%s4297_s30 + $0xc0] sm:$0xff] }
 0x190   : > { %v1173_v38 = vpop.f32.mrf.mxu2 }
 0x191   : > { %v1213_v59 = vadd.f32 %v1173_v38, %v1051_v23  ;;  %1642 = vmatmul.f32.gmra.mxu1 %v5065_v49  ;;  %v642_v23 = vrot.slane %v4016_v17, 2 }
 0x192   : > { %v1335_v52 = vpop.f32.mrf.mxu3 }
 0x193   : > { %v1375_v28 = vadd.f32 %v1335_v52, %v1213_v59  ;;  %v852_v10 = vpop.f32.mrf.mxu0  ;;  %v5131_v48 = vsel %vm601_vm1, %v642_v23, %v643_v37  ;;  %v3804_v52 = vld [vmem:[%s6021_s2 + $0x530] sm:$0xff] }
 0x194   : > { %v890_v42 = vadd.f32 %v5050_v15, %v852_v10  ;;  %6062 = vst [vmem:[#allocation3_spill] sm:$0xff] %v5131_v48  ;;  %2442 = vmatpush.msra.mxu2 %v3804_v52 }
 0x195   : > { %1407 = vst [vmem:[%s4631_s11 + $0xe0] sm:$0xff] %v1375_v28  ;;  %1807 = vmatmul.f32.gmra.mxu2 %v4565_v41 }
 0x196   : > { %v1014_v57 = vpop.f32.mrf.mxu1  ;;  %1483 = vmatmul.f32.gmra.mxu0 %v4540_v25 }
 0x197   : > { %v1052_v16 = vadd.f32 %v1014_v57, %v890_v42  ;;  %1969 = vmatmul.f32.gmra.mxu3 %v5120_v9  ;;  %v3772_v42 = vld [vmem:[%s6021_s2 + $0x430] sm:$0xff] }
 0x198   : > { %v1176_v30 = vpop.f32.mrf.mxu2  ;;  %v3820_v57 = vld [vmem:[%s6021_s2 + $0x5b0] sm:$0xff]  ;;  %2118 = vmatpush.msra.mxu0 %v3772_v42  ;;  %v4019_v42 = vld [vmem:[%s4297_s30 + $0xd8] sm:$0xff] }
 0x199   : > { %v1214_v38 = vadd.f32 %v1176_v30, %v1052_v16  ;;  %1645 = vmatmul.f32.gmra.mxu1 %v5087_v13  ;;  %v4018_v30 = vld [vmem:[%s4297_s30 + $0xd0] sm:$0x3]  ;;  %2604 = vmatpush.msra.mxu3 %v3820_v57  ;;  %v647_v57 = vrot.slane %v4019_v42, 2 }
 0x19a   : > { %v1338_v54 = vpop.f32.mrf.mxu3  ;;  %v645_v17 = vrot.slane %v4018_v30, 2 }
 0x19b   : > { %v1376_v34 = vadd.f32 %v1338_v54, %v1214_v38  ;;  %v855_v14 = vpop.f32.mrf.mxu0 }
 0x19c   : > { %v891_v59 = vadd.f32 %v5050_v15, %v855_v14 }
 0x19d   : > { %1408 = vst [vmem:[%s4631_s11 + $0xe8] sm:$0xff] %v1376_v34  ;;  %1810 = vmatmul.f32.gmra.mxu2 %v4575_v47 }
 0x19e   : > { %v1017_v28 = vpop.f32.mrf.mxu1  ;;  %1486 = vmatmul.f32.gmra.mxu0 %v4547_v33 }
 0x19f   : > { %v1053_v10 = vadd.f32 %v1017_v28, %v891_v59  ;;  %1972 = vmatmul.f32.gmra.mxu3 %v5131_v48  ;;  %v5153_v59 = vsel %vm601_vm1, %v643_v37, %v645_v17 }
 0x1a0   : > { %v1179_v16 = vpop.f32.mrf.mxu2  ;;  %6063 = vst [vmem:[#allocation4_spill] sm:$0xff] %v5153_v59 }
 0x1a1   : > { %v1215_v23 = vadd.f32 %v1179_v16, %v1053_v10  ;;  %1648 = vmatmul.f32.gmra.mxu1 %v5098_v7  ;;  %v4020_v16 = vld [vmem:[%s4297_s30 + $0xe0] sm:$0xff] }
 0x1a2   : > { %v1341_v38 = vpop.f32.mrf.mxu3  ;;  %v648_v30 = vrot.slane %v4020_v16, 2 }
 0x1a3   : > { %v1377_v54 = vadd.f32 %v1341_v38, %v1215_v23  ;;  %v858_v34 = vpop.f32.mrf.mxu0 }
 0x1a4   : > { %v892_v14 = vadd.f32 %v5050_v15, %v858_v34  ;;  %v3803_v34 = vld [vmem:[%s6021_s2 + $0x528] sm:$0xff] }
 0x1a5   : > { %1409 = vst [vmem:[%s4631_s11 + $0xf0] sm:$0xff] %v1377_v54  ;;  %1813 = vmatmul.f32.gmra.mxu2 %v4593_v55  ;;  %v5164_v54 = vsel %vm601_vm1, %v647_v57, %v648_v30  ;;  %v4021_v57 = vld [vmem:[%s4297_s30 + $0xe8] sm:$0x3] }
 0x1a6   : > { %v1020_v52 = vpop.f32.mrf.mxu1  ;;  %1489 = vmatmul.f32.gmra.mxu0 %v4565_v41  ;;  %6064 = vst [vmem:[#allocation5_spill] sm:$0xff] %v5164_v54  ;;  %2443 = vmatpush.msra.mxu2 %v3803_v34  ;;  %v650_v16 = vrot.slane %v4021_v57, 2 }
 0x1a7   : > { %v1054_v28 = vadd.f32 %v1020_v52, %v892_v14  ;;  %1975 = vmatmul.f32.gmra.mxu3 %v5153_v59 }
 0x1a8   : > { %v1182_v10 = vpop.f32.mrf.mxu2 }
 0x1a9   : > { %v1216_v23 = vadd.f32 %v1182_v10, %v1054_v28  ;;  %1651 = vmatmul.f32.gmra.mxu1 %v5120_v9  ;;  %v3771_v28 = vld [vmem:[%s6021_s2 + $0x428] sm:$0xff] }
 0x1aa   : > { %v1344_v37 = vpop.f32.mrf.mxu3  ;;  %v3819_v10 = vld [vmem:[%s6021_s2 + $0x5a8] sm:$0xff]  ;;  %2119 = vmatpush.msra.mxu0 %v3771_v28 }
 0x1ab   : > { %v1378_v17 = vadd.f32 %v1344_v37, %v1216_v23  ;;  %v1445_v46 = vpop.f32.mrf.mxu0  ;;  %2605 = vmatpush.msra.mxu3 %v3819_v10  ;;  %v3787_v37 = vld [vmem:[%s6021_s2 + $0x4a8] sm:$0xff] }
 0x1ac   : > { %v1541_v38 = vadd.f32 %v5050_v15, %v1445_v46  ;;  %2281 = vmatpush.msra.mxu1 %v3787_v37 }
 0x1ad   : > { %1410 = vst [vmem:[%s4631_s11 + $0xf8] sm:$0xff] %v1378_v17  ;;  %1816 = vmatmul.f32.gmra.mxu2 %v4610_v1 }
 0x1ae   : > { %v1607_v14 = vpop.f32.mrf.mxu1  ;;  %1492 = vmatmul.f32.gmra.mxu0 %v4575_v47 }
 0x1af   : > { %v1703_v52 = vadd.f32 %v1607_v14, %v1541_v38  ;;  %1978 = vmatmul.f32.gmra.mxu3 %v5164_v54  ;;  %v5186_v14 = vsel %vm601_vm1, %v648_v30, %v650_v16 }
 0x1b0   : > { %v1769_v42 = vpop.f32.mrf.mxu2  ;;  %6065 = vst [vmem:[#allocation6_spill] sm:$0xff] %v5186_v14 }
 0x1b1   : > { %v1865_v23 = vadd.f32 %v1769_v42, %v1703_v52  ;;  %1654 = vmatmul.f32.gmra.mxu1 %v5131_v48  ;;  %v4022_v42 = vld [vmem:[%s4297_s30 + $0xf0] sm:$0xff] }
 0x1b2   : > { %v1931_v17 = vpop.f32.mrf.mxu3  ;;  %v652_v57 = vrot.slane %v4022_v42, 2  ;;  %v3818_v42 = vld [vmem:[%s6021_s2 + $0x5a0] sm:$0xff] }
 0x1b3   : > { %v2027_v46 = vadd.f32 %v1931_v17, %v1865_v23  ;;  %v1448_v38 = vpop.f32.mrf.mxu0  ;;  %v4023_v23 = vld [vmem:[%s4297_s30 + $0xf8] sm:$0xff]  ;;  %2606 = vmatpush.msra.mxu3 %v3818_v42 }
 0x1b4   : > { %v1542_v34 = vadd.f32 %v5050_v15, %v1448_v38  ;;  %v653_v37 = vrot.slane %v4023_v23, 2  ;;  %v4024_v23 = vld [vmem:[%s4297_s30 + $0x100] sm:$0x3] }
 0x1b5   : > { %3734 = vst [vmem:[%s4631_s11 + $0x100] sm:$0xff] %v2027_v46  ;;  %1819 = vmatmul.f32.gmra.mxu2 %v4635_v21 }
 0x1b6   : > { %v1610_v52 = vpop.f32.mrf.mxu1  ;;  %1495 = vmatmul.f32.gmra.mxu0 %v4593_v55  ;;  %v5197_v48 = vsel %vm601_vm1, %v652_v57, %v653_v37 }
 0x1b7   : > { %v1704_v28 = vadd.f32 %v1610_v52, %v1542_v34  ;;  %1981 = vmatmul.f32.gmra.mxu3 %v5186_v14  ;;  %6066 = vst [vmem:[#allocation7_spill] sm:$0xff] %v5197_v48  ;;  %v3802_v34 = vld [vmem:[%s6021_s2 + $0x520] sm:$0xff] }
 0x1b8   : > { %v1772_v10 = vpop.f32.mrf.mxu2  ;;  %2444 = vmatpush.msra.mxu2 %v3802_v34 }
 0x1b9   : > { %v1866_v17 = vadd.f32 %v1772_v10, %v1704_v28  ;;  %1657 = vmatmul.f32.gmra.mxu1 %v5153_v59  ;;  %v3770_v10 = vld [vmem:[%s6021_s2 + $0x420] sm:$0xff] }
 0x1ba   : > { %v1934_v30 = vpop.f32.mrf.mxu3  ;;  %2120 = vmatpush.msra.mxu0 %v3770_v10 }
 0x1bb   : > { %v2028_v16 = vadd.f32 %v1934_v30, %v1866_v17  ;;  %v1451_v46 = vpop.f32.mrf.mxu0  ;;  %v655_v17 = vrot.slane %v4024_v23, 2 }
 0x1bc   : > { %v1543_v38 = vadd.f32 %v5050_v15, %v1451_v46 }
 0x1bd   : > { %3735 = vst [vmem:[%s4631_s11 + $0x108] sm:$0xff] %v2028_v16  ;;  %1822 = vmatmul.f32.gmra.mxu2 %v4649_v40  ;;  %v3786_v16 = vld [vmem:[%s6021_s2 + $0x4a0] sm:$0xff]  ;;  %v5219_v59 = vsel %vm601_vm1, %v653_v37, %v655_v17 }
 0x1be   : > { %v1613_v52 = vpop.f32.mrf.mxu1  ;;  %1498 = vmatmul.f32.gmra.mxu0 %v4610_v1  ;;  %2282 = vmatpush.msra.mxu1 %v3786_v16  ;;  %6067 = vst [vmem:[#allocation8_spill] sm:$0xff] %v5219_v59 }
 0x1bf   : > { %v1705_v28 = vadd.f32 %v1613_v52, %v1543_v38  ;;  %1984 = vmatmul.f32.gmra.mxu3 %v5197_v48 }
 0x1c0   : > { %v1775_v57 = vpop.f32.mrf.mxu2 }
 0x1c1   : > { %v1867_v30 = vadd.f32 %v1775_v57, %v1705_v28  ;;  %1660 = vmatmul.f32.gmra.mxu1 %v5164_v54  ;;  %v4025_v57 = vld [vmem:[%s4297_s30 + $0x108] sm:$0xff] }
 0x1c2   : > { %v1937_v46 = vpop.f32.mrf.mxu3  ;;  %v657_v23 = vrot.slane %v4025_v57, 2  ;;  %v3817_v57 = vld [vmem:[%s6021_s2 + $0x598] sm:$0xff] }
 0x1c3   : > { %v2029_v38 = vadd.f32 %v1937_v46, %v1867_v30  ;;  %v1454_v34 = vpop.f32.mrf.mxu0  ;;  %v4026_v30 = vld [vmem:[%s4297_s30 + $0x110] sm:$0xff]  ;;  %2607 = vmatpush.msra.mxu3 %v3817_v57 }
 0x1c4   : > { %v1544_v52 = vadd.f32 %v5050_v15, %v1454_v34  ;;  %v658_v16 = vrot.slane %v4026_v30, 2  ;;  %v4027_v30 = vld [vmem:[%s4297_s30 + $0x118] sm:$0x3] }
 0x1c5   : > { %3736 = vst [vmem:[%s4631_s11 + $0x110] sm:$0xff] %v2029_v38  ;;  %1825 = vmatmul.f32.gmra.mxu2 %v4669_v0 }
 0x1c6   : > { %v1616_v28 = vpop.f32.mrf.mxu1  ;;  %1501 = vmatmul.f32.gmra.mxu0 %v4635_v21  ;;  %v5230_v54 = vsel %vm601_vm1, %v657_v23, %v658_v16 }
 0x1c7   : > { %v1706_v10 = vadd.f32 %v1616_v28, %v1544_v52  ;;  %1987 = vmatmul.f32.gmra.mxu3 %v5219_v59  ;;  %6068 = vst [vmem:[#allocation9_spill] sm:$0xff] %v5230_v54  ;;  %v3801_v52 = vld [vmem:[%s6021_s2 + $0x518] sm:$0xff] }
 0x1c8   : > { %v1778_v42 = vpop.f32.mrf.mxu2  ;;  %2445 = vmatpush.msra.mxu2 %v3801_v52 }
 0x1c9   : > { %v1868_v46 = vadd.f32 %v1778_v42, %v1706_v10  ;;  %1663 = vmatmul.f32.gmra.mxu1 %v5186_v14  ;;  %v3769_v42 = vld [vmem:[%s6021_s2 + $0x418] sm:$0xff] }
 0x1ca   : > { %v1940_v37 = vpop.f32.mrf.mxu3  ;;  %2121 = vmatpush.msra.mxu0 %v3769_v42 }
 0x1cb   : > { %v2030_v17 = vadd.f32 %v1940_v37, %v1868_v46  ;;  %v1457_v38 = vpop.f32.mrf.mxu0  ;;  %v660_v46 = vrot.slane %v4027_v30, 2 }
 0x1cc   : > { %v1545_v34 = vadd.f32 %v5050_v15, %v1457_v38 }
 0x1cd   : > { %3737 = vst [vmem:[%s4631_s11 + $0x118] sm:$0xff] %v2030_v17  ;;  %1828 = vmatmul.f32.gmra.mxu2 %v4683_v19  ;;  %v3785_v17 = vld [vmem:[%s6021_s2 + $0x498] sm:$0xff]  ;;  %v5252_v14 = vsel %vm601_vm1, %v658_v16, %v660_v46 }
 0x1ce   : > { %v1619_v28 = vpop.f32.mrf.mxu1  ;;  %1504 = vmatmul.f32.gmra.mxu0 %v4649_v40  ;;  %2283 = vmatpush.msra.mxu1 %v3785_v17  ;;  %6069 = vst [vmem:[#allocation10_spill] sm:$0xff] %v5252_v14 }
 0x1cf   : > { %v1707_v10 = vadd.f32 %v1619_v28, %v1545_v34  ;;  %1990 = vmatmul.f32.gmra.mxu3 %v5230_v54 }
 0x1d0   : > { %v1781_v23 = vpop.f32.mrf.mxu2 }
 0x1d1   : > { %v1869_v37 = vadd.f32 %v1781_v23, %v1707_v10  ;;  %1666 = vmatmul.f32.gmra.mxu1 %v5197_v48  ;;  %v4028_v23 = vld [vmem:[%s4297_s30 + $0x120] sm:$0xff] }
 0x1d2   : > { %v1943_v38 = vpop.f32.mrf.mxu3  ;;  %v662_v30 = vrot.slane %v4028_v23, 2  ;;  %v3816_v23 = vld [vmem:[%s6021_s2 + $0x590] sm:$0xff] }
 0x1d3   : > { %v2031_v34 = vadd.f32 %v1943_v38, %v1869_v37  ;;  %v1460_v52 = vpop.f32.mrf.mxu0  ;;  %v4029_v37 = vld [vmem:[%s4297_s30 + $0x128] sm:$0xff]  ;;  %2608 = vmatpush.msra.mxu3 %v3816_v23 }
 0x1d4   : > { %v1546_v28 = vadd.f32 %v5050_v15, %v1460_v52  ;;  %v663_v17 = vrot.slane %v4029_v37, 2  ;;  %v4030_v37 = vld [vmem:[%s4297_s30 + $0x130] sm:$0x3] }
 0x1d5   : > { %3738 = vst [vmem:[%s4631_s11 + $0x120] sm:$0xff] %v2031_v34  ;;  %1831 = vmatmul.f32.gmra.mxu2 %v4703_v43 }
 0x1d6   : > { %v1622_v10 = vpop.f32.mrf.mxu1  ;;  %1507 = vmatmul.f32.gmra.mxu0 %v4669_v0  ;;  %v5263_v48 = vsel %vm601_vm1, %v662_v30, %v663_v17 }
 0x1d7   : > { %v1708_v42 = vadd.f32 %v1622_v10, %v1546_v28  ;;  %1993 = vmatmul.f32.gmra.mxu3 %v5252_v14  ;;  %6070 = vst [vmem:[#allocation11_spill] sm:$0xff] %v5263_v48  ;;  %v3800_v28 = vld [vmem:[%s6021_s2 + $0x510] sm:$0xff] }
 0x1d8   : > { %v1784_v57 = vpop.f32.mrf.mxu2  ;;  %2446 = vmatpush.msra.mxu2 %v3800_v28 }
 0x1d9   : > { %v1870_v38 = vadd.f32 %v1784_v57, %v1708_v42  ;;  %1669 = vmatmul.f32.gmra.mxu1 %v5219_v59  ;;  %v3768_v57 = vld [vmem:[%s6021_s2 + $0x410] sm:$0xff] }
 0x1da   : > { %v1946_v16 = vpop.f32.mrf.mxu3  ;;  %2122 = vmatpush.msra.mxu0 %v3768_v57 }
 0x1db   : > { %v2032_v46 = vadd.f32 %v1946_v16, %v1870_v38  ;;  %v1463_v34 = vpop.f32.mrf.mxu0  ;;  %v665_v38 = vrot.slane %v4030_v37, 2 }
 0x1dc   : > { %v1547_v52 = vadd.f32 %v5050_v15, %v1463_v34 }
 0x1dd   : > { %3739 = vst [vmem:[%s4631_s11 + $0x128] sm:$0xff] %v2032_v46  ;;  %1834 = vmatmul.f32.gmra.mxu2 %v4717_v5  ;;  %v3784_v46 = vld [vmem:[%s6021_s2 + $0x490] sm:$0xff]  ;;  %v5285_v59 = vsel %vm601_vm1, %v663_v17, %v665_v38 }
 0x1de   : > { %v1625_v10 = vpop.f32.mrf.mxu1  ;;  %1510 = vmatmul.f32.gmra.mxu0 %v4683_v19  ;;  %2284 = vmatpush.msra.mxu1 %v3784_v46  ;;  %6071 = vst [vmem:[#allocation12_spill] sm:$0xff] %v5285_v59 }
 0x1df   : > { %v1709_v42 = vadd.f32 %v1625_v10, %v1547_v52  ;;  %1996 = vmatmul.f32.gmra.mxu3 %v5263_v48 }
 0x1e0   : > { %v1787_v30 = vpop.f32.mrf.mxu2 }
 0x1e1   : > { %v1871_v16 = vadd.f32 %v1787_v30, %v1709_v42  ;;  %1672 = vmatmul.f32.gmra.mxu1 %v5230_v54  ;;  %v4031_v30 = vld [vmem:[%s4297_s30 + $0x138] sm:$0xff] }
 0x1e2   : > { %v1949_v34 = vpop.f32.mrf.mxu3  ;;  %v667_v37 = vrot.slane %v4031_v30, 2  ;;  %v3815_v30 = vld [vmem:[%s6021_s2 + $0x588] sm:$0xff] }
 0x1e3   : > { %v2033_v52 = vadd.f32 %v1949_v34, %v1871_v16  ;;  %v1466_v28 = vpop.f32.mrf.mxu0  ;;  %v4032_v16 = vld [vmem:[%s4297_s30 + $0x140] sm:$0xff]  ;;  %2609 = vmatpush.msra.mxu3 %v3815_v30 }
 0x1e4   : > { %v1548_v10 = vadd.f32 %v5050_v15, %v1466_v28  ;;  %v668_v46 = vrot.slane %v4032_v16, 2  ;;  %v4033_v16 = vld [vmem:[%s4297_s30 + $0x148] sm:$0x3] }
 0x1e5   : > { %3740 = vst [vmem:[%s4631_s11 + $0x130] sm:$0xff] %v2033_v52  ;;  %1837 = vmatmul.f32.gmra.mxu2 %v4737_v27 }
 0x1e6   : > { %v1628_v42 = vpop.f32.mrf.mxu1  ;;  %1513 = vmatmul.f32.gmra.mxu0 %v4703_v43  ;;  %v5296_v54 = vsel %vm601_vm1, %v667_v37, %v668_v46 }
 0x1e7   : > { %v1710_v57 = vadd.f32 %v1628_v42, %v1548_v10  ;;  %1999 = vmatmul.f32.gmra.mxu3 %v5285_v59  ;;  %6072 = vst [vmem:[#allocation13_spill] sm:$0xff] %v5296_v54  ;;  %v3799_v10 = vld [vmem:[%s6021_s2 + $0x508] sm:$0xff] }
 0x1e8   : > { %v1790_v23 = vpop.f32.mrf.mxu2  ;;  %2447 = vmatpush.msra.mxu2 %v3799_v10 }
 0x1e9   : > { %v1872_v34 = vadd.f32 %v1790_v23, %v1710_v57  ;;  %1675 = vmatmul.f32.gmra.mxu1 %v5252_v14  ;;  %v3767_v23 = vld [vmem:[%s6021_s2 + $0x408] sm:$0xff] }
 0x1ea   : > { %v1952_v17 = vpop.f32.mrf.mxu3  ;;  %2123 = vmatpush.msra.mxu0 %v3767_v23 }
 0x1eb   : > { %v2034_v38 = vadd.f32 %v1952_v17, %v1872_v34  ;;  %v1469_v52 = vpop.f32.mrf.mxu0  ;;  %v670_v34 = vrot.slane %v4033_v16, 2 }
 0x1ec   : > { %v1549_v28 = vadd.f32 %v5050_v15, %v1469_v52 }
 0x1ed   : > { %3741 = vst [vmem:[%s4631_s11 + $0x138] sm:$0xff] %v2034_v38  ;;  %1840 = vmatmul.f32.gmra.mxu2 %v4751_v50  ;;  %v3783_v38 = vld [vmem:[%s6021_s2 + $0x488] sm:$0xff]  ;;  %v5318_v14 = vsel %vm601_vm1, %v668_v46, %v670_v34 }
 0x1ee   : > { %v1631_v42 = vpop.f32.mrf.mxu1  ;;  %1516 = vmatmul.f32.gmra.mxu0 %v4717_v5  ;;  %2285 = vmatpush.msra.mxu1 %v3783_v38  ;;  %6073 = vst [vmem:[#allocation14_spill] sm:$0xff] %v5318_v14 }
 0x1ef   : > { %v1711_v57 = vadd.f32 %v1631_v42, %v1549_v28  ;;  %2002 = vmatmul.f32.gmra.mxu3 %v5296_v54 }
 0x1f0   : > { %v1793_v37 = vpop.f32.mrf.mxu2 }
 0x1f1   : > { %v1873_v17 = vadd.f32 %v1793_v37, %v1711_v57  ;;  %1678 = vmatmul.f32.gmra.mxu1 %v5263_v48  ;;  %v4034_v37 = vld [vmem:[%s4297_s30 + $0x150] sm:$0xff] }
 0x1f2   : > { %v1955_v52 = vpop.f32.mrf.mxu3  ;;  %v672_v16 = vrot.slane %v4034_v37, 2  ;;  %v3814_v37 = vld [vmem:[%s6021_s2 + $0x580] sm:$0xff] }
 0x1f3   : > { %v2035_v28 = vadd.f32 %v1955_v52, %v1873_v17  ;;  %v1472_v10 = vpop.f32.mrf.mxu0  ;;  %v4035_v17 = vld [vmem:[%s4297_s30 + $0x158] sm:$0xff]  ;;  %2610 = vmatpush.msra.mxu3 %v3814_v37 }
 0x1f4   : > { %v1550_v42 = vadd.f32 %v5050_v15, %v1472_v10  ;;  %v673_v38 = vrot.slane %v4035_v17, 2  ;;  %v4036_v17 = vld [vmem:[%s4297_s30 + $0x160] sm:$0x3] }
 0x1f5   : > { %3742 = vst [vmem:[%s4631_s11 + $0x140] sm:$0xff] %v2035_v28  ;;  %1843 = vmatmul.f32.gmra.mxu2 %v4771_v11 }
 0x1f6   : > { %v1634_v57 = vpop.f32.mrf.mxu1  ;;  %1519 = vmatmul.f32.gmra.mxu0 %v4737_v27  ;;  %v5329_v48 = vsel %vm601_vm1, %v672_v16, %v673_v38 }
 0x1f7   : > { %v1712_v23 = vadd.f32 %v1634_v57, %v1550_v42  ;;  %2005 = vmatmul.f32.gmra.mxu3 %v5318_v14  ;;  %6074 = vst [vmem:[#allocation15_spill] sm:$0xff] %v5329_v48  ;;  %v3798_v42 = vld [vmem:[%s6021_s2 + $0x500] sm:$0xff] }
 0x1f8   : > { %v1796_v30 = vpop.f32.mrf.mxu2  ;;  %2448 = vmatpush.msra.mxu2 %v3798_v42 }
 0x1f9   : > { %v1874_v52 = vadd.f32 %v1796_v30, %v1712_v23  ;;  %1681 = vmatmul.f32.gmra.mxu1 %v5285_v59  ;;  %v3766_v30 = vld [vmem:[%s6021_s2 + $0x400] sm:$0xff] }
 0x1fa   : > { %v1958_v46 = vpop.f32.mrf.mxu3  ;;  %2124 = vmatpush.msra.mxu0 %v3766_v30 }
 0x1fb   : > { %v2036_v34 = vadd.f32 %v1958_v46, %v1874_v52  ;;  %v1475_v28 = vpop.f32.mrf.mxu0  ;;  %v675_v52 = vrot.slane %v4036_v17, 2 }
 0x1fc   : > { %v1551_v10 = vadd.f32 %v5050_v15, %v1475_v28 }
 0x1fd   : > { %3743 = vst [vmem:[%s4631_s11 + $0x148] sm:$0xff] %v2036_v34  ;;  %1846 = vmatmul.f32.gmra.mxu2 %v4785_v36  ;;  %v3782_v34 = vld [vmem:[%s6021_s2 + $0x480] sm:$0xff]  ;;  %v5351_v59 = vsel %vm601_vm1, %v673_v38, %v675_v52 }
 0x1fe   : > { %v1637_v57 = vpop.f32.mrf.mxu1  ;;  %1522 = vmatmul.f32.gmra.mxu0 %v4751_v50  ;;  %2286 = vmatpush.msra.mxu1 %v3782_v34 }
 0x1ff   : > { %v1713_v23 = vadd.f32 %v1637_v57, %v1551_v10  ;;  %2008 = vmatmul.f32.gmra.mxu3 %v5329_v48 }
 0x200   : > { %v1799_v16 = vpop.f32.mrf.mxu2 }
 0x201   : > { %v1875_v46 = vadd.f32 %v1799_v16, %v1713_v23  ;;  %1684 = vmatmul.f32.gmra.mxu1 %v5296_v54  ;;  %v4037_v16 = vld [vmem:[%s4297_s30 + $0x168] sm:$0xff] }
 0x202   : > { %v1961_v28 = vpop.f32.mrf.mxu3  ;;  %v677_v17 = vrot.slane %v4037_v16, 2  ;;  %v3925_v16 = vld [vmem:[%s6021_s2 + $0x7f8] sm:$0xff] }
 0x203   : > { %v2037_v10 = vadd.f32 %v1961_v28, %v1875_v46  ;;  %v1478_v42 = vpop.f32.mrf.mxu0  ;;  %v4038_v46 = vld [vmem:[%s4297_s30 + $0x170] sm:$0xff]  ;;  %3276 = vmatpush.msrb.mxu3 %v3925_v16 }
 0x204   : > { %v1552_v57 = vadd.f32 %v5050_v15, %v1478_v42  ;;  %v678_v34 = vrot.slane %v4038_v46, 2  ;;  %v4039_v46 = vld [vmem:[%s4297_s30 + $0x178] sm:$0x3] }
 0x205   : > { %3744 = vst [vmem:[%s4631_s11 + $0x150] sm:$0xff] %v2037_v10  ;;  %1849 = vmatmul.f32.gmra.mxu2 %v4805_v62 }
 0x206   : > { %v1640_v23 = vpop.f32.mrf.mxu1  ;;  %1525 = vmatmul.f32.gmra.mxu0 %v4771_v11  ;;  %v5362_v54 = vsel %vm601_vm1, %v677_v17, %v678_v34 }
 0x207   : > { %v1714_v30 = vadd.f32 %v1640_v23, %v1552_v57  ;;  %2011 = vmatmul.f32.gmra.mxu3 %v5351_v59  ;;  %6075 = vst [vmem:[#allocation16_spill] sm:$0xff] %v5362_v54  ;;  %v3909_v57 = vld [vmem:[%s6021_s2 + $0x778] sm:$0xff] }
 0x208   : > { %v1802_v37 = vpop.f32.mrf.mxu2  ;;  %3114 = vmatpush.msrb.mxu2 %v3909_v57 }
 0x209   : > { %v1876_v28 = vadd.f32 %v1802_v37, %v1714_v30  ;;  %1687 = vmatmul.f32.gmra.mxu1 %v5318_v14  ;;  %v3877_v37 = vld [vmem:[%s6021_s2 + $0x678] sm:$0xff] }
 0x20a   : > { %v1964_v38 = vpop.f32.mrf.mxu3  ;;  %2790 = vmatpush.msrb.mxu0 %v3877_v37 }
 0x20b   : > { %v2038_v52 = vadd.f32 %v1964_v38, %v1876_v28  ;;  %v1481_v10 = vpop.f32.mrf.mxu0  ;;  %v680_v28 = vrot.slane %v4039_v46, 2 }
 0x20c   : > { %v1553_v42 = vadd.f32 %v5050_v15, %v1481_v10 }
 0x20d   : > { %3745 = vst [vmem:[%s4631_s11 + $0x158] sm:$0xff] %v2038_v52  ;;  %1852 = vmatmul.f32.gmra.mxu2 %v4822_v31  ;;  %v3893_v52 = vld [vmem:[%s6021_s2 + $0x6f8] sm:$0xff]  ;;  %v5384_v14 = vsel %vm601_vm1, %v678_v34, %v680_v28 }
 0x20e   : > { %v1643_v23 = vpop.f32.mrf.mxu1  ;;  %1528 = vmatmul.f32.gmra.mxu0 %v4785_v36  ;;  %2952 = vmatpush.msrb.mxu1 %v3893_v52  ;;  %6076 = vst [vmem:[#allocation17_spill] sm:$0xff] %v5384_v14 }
 0x20f   : > { %v1715_v30 = vadd.f32 %v1643_v23, %v1553_v42  ;;  %2014 = vmatmul.f32.gmra.mxu3 %v5362_v54 }
 0x210   : > { %v1805_v17 = vpop.f32.mrf.mxu2 }
 0x211   : > { %v1877_v38 = vadd.f32 %v1805_v17, %v1715_v30  ;;  %1690 = vmatmul.f32.gmra.mxu1 %v5329_v48  ;;  %v4040_v17 = vld [vmem:[%s4846_s27] sm:$0xff] }
 0x212   : > { %v1967_v10 = vpop.f32.mrf.mxu3  ;;  %v682_v46 = vrot.slane %v4040_v17, 2  ;;  %v3924_v17 = vld [vmem:[%s6021_s2 + $0x7f0] sm:$0xff] }
 0x213   : > { %v2039_v42 = vadd.f32 %v1967_v10, %v1877_v38  ;;  %v1484_v57 = vpop.f32.mrf.mxu0  ;;  %v4041_v38 = vld [vmem:[%s4846_s27 + $0x8] sm:$0xff]  ;;  %3277 = vmatpush.msrb.mxu3 %v3924_v17 }
 0x214   : > { %v1554_v23 = vadd.f32 %v5050_v15, %v1484_v57  ;;  %v683_v52 = vrot.slane %v4041_v38, 2  ;;  %v4042_v38 = vld [vmem:[%s4846_s27 + $0x10] sm:$0x3] }
 0x215   : > { %3746 = vst [vmem:[%s4631_s11 + $0x160] sm:$0xff] %v2039_v42  ;;  %1855 = vmatmul.f32.gmra.mxu2 %v4850_v53 }
 0x216   : > { %v1646_v30 = vpop.f32.mrf.mxu1  ;;  %1531 = vmatmul.f32.gmra.mxu0 %v4805_v62  ;;  %v5395_v48 = vsel %vm601_vm1, %v682_v46, %v683_v52 }
 0x217   : > { %v1716_v37 = vadd.f32 %v1646_v30, %v1554_v23  ;;  %2017 = vmatmul.f32.gmra.mxu3 %v5384_v14  ;;  %6077 = vst [vmem:[#allocation18_spill] sm:$0xff] %v5395_v48  ;;  %v3908_v23 = vld [vmem:[%s6021_s2 + $0x770] sm:$0xff] }
 0x218   : > { %v1808_v16 = vpop.f32.mrf.mxu2  ;;  %3115 = vmatpush.msrb.mxu2 %v3908_v23 }
 0x219   : > { %v1878_v10 = vadd.f32 %v1808_v16, %v1716_v37  ;;  %1693 = vmatmul.f32.gmra.mxu1 %v5351_v59  ;;  %v3876_v16 = vld [vmem:[%s6021_s2 + $0x670] sm:$0xff] }
 0x21a   : > { %v1970_v34 = vpop.f32.mrf.mxu3  ;;  %2791 = vmatpush.msrb.mxu0 %v3876_v16 }
 0x21b   : > { %v2040_v28 = vadd.f32 %v1970_v34, %v1878_v10  ;;  %v1487_v42 = vpop.f32.mrf.mxu0  ;;  %v685_v10 = vrot.slane %v4042_v38, 2 }
 0x21c   : > { %v1555_v57 = vadd.f32 %v5050_v15, %v1487_v42 }
 0x21d   : > { %3747 = vst [vmem:[%s4631_s11 + $0x168] sm:$0xff] %v2040_v28  ;;  %1858 = vmatmul.f32.gmra.mxu2 %v4861_v20  ;;  %v3892_v28 = vld [vmem:[%s6021_s2 + $0x6f0] sm:$0xff] }
 0x21e   : > { %v1649_v30 = vpop.f32.mrf.mxu1  ;;  %1534 = vmatmul.f32.gmra.mxu0 %v4822_v31  ;;  %2953 = vmatpush.msrb.mxu1 %v3892_v28 }
 0x21f   : > { %v1717_v37 = vadd.f32 %v1649_v30, %v1555_v57  ;;  %2020 = vmatmul.f32.gmra.mxu3 %v5395_v48  ;;  %v5417_v48 = vsel %vm601_vm1, %v683_v52, %v685_v10  ;;  %v4043_v10 = vld [vmem:[%s4297_s30 + $0x30] sm:$0xff] }
 0x220   : > { %v1811_v46 = vpop.f32.mrf.mxu2  ;;  %6078 = vst [vmem:[#allocation19_spill] sm:$0xff] %v5417_v48 }
 0x221   : > { %v1879_v34 = vadd.f32 %v1811_v46, %v1717_v37  ;;  %1696 = vmatmul.f32.gmra.mxu1 %v5362_v54 }
 0x222   : > { %v1973_v42 = vpop.f32.mrf.mxu3 }
 0x223   : > { %v2041_v57 = vadd.f32 %v1973_v42, %v1879_v34  ;;  %v1490_v23 = vpop.f32.mrf.mxu0  ;;  %v3907_v42 = vld [vmem:[%s6021_s2 + $0x768] sm:$0xff] }
 0x224   : > { %v1556_v30 = vadd.f32 %v5050_v15, %v1490_v23  ;;  %v4044_v23 = vld [vmem:[%s4297_s30 + $0x18] sm:$0xff]  ;;  %3116 = vmatpush.msrb.mxu2 %v3907_v42 }
 0x225   : > { %3748 = vst [vmem:[%s4631_s11 + $0x170] sm:$0xff] %v2041_v57  ;;  %1861 = vmatmul.f32.gmra.mxu2 %v4882_v3 }
 0x226   : > { %v1652_v37 = vpop.f32.mrf.mxu1  ;;  %1537 = vmatmul.f32.gmra.mxu0 %v4850_v53 }
 0x227   : > { %v1718_v16 = vadd.f32 %v1652_v37, %v1556_v30  ;;  %2023 = vmatmul.f32.gmra.mxu3 %v5417_v48  ;;  %v3875_v37 = vld [vmem:[%s6021_s2 + $0x668] sm:$0xff]  ;;  %v3906_v48 = vld [vmem:[%s6021_s2 + $0x760] sm:$0xff] }
 0x228   : > { %v1814_v17 = vpop.f32.mrf.mxu2  ;;  %2792 = vmatpush.msrb.mxu0 %v3875_v37  ;;  %v4046_v37 = vld [vmem:[%s4297_s30 + $0x20] sm:$0xff]  ;;  %3117 = vmatpush.msrb.mxu2 %v3906_v48 }
 0x229   : > { %v1880_v46 = vadd.f32 %v1814_v17, %v1718_v16  ;;  %1699 = vmatmul.f32.gmra.mxu1 %v5384_v14  ;;  %v3923_v16 = vld [vmem:[%s6021_s2 + $0x7e8] sm:$0xff]  ;;  %v3890_v48 = vld [vmem:[%s6021_s2 + $0x6e0] sm:$0xff] }
 0x22a   : > { %v1976_v38 = vpop.f32.mrf.mxu3  ;;  %3278 = vmatpush.msrb.mxu3 %v3923_v16  ;;  %v5751_v14 = vld [vmem:[%s4846_s27 + $0x20] sm:$0xff] }
 0x22b   : > { %v2042_v34 = vadd.f32 %v1976_v38, %v1880_v46  ;;  %v1493_v28 = vpop.f32.mrf.mxu0  ;;  %v3891_v38 = vld [vmem:[%s6021_s2 + $0x6e8] sm:$0xff] }
 0x22c   : > { %v1557_v52 = vadd.f32 %v5050_v15, %v1493_v28  ;;  %2954 = vmatpush.msrb.mxu1 %v3891_v38 }
 0x22d   : > { %3749 = vst [vmem:[%s4631_s11 + $0x178] sm:$0xff] %v2042_v34  ;;  %2449 = vmatmul.f32.vlgmr.msra.gmra.mxu2 %v4043_v10 }
 0x22e   : > { %v1655_v57 = vpop.f32.mrf.mxu1  ;;  %2125 = vmatmul.f32.vlgmr.msra.gmra.mxu0 %v4044_v23  ;;  %2955 = vmatpush.msrb.mxu1 %v3890_v48 }
 0x22f   : > { %v1719_v30 = vadd.f32 %v1655_v57, %v1557_v52  ;;  %2611 = vmatmul.f32.vlgmr.msra.gmra.mxu3 %v4420_v32  ;;  %v4045_v57 = vld [vmem:[%s4297_s30 + $0x38] sm:$0xff] }
 0x230   : > { %v1817_v17 = vpop.f32.mrf.mxu2 }
 0x231   : > { %v1881_v46 = vadd.f32 %v1817_v17, %v1719_v30  ;;  %2287 = vmatmul.f32.vlgmr.msra.gmra.mxu1 %v4361_v8 }
 0x232   : > { %v1979_v34 = vpop.f32.mrf.mxu3 }
 0x233   : > { %v2043_v28 = vadd.f32 %v1979_v34, %v1881_v46  ;;  %v1496_v52 = vpop.f32.mrf.mxu0 }
 0x234   : > { %v1558_v42 = vadd.f32 %v5050_v15, %v1496_v52 }
 0x235   : > { %3750 = vst [vmem:[%s4631_s11 + $0x180] sm:$0xff] %v2043_v28  ;;  %2452 = vmatmul.f32.gmra.mxu2 %v4045_v57  ;;  %v4047_v28 = vld [vmem:[%s4297_s30 + $0x48] sm:$0xff] }
 0x236   : > { %v1658_v23 = vpop.f32.mrf.mxu1  ;;  %2128 = vmatmul.f32.gmra.mxu0 %v4046_v37 }
 0x237   : > { %v1720_v30 = vadd.f32 %v1658_v23, %v1558_v42  ;;  %2614 = vmatmul.f32.gmra.mxu3 %v4439_v39  ;;  %v3874_v23 = vld [vmem:[%s6021_s2 + $0x660] sm:$0xff] }
 0x238   : > { %v1820_v16 = vpop.f32.mrf.mxu2  ;;  %2793 = vmatpush.msrb.mxu0 %v3874_v23 }
 0x239   : > { %v1882_v17 = vadd.f32 %v1820_v16, %v1720_v30  ;;  %2290 = vmatmul.f32.gmra.mxu1 %v4408_v26  ;;  %v3922_v30 = vld [vmem:[%s6021_s2 + $0x7e0] sm:$0xff] }
 0x23a   : > { %v1982_v38 = vpop.f32.mrf.mxu3  ;;  %3279 = vmatpush.msrb.mxu3 %v3922_v30 }
 0x23b   : > { %v2044_v46 = vadd.f32 %v1982_v38, %v1882_v17  ;;  %v1499_v34 = vpop.f32.mrf.mxu0 }
 0x23c   : > { %v1559_v52 = vadd.f32 %v5050_v15, %v1499_v34 }
 0x23d   : > { %3751 = vst [vmem:[%s4631_s11 + $0x188] sm:$0xff] %v2044_v46  ;;  %2455 = vmatmul.f32.gmra.mxu2 %v4047_v28 }
 0x23e   : > { %v1661_v37 = vpop.f32.mrf.mxu1  ;;  %2131 = vmatmul.f32.gmra.mxu0 %v4043_v10 }
 0x23f   : > { %v1721_v42 = vadd.f32 %v1661_v37, %v1559_v52  ;;  %2617 = vmatmul.f32.gmra.mxu3 %v4447_v44  ;;  %v4048_v52 = vld [vmem:[%s4297_s30 + $0x50] sm:$0xff] }
 0x240   : > { %v1823_v16 = vpop.f32.mrf.mxu2 }
 0x241   : > { %v1883_v17 = vadd.f32 %v1823_v16, %v1721_v42  ;;  %2293 = vmatmul.f32.gmra.mxu1 %v4420_v32 }
 0x242   : > { %v1985_v10 = vpop.f32.mrf.mxu3 }
 0x243   : > { %v2045_v38 = vadd.f32 %v1985_v10, %v1883_v17  ;;  %v1502_v46 = vpop.f32.mrf.mxu0 }
 0x244   : > { %v1560_v34 = vadd.f32 %v5050_v15, %v1502_v46  ;;  %v4049_v46 = vld [vmem:[%s4297_s30 + $0x60] sm:$0xff] }
 0x245   : > { %3752 = vst [vmem:[%s4631_s11 + $0x190] sm:$0xff] %v2045_v38  ;;  %2458 = vmatmul.f32.gmra.mxu2 %v4048_v52  ;;  %v3905_v38 = vld [vmem:[%s6021_s2 + $0x758] sm:$0xff] }
 0x246   : > { %v1664_v37 = vpop.f32.mrf.mxu1  ;;  %2134 = vmatmul.f32.gmra.mxu0 %v4045_v57  ;;  %3118 = vmatpush.msrb.mxu2 %v3905_v38  ;;  %v4051_v38 = vld [vmem:[%s4297_s30 + $0x68] sm:$0xff] }
 0x247   : > { %v1722_v42 = vadd.f32 %v1664_v37, %v1560_v34  ;;  %2620 = vmatmul.f32.gmra.mxu3 %v4465_v51  ;;  %v3873_v37 = vld [vmem:[%s6021_s2 + $0x658] sm:$0xff] }
 0x248   : > { %v1826_v23 = vpop.f32.mrf.mxu2  ;;  %2794 = vmatpush.msrb.mxu0 %v3873_v37 }
 0x249   : > { %v1884_v30 = vadd.f32 %v1826_v23, %v1722_v42  ;;  %2296 = vmatmul.f32.gmra.mxu1 %v4439_v39 }
 0x24a   : > { %v1988_v16 = vpop.f32.mrf.mxu3 }
 0x24b   : > { %v2046_v48 = vadd.f32 %v1988_v16, %v1884_v30  ;;  %v1505_v17 = vpop.f32.mrf.mxu0 }
 0x24c   : > { %v1561_v10 = vadd.f32 %v5050_v15, %v1505_v17  ;;  %v3921_v15 = vld [vmem:[%s6021_s2 + $0x7d8] sm:$0xff]  ;;  %v5490_v17 = vld [vmem:[%s6022_s3] ss:$0 sm:$0xff] }
 0x24d   : > { %3753 = vst [vmem:[%s4631_s11 + $0x198] sm:$0xff] %v2046_v48  ;;  %2461 = vmatmul.f32.gmra.mxu2 %v4049_v46  ;;  %3280 = vmatpush.msrb.mxu3 %v3921_v15 }
 0x24e   : > { %v1667_v57 = vpop.f32.mrf.mxu1  ;;  %2137 = vmatmul.f32.gmra.mxu0 %v4047_v28  ;;  %v3889_v28 = vld [vmem:[%s6021_s2 + $0x6d8] sm:$0xff] }
 0x24f   : > { %v1723_v34 = vadd.f32 %v1667_v57, %v1561_v10  ;;  %2623 = vmatmul.f32.gmra.mxu3 %v4472_v56  ;;  %2956 = vmatpush.msrb.mxu1 %v3889_v28 }
 0x250   : > { %v1829_v42 = vpop.f32.mrf.mxu2 }
 0x251   : > { %v1885_v23 = vadd.f32 %v1829_v42, %v1723_v34  ;;  %2299 = vmatmul.f32.gmra.mxu1 %v4447_v44 }
 0x252   : > { %v1991_v30 = vpop.f32.mrf.mxu3 }
 0x253   : > { %v2047_v16 = vadd.f32 %v1991_v30, %v1885_v23  ;;  %v1508_v48 = vpop.f32.mrf.mxu0 }
 0x254   : > { %v1562_v10 = vadd.f32 %v5490_v17, %v1508_v48  ;;  %v4052_v48 = vld [vmem:[%s4297_s30 + $0x78] sm:$0xff] }
 0x255   : > { %3754 = vst [vmem:[%s4631_s11 + $0x1a0] sm:$0xff] %v2047_v16  ;;  %2464 = vmatmul.f32.gmra.mxu2 %v4051_v38  ;;  %v3904_v16 = vld [vmem:[%s6021_s2 + $0x750] sm:$0xff] }
 0x256   : > { %v1670_v57 = vpop.f32.mrf.mxu1  ;;  %2140 = vmatmul.f32.gmra.mxu0 %v4048_v52  ;;  %3119 = vmatpush.msrb.mxu2 %v3904_v16  ;;  %v4053_v16 = vld [vmem:[%s4297_s30 + $0x80] sm:$0xff] }
 0x257   : > { %v1724_v34 = vadd.f32 %v1670_v57, %v1562_v10  ;;  %2626 = vmatmul.f32.gmra.mxu3 %v4490_v63  ;;  %v3872_v57 = vld [vmem:[%s6021_s2 + $0x650] sm:$0xff] }
 0x258   : > { %v1832_v37 = vpop.f32.mrf.mxu2  ;;  %2795 = vmatpush.msrb.mxu0 %v3872_v57 }
 0x259   : > { %v1886_v15 = vadd.f32 %v1832_v37, %v1724_v34  ;;  %2302 = vmatmul.f32.gmra.mxu1 %v4465_v51  ;;  %v3920_v34 = vld [vmem:[%s6021_s2 + $0x7d0] sm:$0xff] }
 0x25a   : > { %v1994_v42 = vpop.f32.mrf.mxu3  ;;  %3281 = vmatpush.msrb.mxu3 %v3920_v34 }
 0x25b   : > { %v2048_v23 = vadd.f32 %v1994_v42, %v1886_v15  ;;  %v1511_v28 = vpop.f32.mrf.mxu0 }
 0x25c   : > { %v1563_v30 = vadd.f32 %v5490_v17, %v1511_v28 }
 0x25d   : > { %3755 = vst [vmem:[%s4631_s11 + $0x1a8] sm:$0xff] %v2048_v23  ;;  %2467 = vmatmul.f32.gmra.mxu2 %v4052_v48 }
 0x25e   : > { %v1673_v52 = vpop.f32.mrf.mxu1  ;;  %2143 = vmatmul.f32.gmra.mxu0 %v4049_v46  ;;  %v3888_v46 = vld [vmem:[%s6021_s2 + $0x6d0] sm:$0xff] }
 0x25f   : > { %v1725_v10 = vadd.f32 %v1673_v52, %v1563_v30  ;;  %2629 = vmatmul.f32.gmra.mxu3 %v4497_v4  ;;  %2957 = vmatpush.msrb.mxu1 %v3888_v46 }
 0x260   : > { %v1835_v37 = vpop.f32.mrf.mxu2 }
 0x261   : > { %v1887_v15 = vadd.f32 %v1835_v37, %v1725_v10  ;;  %2305 = vmatmul.f32.gmra.mxu1 %v4472_v56 }
 0x262   : > { %v1997_v42 = vpop.f32.mrf.mxu3 }
 0x263   : > { %v2049_v23 = vadd.f32 %v1997_v42, %v1887_v15  ;;  %v1514_v28 = vpop.f32.mrf.mxu0 }
 0x264   : > { %v1564_v30 = vadd.f32 %v5490_v17, %v1514_v28  ;;  %v4054_v28 = vld [vmem:[%s4297_s30 + $0x90] sm:$0xff] }
 0x265   : > { %3756 = vst [vmem:[%s4631_s11 + $0x1b0] sm:$0xff] %v2049_v23  ;;  %2470 = vmatmul.f32.gmra.mxu2 %v4053_v16  ;;  %v3903_v23 = vld [vmem:[%s6021_s2 + $0x748] sm:$0xff] }
 0x266   : > { %v1676_v52 = vpop.f32.mrf.mxu1  ;;  %2146 = vmatmul.f32.gmra.mxu0 %v4051_v38  ;;  %3120 = vmatpush.msrb.mxu2 %v3903_v23  ;;  %v4055_v23 = vld [vmem:[%s4297_s30 + $0x98] sm:$0xff] }
 0x267   : > { %v1726_v10 = vadd.f32 %v1676_v52, %v1564_v30  ;;  %2632 = vmatmul.f32.gmra.mxu3 %v4515_v12  ;;  %v3871_v52 = vld [vmem:[%s6021_s2 + $0x648] sm:$0xff] }
 0x268   : > { %v1838_v57 = vpop.f32.mrf.mxu2  ;;  %2796 = vmatpush.msrb.mxu0 %v3871_v52 }
 0x269   : > { %v1888_v34 = vadd.f32 %v1838_v57, %v1726_v10  ;;  %2308 = vmatmul.f32.gmra.mxu1 %v4490_v63  ;;  %v3919_v10 = vld [vmem:[%s6021_s2 + $0x7c8] sm:$0xff] }
 0x26a   : > { %v2000_v37 = vpop.f32.mrf.mxu3  ;;  %3282 = vmatpush.msrb.mxu3 %v3919_v10 }
 0x26b   : > { %v2050_v46 = vadd.f32 %v2000_v37, %v1888_v34  ;;  %v1517_v15 = vpop.f32.mrf.mxu0 }
 0x26c   : > { %v1565_v42 = vadd.f32 %v5490_v17, %v1517_v15 }
 0x26d   : > { %3757 = vst [vmem:[%s4631_s11 + $0x1b8] sm:$0xff] %v2050_v46  ;;  %2473 = vmatmul.f32.gmra.mxu2 %v4054_v28 }
 0x26e   : > { %v1679_v38 = vpop.f32.mrf.mxu1  ;;  %2149 = vmatmul.f32.gmra.mxu0 %v4052_v48  ;;  %v3887_v48 = vld [vmem:[%s6021_s2 + $0x6c8] sm:$0xff] }
 0x26f   : > { %v1727_v30 = vadd.f32 %v1679_v38, %v1565_v42  ;;  %2635 = vmatmul.f32.gmra.mxu3 %v4522_v18  ;;  %2958 = vmatpush.msrb.mxu1 %v3887_v48 }
 0x270   : > { %v1841_v57 = vpop.f32.mrf.mxu2 }
 0x271   : > { %v1889_v34 = vadd.f32 %v1841_v57, %v1727_v30  ;;  %2311 = vmatmul.f32.gmra.mxu1 %v4497_v4 }
 0x272   : > { %v2003_v37 = vpop.f32.mrf.mxu3 }
 0x273   : > { %v2051_v46 = vadd.f32 %v2003_v37, %v1889_v34  ;;  %v1520_v15 = vpop.f32.mrf.mxu0 }
 0x274   : > { %v1566_v42 = vadd.f32 %v5490_v17, %v1520_v15  ;;  %v4056_v15 = vld [vmem:[%s4297_s30 + $0xa8] sm:$0xff] }
 0x275   : > { %3758 = vst [vmem:[%s4631_s11 + $0x1c0] sm:$0xff] %v2051_v46  ;;  %2476 = vmatmul.f32.gmra.mxu2 %v4055_v23  ;;  %v3902_v46 = vld [vmem:[%s6021_s2 + $0x740] sm:$0xff] }
 0x276   : > { %v1682_v38 = vpop.f32.mrf.mxu1  ;;  %2152 = vmatmul.f32.gmra.mxu0 %v4053_v16  ;;  %3121 = vmatpush.msrb.mxu2 %v3902_v46  ;;  %v4057_v46 = vld [vmem:[%s4297_s30 + $0xb0] sm:$0xff] }
 0x277   : > { %v1728_v30 = vadd.f32 %v1682_v38, %v1566_v42  ;;  %2638 = vmatmul.f32.gmra.mxu3 %v4540_v25  ;;  %v3870_v38 = vld [vmem:[%s6021_s2 + $0x640] sm:$0xff] }
 0x278   : > { %v1844_v52 = vpop.f32.mrf.mxu2  ;;  %2797 = vmatpush.msrb.mxu0 %v3870_v38 }
 0x279   : > { %v1890_v10 = vadd.f32 %v1844_v52, %v1728_v30  ;;  %2314 = vmatmul.f32.gmra.mxu1 %v4515_v12  ;;  %v3918_v30 = vld [vmem:[%s6021_s2 + $0x7c0] sm:$0xff] }
 0x27a   : > { %v2006_v57 = vpop.f32.mrf.mxu3  ;;  %3283 = vmatpush.msrb.mxu3 %v3918_v30 }
 0x27b   : > { %v2052_v48 = vadd.f32 %v2006_v57, %v1890_v10  ;;  %v1523_v34 = vpop.f32.mrf.mxu0 }
 0x27c   : > { %v1567_v37 = vadd.f32 %v5490_v17, %v1523_v34 }
 0x27d   : > { %3759 = vst [vmem:[%s4631_s11 + $0x1c8] sm:$0xff] %v2052_v48  ;;  %2479 = vmatmul.f32.gmra.mxu2 %v4056_v15 }
 0x27e   : > { %v1685_v16 = vpop.f32.mrf.mxu1  ;;  %2155 = vmatmul.f32.gmra.mxu0 %v4054_v28  ;;  %v3886_v28 = vld [vmem:[%s6021_s2 + $0x6c0] sm:$0xff] }
 0x27f   : > { %v1729_v42 = vadd.f32 %v1685_v16, %v1567_v37  ;;  %2641 = vmatmul.f32.gmra.mxu3 %v4547_v33  ;;  %2959 = vmatpush.msrb.mxu1 %v3886_v28 }
 0x280   : > { %v1847_v52 = vpop.f32.mrf.mxu2 }
 0x281   : > { %v1891_v10 = vadd.f32 %v1847_v52, %v1729_v42  ;;  %2317 = vmatmul.f32.gmra.mxu1 %v4522_v18 }
 0x282   : > { %v2009_v57 = vpop.f32.mrf.mxu3 }
 0x283   : > { %v2053_v48 = vadd.f32 %v2009_v57, %v1891_v10  ;;  %v1526_v34 = vpop.f32.mrf.mxu0 }
 0x284   : > { %v1568_v37 = vadd.f32 %v5490_v17, %v1526_v34  ;;  %v4058_v34 = vld [vmem:[%s4297_s30 + $0xc0] sm:$0xff] }
 0x285   : > { %3760 = vst [vmem:[%s4631_s11 + $0x1d0] sm:$0xff] %v2053_v48  ;;  %2482 = vmatmul.f32.gmra.mxu2 %v4057_v46  ;;  %v3901_v48 = vld [vmem:[%s6021_s2 + $0x738] sm:$0xff] }
 0x286   : > { %v1688_v16 = vpop.f32.mrf.mxu1  ;;  %2158 = vmatmul.f32.gmra.mxu0 %v4055_v23  ;;  %3122 = vmatpush.msrb.mxu2 %v3901_v48  ;;  %v4059_v48 = vld [vmem:[%s4297_s30 + $0xc8] sm:$0xff] }
 0x287   : > { %v1730_v42 = vadd.f32 %v1688_v16, %v1568_v37  ;;  %2644 = vmatmul.f32.gmra.mxu3 %v4565_v41  ;;  %v3869_v16 = vld [vmem:[%s6021_s2 + $0x638] sm:$0xff] }
 0x288   : > { %v1850_v38 = vpop.f32.mrf.mxu2  ;;  %2798 = vmatpush.msrb.mxu0 %v3869_v16 }
 0x289   : > { %v1892_v30 = vadd.f32 %v1850_v38, %v1730_v42  ;;  %2320 = vmatmul.f32.gmra.mxu1 %v4540_v25  ;;  %v3917_v42 = vld [vmem:[%s6021_s2 + $0x7b8] sm:$0xff] }
 0x28a   : > { %v2012_v52 = vpop.f32.mrf.mxu3  ;;  %3284 = vmatpush.msrb.mxu3 %v3917_v42 }
 0x28b   : > { %v2054_v28 = vadd.f32 %v2012_v52, %v1892_v30  ;;  %v1529_v10 = vpop.f32.mrf.mxu0 }
 0x28c   : > { %v1569_v57 = vadd.f32 %v5490_v17, %v1529_v10 }
 0x28d   : > { %3761 = vst [vmem:[%s4631_s11 + $0x1d8] sm:$0xff] %v2054_v28  ;;  %2485 = vmatmul.f32.gmra.mxu2 %v4058_v34 }
 0x28e   : > { %v1691_v23 = vpop.f32.mrf.mxu1  ;;  %2161 = vmatmul.f32.gmra.mxu0 %v4056_v15  ;;  %v3885_v15 = vld [vmem:[%s6021_s2 + $0x6b8] sm:$0xff] }
 0x28f   : > { %v1731_v37 = vadd.f32 %v1691_v23, %v1569_v57  ;;  %2647 = vmatmul.f32.gmra.mxu3 %v4575_v47  ;;  %2960 = vmatpush.msrb.mxu1 %v3885_v15 }
 0x290   : > { %v1853_v38 = vpop.f32.mrf.mxu2 }
 0x291   : > { %v1893_v30 = vadd.f32 %v1853_v38, %v1731_v37  ;;  %2323 = vmatmul.f32.gmra.mxu1 %v4547_v33 }
 0x292   : > { %v2015_v52 = vpop.f32.mrf.mxu3 }
 0x293   : > { %v2055_v28 = vadd.f32 %v2015_v52, %v1893_v30  ;;  %v1532_v10 = vpop.f32.mrf.mxu0 }
 0x294   : > { %v1570_v57 = vadd.f32 %v5490_v17, %v1532_v10  ;;  %v4060_v10 = vld [vmem:[%s4297_s30 + $0xd8] sm:$0xff] }
 0x295   : > { %3762 = vst [vmem:[%s4631_s11 + $0x1e0] sm:$0xff] %v2055_v28  ;;  %2488 = vmatmul.f32.gmra.mxu2 %v4059_v48  ;;  %v3900_v28 = vld [vmem:[%s6021_s2 + $0x730] sm:$0xff] }
 0x296   : > { %v1694_v23 = vpop.f32.mrf.mxu1  ;;  %2164 = vmatmul.f32.gmra.mxu0 %v4057_v46  ;;  %3123 = vmatpush.msrb.mxu2 %v3900_v28  ;;  %v4061_v28 = vld [vmem:[%s4297_s30 + $0xe0] sm:$0xff] }
 0x297   : > { %v1732_v37 = vadd.f32 %v1694_v23, %v1570_v57  ;;  %2650 = vmatmul.f32.gmra.mxu3 %v4593_v55  ;;  %v3868_v23 = vld [vmem:[%s6021_s2 + $0x630] sm:$0xff] }
 0x298   : > { %v1856_v16 = vpop.f32.mrf.mxu2  ;;  %2799 = vmatpush.msrb.mxu0 %v3868_v23 }
 0x299   : > { %v1894_v42 = vadd.f32 %v1856_v16, %v1732_v37  ;;  %2326 = vmatmul.f32.gmra.mxu1 %v4565_v41  ;;  %v3916_v37 = vld [vmem:[%s6021_s2 + $0x7b0] sm:$0xff] }
 0x29a   : > { %v2018_v38 = vpop.f32.mrf.mxu3  ;;  %3285 = vmatpush.msrb.mxu3 %v3916_v37 }
 0x29b   : > { %v2056_v15 = vadd.f32 %v2018_v38, %v1894_v42  ;;  %v1535_v30 = vpop.f32.mrf.mxu0 }
 0x29c   : > { %v1571_v52 = vadd.f32 %v5490_v17, %v1535_v30 }
 0x29d   : > { %3763 = vst [vmem:[%s4631_s11 + $0x1e8] sm:$0xff] %v2056_v15  ;;  %2491 = vmatmul.f32.gmra.mxu2 %v4060_v10 }
 0x29e   : > { %v1697_v46 = vpop.f32.mrf.mxu1  ;;  %2167 = vmatmul.f32.gmra.mxu0 %v4058_v34  ;;  %v3884_v34 = vld [vmem:[%s6021_s2 + $0x6b0] sm:$0xff] }
 0x29f   : > { %v1733_v57 = vadd.f32 %v1697_v46, %v1571_v52  ;;  %2653 = vmatmul.f32.gmra.mxu3 %v4610_v1  ;;  %2961 = vmatpush.msrb.mxu1 %v3884_v34 }
 0x2a0   : > { %v1859_v16 = vpop.f32.mrf.mxu2 }
 0x2a1   : > { %v1895_v42 = vadd.f32 %v1859_v16, %v1733_v57  ;;  %2329 = vmatmul.f32.gmra.mxu1 %v4575_v47 }
 0x2a2   : > { %v2021_v38 = vpop.f32.mrf.mxu3 }
 0x2a3   : > { %v2057_v15 = vadd.f32 %v2021_v38, %v1895_v42  ;;  %v1538_v30 = vpop.f32.mrf.mxu0 }
 0x2a4   : > { %v1572_v52 = vadd.f32 %v5490_v17, %v1538_v30  ;;  %v4062_v30 = vld [vmem:[%s4297_s30 + $0xf0] sm:$0xff] }
 0x2a5   : > { %3764 = vst [vmem:[%s4631_s11 + $0x1f0] sm:$0xff] %v2057_v15  ;;  %2494 = vmatmul.f32.gmra.mxu2 %v4061_v28  ;;  %v3899_v15 = vld [vmem:[%s6021_s2 + $0x728] sm:$0xff] }
 0x2a6   : > { %v1700_v46 = vpop.f32.mrf.mxu1  ;;  %2170 = vmatmul.f32.gmra.mxu0 %v4059_v48  ;;  %3124 = vmatpush.msrb.mxu2 %v3899_v15  ;;  %v4063_v15 = vld [vmem:[%s4297_s30 + $0xf8] sm:$0xff] }
 0x2a7   : > { %v1734_v57 = vadd.f32 %v1700_v46, %v1572_v52  ;;  %2656 = vmatmul.f32.gmra.mxu3 %v4635_v21  ;;  %v3867_v46 = vld [vmem:[%s6021_s2 + $0x628] sm:$0xff] }
 0x2a8   : > { %v1862_v23 = vpop.f32.mrf.mxu2  ;;  %2800 = vmatpush.msrb.mxu0 %v3867_v46 }
 0x2a9   : > { %v1896_v37 = vadd.f32 %v1862_v23, %v1734_v57  ;;  %2332 = vmatmul.f32.gmra.mxu1 %v4593_v55  ;;  %v3915_v57 = vld [vmem:[%s6021_s2 + $0x7a8] sm:$0xff] }
 0x2aa   : > { %v2024_v16 = vpop.f32.mrf.mxu3  ;;  %3286 = vmatpush.msrb.mxu3 %v3915_v57 }
 0x2ab   : > { %v2058_v34 = vadd.f32 %v2024_v16, %v1896_v37  ;;  %v2126_v42 = vpop.f32.mrf.mxu0 }
 0x2ac   : > { %v2222_v38 = vadd.f32 %v5490_v17, %v2126_v42 }
 0x2ad   : > { %3765 = vst [vmem:[%s4631_s11 + $0x1f8] sm:$0xff] %v2058_v34  ;;  %2497 = vmatmul.f32.gmra.mxu2 %v4062_v30 }
 0x2ae   : > { %v2288_v48 = vpop.f32.mrf.mxu1  ;;  %2173 = vmatmul.f32.gmra.mxu0 %v4060_v10  ;;  %v3883_v10 = vld [vmem:[%s6021_s2 + $0x6a8] sm:$0xff] }
 0x2af   : > { %v2384_v52 = vadd.f32 %v2288_v48, %v2222_v38  ;;  %2659 = vmatmul.f32.gmra.mxu3 %v4649_v40  ;;  %2962 = vmatpush.msrb.mxu1 %v3883_v10 }
 0x2b0   : > { %v2450_v23 = vpop.f32.mrf.mxu2 }
 0x2b1   : > { %v2546_v37 = vadd.f32 %v2450_v23, %v2384_v52  ;;  %2335 = vmatmul.f32.gmra.mxu1 %v4610_v1 }
 0x2b2   : > { %v2612_v16 = vpop.f32.mrf.mxu3 }
 0x2b3   : > { %v2708_v34 = vadd.f32 %v2612_v16, %v2546_v37  ;;  %v2129_v42 = vpop.f32.mrf.mxu0 }
 0x2b4   : > { %v2223_v38 = vadd.f32 %v5490_v17, %v2129_v42  ;;  %v4064_v42 = vld [vmem:[%s4297_s30 + $0x108] sm:$0xff] }
 0x2b5   : > { %3830 = vst [vmem:[%s4631_s11 + $0x200] sm:$0xff] %v2708_v34  ;;  %2500 = vmatmul.f32.gmra.mxu2 %v4063_v15  ;;  %v3898_v34 = vld [vmem:[%s6021_s2 + $0x720] sm:$0xff] }
 0x2b6   : > { %v2291_v48 = vpop.f32.mrf.mxu1  ;;  %2176 = vmatmul.f32.gmra.mxu0 %v4061_v28  ;;  %3125 = vmatpush.msrb.mxu2 %v3898_v34  ;;  %v4065_v34 = vld [vmem:[%s4297_s30 + $0x110] sm:$0xff] }
 0x2b7   : > { %v2385_v52 = vadd.f32 %v2291_v48, %v2223_v38  ;;  %2662 = vmatmul.f32.gmra.mxu3 %v4669_v0  ;;  %v3866_v48 = vld [vmem:[%s6021_s2 + $0x620] sm:$0xff] }
 0x2b8   : > { %v2453_v46 = vpop.f32.mrf.mxu2  ;;  %2801 = vmatpush.msrb.mxu0 %v3866_v48 }
 0x2b9   : > { %v2547_v57 = vadd.f32 %v2453_v46, %v2385_v52  ;;  %2338 = vmatmul.f32.gmra.mxu1 %v4635_v21  ;;  %v3914_v52 = vld [vmem:[%s6021_s2 + $0x7a0] sm:$0xff] }
 0x2ba   : > { %v2615_v23 = vpop.f32.mrf.mxu3  ;;  %3287 = vmatpush.msrb.mxu3 %v3914_v52 }
 0x2bb   : > { %v2709_v10 = vadd.f32 %v2615_v23, %v2547_v57  ;;  %v2132_v37 = vpop.f32.mrf.mxu0 }
 0x2bc   : > { %v2224_v16 = vadd.f32 %v5490_v17, %v2132_v37 }
 0x2bd   : > { %3831 = vst [vmem:[%s4631_s11 + $0x208] sm:$0xff] %v2709_v10  ;;  %2503 = vmatmul.f32.gmra.mxu2 %v4064_v42 }
 0x2be   : > { %v2294_v28 = vpop.f32.mrf.mxu1  ;;  %2179 = vmatmul.f32.gmra.mxu0 %v4062_v30  ;;  %v3882_v30 = vld [vmem:[%s6021_s2 + $0x6a0] sm:$0xff] }
 0x2bf   : > { %v2386_v38 = vadd.f32 %v2294_v28, %v2224_v16  ;;  %2665 = vmatmul.f32.gmra.mxu3 %v4683_v19  ;;  %2963 = vmatpush.msrb.mxu1 %v3882_v30 }
 0x2c0   : > { %v2456_v46 = vpop.f32.mrf.mxu2 }
 0x2c1   : > { %v2548_v57 = vadd.f32 %v2456_v46, %v2386_v38  ;;  %2341 = vmatmul.f32.gmra.mxu1 %v4649_v40 }
 0x2c2   : > { %v2618_v23 = vpop.f32.mrf.mxu3 }
 0x2c3   : > { %v2710_v10 = vadd.f32 %v2618_v23, %v2548_v57  ;;  %v2135_v37 = vpop.f32.mrf.mxu0 }
 0x2c4   : > { %v2225_v16 = vadd.f32 %v5490_v17, %v2135_v37  ;;  %v4066_v37 = vld [vmem:[%s4297_s30 + $0x120] sm:$0xff] }
 0x2c5   : > { %3832 = vst [vmem:[%s4631_s11 + $0x210] sm:$0xff] %v2710_v10  ;;  %2506 = vmatmul.f32.gmra.mxu2 %v4065_v34  ;;  %v3897_v10 = vld [vmem:[%s6021_s2 + $0x718] sm:$0xff] }
 0x2c6   : > { %v2297_v28 = vpop.f32.mrf.mxu1  ;;  %2182 = vmatmul.f32.gmra.mxu0 %v4063_v15  ;;  %3126 = vmatpush.msrb.mxu2 %v3897_v10  ;;  %v4067_v10 = vld [vmem:[%s4297_s30 + $0x128] sm:$0xff] }
 0x2c7   : > { %v2387_v38 = vadd.f32 %v2297_v28, %v2225_v16  ;;  %2668 = vmatmul.f32.gmra.mxu3 %v4703_v43  ;;  %v3865_v28 = vld [vmem:[%s6021_s2 + $0x618] sm:$0xff] }
 0x2c8   : > { %v2459_v48 = vpop.f32.mrf.mxu2  ;;  %2802 = vmatpush.msrb.mxu0 %v3865_v28 }
 0x2c9   : > { %v2549_v52 = vadd.f32 %v2459_v48, %v2387_v38  ;;  %2344 = vmatmul.f32.gmra.mxu1 %v4669_v0  ;;  %v3913_v38 = vld [vmem:[%s6021_s2 + $0x798] sm:$0xff] }
 0x2ca   : > { %v2621_v46 = vpop.f32.mrf.mxu3  ;;  %3288 = vmatpush.msrb.mxu3 %v3913_v38 }
 0x2cb   : > { %v2711_v30 = vadd.f32 %v2621_v46, %v2549_v52  ;;  %v2138_v57 = vpop.f32.mrf.mxu0 }
 0x2cc   : > { %v2226_v23 = vadd.f32 %v5490_v17, %v2138_v57 }
 0x2cd   : > { %3833 = vst [vmem:[%s4631_s11 + $0x218] sm:$0xff] %v2711_v30  ;;  %2509 = vmatmul.f32.gmra.mxu2 %v4066_v37 }
 0x2ce   : > { %v2300_v15 = vpop.f32.mrf.mxu1  ;;  %2185 = vmatmul.f32.gmra.mxu0 %v4064_v42  ;;  %v3881_v42 = vld [vmem:[%s6021_s2 + $0x698] sm:$0xff] }
 0x2cf   : > { %v2388_v16 = vadd.f32 %v2300_v15, %v2226_v23  ;;  %2671 = vmatmul.f32.gmra.mxu3 %v4717_v5  ;;  %2964 = vmatpush.msrb.mxu1 %v3881_v42 }
 0x2d0   : > { %v2462_v48 = vpop.f32.mrf.mxu2 }
 0x2d1   : > { %v2550_v52 = vadd.f32 %v2462_v48, %v2388_v16  ;;  %2347 = vmatmul.f32.gmra.mxu1 %v4683_v19 }
 0x2d2   : > { %v2624_v46 = vpop.f32.mrf.mxu3 }
 0x2d3   : > { %v2712_v30 = vadd.f32 %v2624_v46, %v2550_v52  ;;  %v2141_v57 = vpop.f32.mrf.mxu0 }
 0x2d4   : > { %v2227_v23 = vadd.f32 %v5490_v17, %v2141_v57  ;;  %v4068_v57 = vld [vmem:[%s4297_s30 + $0x138] sm:$0xff] }
 0x2d5   : > { %3834 = vst [vmem:[%s4631_s11 + $0x220] sm:$0xff] %v2712_v30  ;;  %2512 = vmatmul.f32.gmra.mxu2 %v4067_v10  ;;  %v3896_v30 = vld [vmem:[%s6021_s2 + $0x710] sm:$0xff] }
 0x2d6   : > { %v2303_v15 = vpop.f32.mrf.mxu1  ;;  %2188 = vmatmul.f32.gmra.mxu0 %v4065_v34  ;;  %3127 = vmatpush.msrb.mxu2 %v3896_v30  ;;  %v4069_v30 = vld [vmem:[%s4297_s30 + $0x140] sm:$0xff] }
 0x2d7   : > { %v2389_v16 = vadd.f32 %v2303_v15, %v2227_v23  ;;  %2674 = vmatmul.f32.gmra.mxu3 %v4737_v27  ;;  %v3864_v15 = vld [vmem:[%s6021_s2 + $0x610] sm:$0xff] }
 0x2d8   : > { %v2465_v28 = vpop.f32.mrf.mxu2  ;;  %2803 = vmatpush.msrb.mxu0 %v3864_v15 }
 0x2d9   : > { %v2551_v38 = vadd.f32 %v2465_v28, %v2389_v16  ;;  %2350 = vmatmul.f32.gmra.mxu1 %v4703_v43  ;;  %v3912_v16 = vld [vmem:[%s6021_s2 + $0x790] sm:$0xff] }
 0x2da   : > { %v2627_v48 = vpop.f32.mrf.mxu3  ;;  %3289 = vmatpush.msrb.mxu3 %v3912_v16 }
 0x2db   : > { %v2713_v42 = vadd.f32 %v2627_v48, %v2551_v38  ;;  %v2144_v52 = vpop.f32.mrf.mxu0 }
 0x2dc   : > { %v2228_v46 = vadd.f32 %v5490_v17, %v2144_v52 }
 0x2dd   : > { %3835 = vst [vmem:[%s4631_s11 + $0x228] sm:$0xff] %v2713_v42  ;;  %2515 = vmatmul.f32.gmra.mxu2 %v4068_v57 }
 0x2de   : > { %v2306_v34 = vpop.f32.mrf.mxu1  ;;  %2191 = vmatmul.f32.gmra.mxu0 %v4066_v37  ;;  %v3880_v37 = vld [vmem:[%s6021_s2 + $0x690] sm:$0xff] }
 0x2df   : > { %v2390_v23 = vadd.f32 %v2306_v34, %v2228_v46  ;;  %2677 = vmatmul.f32.gmra.mxu3 %v4751_v50  ;;  %2965 = vmatpush.msrb.mxu1 %v3880_v37 }
 0x2e0   : > { %v2468_v28 = vpop.f32.mrf.mxu2 }
 0x2e1   : > { %v2552_v38 = vadd.f32 %v2468_v28, %v2390_v23  ;;  %2353 = vmatmul.f32.gmra.mxu1 %v4717_v5 }
 0x2e2   : > { %v2630_v48 = vpop.f32.mrf.mxu3 }
 0x2e3   : > { %v2714_v42 = vadd.f32 %v2630_v48, %v2552_v38  ;;  %v2147_v52 = vpop.f32.mrf.mxu0 }
 0x2e4   : > { %v2229_v46 = vadd.f32 %v5490_v17, %v2147_v52  ;;  %v4070_v52 = vld [vmem:[%s4297_s30 + $0x150] sm:$0xff] }
 0x2e5   : > { %3836 = vst [vmem:[%s4631_s11 + $0x230] sm:$0xff] %v2714_v42  ;;  %2518 = vmatmul.f32.gmra.mxu2 %v4069_v30  ;;  %v3895_v42 = vld [vmem:[%s6021_s2 + $0x708] sm:$0xff] }
 0x2e6   : > { %v2309_v34 = vpop.f32.mrf.mxu1  ;;  %2194 = vmatmul.f32.gmra.mxu0 %v4067_v10  ;;  %3128 = vmatpush.msrb.mxu2 %v3895_v42  ;;  %v4071_v42 = vld [vmem:[%s4297_s30 + $0x158] sm:$0xff] }
 0x2e7   : > { %v2391_v23 = vadd.f32 %v2309_v34, %v2229_v46  ;;  %2680 = vmatmul.f32.gmra.mxu3 %v4771_v11  ;;  %v3863_v34 = vld [vmem:[%s6021_s2 + $0x608] sm:$0xff] }
 0x2e8   : > { %v2471_v15 = vpop.f32.mrf.mxu2  ;;  %2804 = vmatpush.msrb.mxu0 %v3863_v34 }
 0x2e9   : > { %v2553_v16 = vadd.f32 %v2471_v15, %v2391_v23  ;;  %2356 = vmatmul.f32.gmra.mxu1 %v4737_v27  ;;  %v3911_v23 = vld [vmem:[%s6021_s2 + $0x788] sm:$0xff] }
 0x2ea   : > { %v2633_v28 = vpop.f32.mrf.mxu3  ;;  %3290 = vmatpush.msrb.mxu3 %v3911_v23 }
 0x2eb   : > { %v2715_v37 = vadd.f32 %v2633_v28, %v2553_v16  ;;  %v2150_v38 = vpop.f32.mrf.mxu0 }
 0x2ec   : > { %v2230_v48 = vadd.f32 %v5490_v17, %v2150_v38 }
 0x2ed   : > { %3837 = vst [vmem:[%s4631_s11 + $0x238] sm:$0xff] %v2715_v37  ;;  %2521 = vmatmul.f32.gmra.mxu2 %v4070_v52 }
 0x2ee   : > { %v2312_v10 = vpop.f32.mrf.mxu1  ;;  %2197 = vmatmul.f32.gmra.mxu0 %v4068_v57  ;;  %v3879_v57 = vld [vmem:[%s6021_s2 + $0x688] sm:$0xff] }
 0x2ef   : > { %v2392_v46 = vadd.f32 %v2312_v10, %v2230_v48  ;;  %2683 = vmatmul.f32.gmra.mxu3 %v4785_v36  ;;  %2966 = vmatpush.msrb.mxu1 %v3879_v57 }
 0x2f0   : > { %v2474_v15 = vpop.f32.mrf.mxu2 }
 0x2f1   : > { %v2554_v16 = vadd.f32 %v2474_v15, %v2392_v46  ;;  %2359 = vmatmul.f32.gmra.mxu1 %v4751_v50 }
 0x2f2   : > { %v2636_v28 = vpop.f32.mrf.mxu3 }
 0x2f3   : > { %v2716_v37 = vadd.f32 %v2636_v28, %v2554_v16  ;;  %v2153_v38 = vpop.f32.mrf.mxu0 }
 0x2f4   : > { %v2231_v48 = vadd.f32 %v5490_v17, %v2153_v38  ;;  %v4072_v38 = vld [vmem:[%s4297_s30 + $0x168] sm:$0xff] }
 0x2f5   : > { %3838 = vst [vmem:[%s4631_s11 + $0x240] sm:$0xff] %v2716_v37  ;;  %2524 = vmatmul.f32.gmra.mxu2 %v4071_v42  ;;  %v3894_v37 = vld [vmem:[%s6021_s2 + $0x700] sm:$0xff] }
 0x2f6   : > { %v2315_v10 = vpop.f32.mrf.mxu1  ;;  %2200 = vmatmul.f32.gmra.mxu0 %v4069_v30  ;;  %3129 = vmatpush.msrb.mxu2 %v3894_v37  ;;  %v4073_v37 = vld [vmem:[%s4297_s30 + $0x170] sm:$0xff] }
 0x2f7   : > { %v2393_v46 = vadd.f32 %v2315_v10, %v2231_v48  ;;  %2686 = vmatmul.f32.gmra.mxu3 %v4805_v62  ;;  %v3862_v10 = vld [vmem:[%s6021_s2 + $0x600] sm:$0xff] }
 0x2f8   : > { %v2477_v34 = vpop.f32.mrf.mxu2  ;;  %2805 = vmatpush.msrb.mxu0 %v3862_v10 }
 0x2f9   : > { %v2555_v23 = vadd.f32 %v2477_v34, %v2393_v46  ;;  %2362 = vmatmul.f32.gmra.mxu1 %v4771_v11  ;;  %v3910_v46 = vld [vmem:[%s6021_s2 + $0x780] sm:$0xff] }
 0x2fa   : > { %v2639_v15 = vpop.f32.mrf.mxu3  ;;  %3291 = vmatpush.msrb.mxu3 %v3910_v46 }
 0x2fb   : > { %v2717_v57 = vadd.f32 %v2639_v15, %v2555_v23  ;;  %v2156_v16 = vpop.f32.mrf.mxu0 }
 0x2fc   : > { %v2232_v28 = vadd.f32 %v5490_v17, %v2156_v16 }
 0x2fd   : > { %3839 = vst [vmem:[%s4631_s11 + $0x248] sm:$0xff] %v2717_v57  ;;  %2527 = vmatmul.f32.gmra.mxu2 %v4072_v38 }
 0x2fe   : > { %v2318_v30 = vpop.f32.mrf.mxu1  ;;  %2203 = vmatmul.f32.gmra.mxu0 %v4070_v52  ;;  %v3878_v52 = vld [vmem:[%s6021_s2 + $0x680] sm:$0xff] }
 0x2ff   : > { %v2394_v48 = vadd.f32 %v2318_v30, %v2232_v28  ;;  %2689 = vmatmul.f32.gmra.mxu3 %v4822_v31  ;;  %2967 = vmatpush.msrb.mxu1 %v3878_v52 }
 0x300   : > { %v2480_v34 = vpop.f32.mrf.mxu2 }
 0x301   : > { %v2556_v23 = vadd.f32 %v2480_v34, %v2394_v48  ;;  %2365 = vmatmul.f32.gmra.mxu1 %v4785_v36 }
 0x302   : > { %v2642_v15 = vpop.f32.mrf.mxu3 }
 0x303   : > { %v2718_v57 = vadd.f32 %v2642_v15, %v2556_v23  ;;  %v2159_v16 = vpop.f32.mrf.mxu0 }
 0x304   : > { %v2233_v28 = vadd.f32 %v5490_v17, %v2159_v16 }
 0x305   : > { %3840 = vst [vmem:[%s4631_s11 + $0x250] sm:$0xff] %v2718_v57  ;;  %2530 = vmatmul.f32.gmra.mxu2 %v4073_v37  ;;  %v4074_v57 = vld [vmem:[%s4846_s27] sm:$0xff] }
 0x306   : > { %v2321_v30 = vpop.f32.mrf.mxu1  ;;  %2206 = vmatmul.f32.gmra.mxu0 %v4071_v42 }
 0x307   : > { %v2395_v48 = vadd.f32 %v2321_v30, %v2233_v28  ;;  %2692 = vmatmul.f32.gmra.mxu3 %v4850_v53 }
 0x308   : > { %v2483_v10 = vpop.f32.mrf.mxu2 }
 0x309   : > { %v2557_v46 = vadd.f32 %v2483_v10, %v2395_v48  ;;  %2368 = vmatmul.f32.gmra.mxu1 %v4805_v62 }
 0x30a   : > { %v2645_v34 = vpop.f32.mrf.mxu3 }
 0x30b   : > { %v2719_v52 = vadd.f32 %v2645_v34, %v2557_v46  ;;  %v2162_v23 = vpop.f32.mrf.mxu0 }
 0x30c   : > { %v2234_v15 = vadd.f32 %v5490_v17, %v2162_v23  ;;  %v5748_v23 = vld [vmem:[%s4846_s27 + $0x18] sm:$0xff] }
 0x30d   : > { %3841 = vst [vmem:[%s4631_s11 + $0x258] sm:$0xff] %v2719_v52  ;;  %2533 = vmatmul.f32.gmra.mxu2 %v4074_v57  ;;  %v4075_v52 = vld [vmem:[%s4846_s27 + $0x8] sm:$0xff] }
 0x30e   : > { %v2324_v42 = vpop.f32.mrf.mxu1  ;;  %2209 = vmatmul.f32.gmra.mxu0 %v4072_v38  ;;  %6079 = vst [vmem:[#allocation20_spill] sm:$0xff] %v5748_v23 }
 0x30f   : > { %v2396_v16 = vadd.f32 %v2324_v42, %v2234_v15  ;;  %2695 = vmatmul.f32.gmra.mxu3 %v4861_v20 }
 0x310   : > { %v2486_v28 = vpop.f32.mrf.mxu2 }
 0x311   : > { %v2558_v30 = vadd.f32 %v2486_v28, %v2396_v16  ;;  %2371 = vmatmul.f32.gmra.mxu1 %v4822_v31  ;;  %v560_v16 = vrot.slane %v5748_v23, 1  ;;  %v561_v28 = vrot.slane %v5751_v14, 1 }
 0x312   : > { %v2648_v48 = vpop.f32.mrf.mxu3 }
 0x313   : > { %v2720_v10 = vadd.f32 %v2648_v48, %v2558_v30  ;;  %v2165_v46 = vpop.f32.mrf.mxu0  ;;  %v5759_v31 = vsel %vm474_vm0, %v560_v16, %v561_v28 }
 0x314   : > { %v2235_v34 = vadd.f32 %v5490_v17, %v2165_v46 }
 0x315   : > { %3842 = vst [vmem:[%s4631_s11 + $0x260] sm:$0xff] %v2720_v10  ;;  %2536 = vmatmul.f32.gmra.mxu2 %v4075_v52 }
 0x316   : > { %v2327_v38 = vpop.f32.mrf.mxu1  ;;  %2212 = vmatmul.f32.gmra.mxu0 %v4073_v37  ;;  %v5764_v37 = vld [vmem:[%s4846_s27 + $0x28] sm:$0x3] }
 0x317   : > { %v2397_v15 = vadd.f32 %v2327_v38, %v2235_v34  ;;  %2698 = vmatmul.f32.gmra.mxu3 %v4882_v3 }
 0x318   : > { %v2489_v42 = vpop.f32.mrf.mxu2 }
 0x319   : > { %v2559_v30 = vadd.f32 %v2489_v42, %v2397_v15  ;;  %2374 = vmatmul.f32.gmra.mxu1 %v4850_v53  ;;  %v563_v42 = vrot.slane %v5764_v37, 1 }
 0x31a   : > { %v2651_v48 = vpop.f32.mrf.mxu3 }
 0x31b   : > { %v2721_v10 = vadd.f32 %v2651_v48, %v2559_v30  ;;  %v2168_v46 = vpop.f32.mrf.mxu0 }
 0x31c   : > { %v2236_v54 = vadd.f32 %v5490_v17, %v2168_v46 }
 0x31d   : > { %3843 = vst [vmem:[%s4631_s11 + $0x268] sm:$0xff] %v2721_v10  ;;  %2539 = vmatmul.f32.gmra.mxu2 %v5748_v23  ;;  %v5771_v23 = vsel %vm474_vm0, %v561_v28, %v563_v42 }
 0x31e   : > { %v2330_v34 = vpop.f32.mrf.mxu1  ;;  %2215 = vmatmul.f32.gmra.mxu0 %v4074_v57 }
 0x31f   : > { %v2398_v38 = vadd.f32 %v2330_v34, %v2236_v54  ;;  %2701 = vmatmul.f32.gmra.mxu3 %v5759_v31 }
 0x320   : > { %v2492_v15 = vpop.f32.mrf.mxu2 }
 0x321   : > { %v2560_v30 = vadd.f32 %v2492_v15, %v2398_v38  ;;  %2377 = vmatmul.f32.gmra.mxu1 %v4861_v20 }
 0x322   : > { %v2654_v48 = vpop.f32.mrf.mxu3 }
 0x323   : > { %v2722_v16 = vadd.f32 %v2654_v48, %v2560_v30  ;;  %v2171_v46 = vpop.f32.mrf.mxu0 }
 0x324   : > { %v2237_v10 = vadd.f32 %v5490_v17, %v2171_v46 }
 0x325   : > { %3844 = vst [vmem:[%s4631_s11 + $0x270] sm:$0xff] %v2722_v16  ;;  %2542 = vmatmul.f32.gmra.mxu2 %v5751_v14 }
 0x326   : > { %v2333_v54 = vpop.f32.mrf.mxu1  ;;  %2218 = vmatmul.f32.gmra.mxu0 %v4075_v52 }
 0x327   : > { %v2399_v57 = vadd.f32 %v2333_v54, %v2237_v10  ;;  %2704 = vmatmul.f32.gmra.mxu3 %v5771_v23 }
 0x328   : > { %v2495_v34 = vpop.f32.mrf.mxu2 }
 0x329   : > { %v2561_v38 = vadd.f32 %v2495_v34, %v2399_v57  ;;  %2380 = vmatmul.f32.gmra.mxu1 %v4882_v3 }
 0x32a   : > { %v2657_v15 = vpop.f32.mrf.mxu3 }
 0x32b   : > { %v2723_v30 = vadd.f32 %v2657_v15, %v2561_v38  ;;  %v2174_v48 = vpop.f32.mrf.mxu0 }
 0x32c   : > { %v2238_v46 = vadd.f32 %v5490_v17, %v2174_v48 }
 0x32d   : > { %3845 = vst [vmem:[%s4631_s11 + $0x278] sm:$0xff] %v2723_v30  ;;  %3130 = vmatmul.f32.vlgmr.msrb.gmra.mxu2 %v4420_v32 }
 0x32e   : > { %v2336_v28 = vpop.f32.mrf.mxu1  ;;  %2806 = vmatmul.f32.vlgmr.msrb.gmra.mxu0 %v4361_v8 }
 0x32f   : > { %v2400_v52 = vadd.f32 %v2336_v28, %v2238_v46  ;;  %3292 = vmatmul.f32.vlgmr.msrb.gmra.mxu3 %v4928_v29 }
 0x330   : > { %v2498_v42 = vpop.f32.mrf.mxu2 }
 0x331   : > { %v2562_v16 = vadd.f32 %v2498_v42, %v2400_v52  ;;  %2968 = vmatmul.f32.vlgmr.msrb.gmra.mxu1 %v4894_v24 }
 0x332   : > { %v2660_v10 = vpop.f32.mrf.mxu3 }
 0x333   : > { %v2724_v54 = vadd.f32 %v2660_v10, %v2562_v16  ;;  %v2177_v57 = vpop.f32.mrf.mxu0 }
 0x334   : > { %v2239_v34 = vadd.f32 %v5490_v17, %v2177_v57 }
 0x335   : > { %3846 = vst [vmem:[%s4631_s11 + $0x280] sm:$0xff] %v2724_v54  ;;  %3133 = vmatmul.f32.gmra.mxu2 %v4439_v39 }
 0x336   : > { %v2339_v38 = vpop.f32.mrf.mxu1  ;;  %2809 = vmatmul.f32.gmra.mxu0 %v4408_v26 }
 0x337   : > { %v2401_v8 = vadd.f32 %v2339_v38, %v2239_v34  ;;  %3295 = vmatmul.f32.gmra.mxu3 %v4950_v60 }
 0x338   : > { %v2501_v15 = vpop.f32.mrf.mxu2 }
 0x339   : > { %v2563_v30 = vadd.f32 %v2501_v15, %v2401_v8  ;;  %2971 = vmatmul.f32.gmra.mxu1 %v4917_v61 }
 0x33a   : > { %v2663_v24 = vpop.f32.mrf.mxu3 }
 0x33b   : > { %v2725_v48 = vadd.f32 %v2663_v24, %v2563_v30  ;;  %v2180_v46 = vpop.f32.mrf.mxu0 }
 0x33c   : > { %v2240_v28 = vadd.f32 %v5490_v17, %v2180_v46 }
 0x33d   : > { %3847 = vst [vmem:[%s4631_s11 + $0x288] sm:$0xff] %v2725_v48  ;;  %3136 = vmatmul.f32.gmra.mxu2 %v4447_v44 }
 0x33e   : > { %v2342_v52 = vpop.f32.mrf.mxu1  ;;  %2812 = vmatmul.f32.gmra.mxu0 %v4420_v32 }
 0x33f   : > { %v2402_v26 = vadd.f32 %v2342_v52, %v2240_v28  ;;  %3298 = vmatmul.f32.gmra.mxu3 %v4961_v22 }
 0x340   : > { %v2504_v42 = vpop.f32.mrf.mxu2 }
 0x341   : > { %v2564_v16 = vadd.f32 %v2504_v42, %v2402_v26  ;;  %2974 = vmatmul.f32.gmra.mxu1 %v4928_v29 }
 0x342   : > { %v2666_v61 = vpop.f32.mrf.mxu3 }
 0x343   : > { %v2726_v10 = vadd.f32 %v2666_v61, %v2564_v16  ;;  %v2183_v54 = vpop.f32.mrf.mxu0 }
 0x344   : > { %v2241_v57 = vadd.f32 %v5490_v17, %v2183_v54 }
 0x345   : > { %3848 = vst [vmem:[%s4631_s11 + $0x290] sm:$0xff] %v2726_v10  ;;  %3139 = vmatmul.f32.gmra.mxu2 %v4465_v51 }
 0x346   : > { %v2345_v34 = vpop.f32.mrf.mxu1  ;;  %2815 = vmatmul.f32.gmra.mxu0 %v4439_v39 }
 0x347   : > { %v2403_v32 = vadd.f32 %v2345_v34, %v2241_v57  ;;  %3301 = vmatmul.f32.gmra.mxu3 %v4983_v6 }
 0x348   : > { %v2507_v38 = vpop.f32.mrf.mxu2 }
 0x349   : > { %v2565_v8 = vadd.f32 %v2507_v38, %v2403_v32  ;;  %2977 = vmatmul.f32.gmra.mxu1 %v4950_v60 }
 0x34a   : > { %v2669_v29 = vpop.f32.mrf.mxu3 }
 0x34b   : > { %v2727_v15 = vadd.f32 %v2669_v29, %v2565_v8  ;;  %v2186_v30 = vpop.f32.mrf.mxu0 }
 0x34c   : > { %v2242_v24 = vadd.f32 %v5490_v17, %v2186_v30  ;;  %v5810_v17 = vld [vmem:[%s6022_s3] ss:$0 sm:$0xff] }
 0x34d   : > { %3849 = vst [vmem:[%s4631_s11 + $0x298] sm:$0xff] %v2727_v15  ;;  %3142 = vmatmul.f32.gmra.mxu2 %v4472_v56 }
 0x34e   : > { %v2348_v48 = vpop.f32.mrf.mxu1  ;;  %2818 = vmatmul.f32.gmra.mxu0 %v4447_v44 }
 0x34f   : > { %v2404_v39 = vadd.f32 %v2348_v48, %v2242_v24  ;;  %3304 = vmatmul.f32.gmra.mxu3 %v4994_v35 }
 0x350   : > { %v2510_v46 = vpop.f32.mrf.mxu2 }
 0x351   : > { %v2566_v28 = vadd.f32 %v2510_v46, %v2404_v39  ;;  %2980 = vmatmul.f32.gmra.mxu1 %v4961_v22 }
 0x352   : > { %v2672_v60 = vpop.f32.mrf.mxu3 }
 0x353   : > { %v2728_v52 = vadd.f32 %v2672_v60, %v2566_v28  ;;  %v2189_v26 = vpop.f32.mrf.mxu0 }
 0x354   : > { %v2243_v42 = vadd.f32 %v5810_v17, %v2189_v26 }
 0x355   : > { %3850 = vst [vmem:[%s4631_s11 + $0x2a0] sm:$0xff] %v2728_v52  ;;  %3145 = vmatmul.f32.gmra.mxu2 %v4490_v63 }
 0x356   : > { %v2351_v44 = vpop.f32.mrf.mxu1  ;;  %2821 = vmatmul.f32.gmra.mxu0 %v4465_v51 }
 0x357   : > { %v2405_v16 = vadd.f32 %v2351_v44, %v2243_v42  ;;  %3307 = vmatmul.f32.gmra.mxu3 %v5016_v2 }
 0x358   : > { %v2513_v22 = vpop.f32.mrf.mxu2 }
 0x359   : > { %v2567_v61 = vadd.f32 %v2513_v22, %v2405_v16  ;;  %2983 = vmatmul.f32.gmra.mxu1 %v4983_v6 }
 0x35a   : > { %v2675_v10 = vpop.f32.mrf.mxu3 }
 0x35b   : > { %v2729_v54 = vadd.f32 %v2675_v10, %v2567_v61  ;;  %v2192_v57 = vpop.f32.mrf.mxu0 }
 0x35c   : > { %v2244_v34 = vadd.f32 %v5810_v17, %v2192_v57 }
 0x35d   : > { %3851 = vst [vmem:[%s4631_s11 + $0x2a8] sm:$0xff] %v2729_v54  ;;  %3148 = vmatmul.f32.gmra.mxu2 %v4497_v4 }
 0x35e   : > { %v2354_v32 = vpop.f32.mrf.mxu1  ;;  %2824 = vmatmul.f32.gmra.mxu0 %v4472_v56 }
 0x35f   : > { %v2406_v51 = vadd.f32 %v2354_v32, %v2244_v34  ;;  %3310 = vmatmul.f32.gmra.mxu3 %v5027_v45 }
 0x360   : > { %v2516_v38 = vpop.f32.mrf.mxu2 }
 0x361   : > { %v2568_v8 = vadd.f32 %v2516_v38, %v2406_v51  ;;  %2986 = vmatmul.f32.gmra.mxu1 %v4994_v35 }
 0x362   : > { %v2678_v6 = vpop.f32.mrf.mxu3 }
 0x363   : > { %v2730_v29 = vadd.f32 %v2678_v6, %v2568_v8  ;;  %v2195_v15 = vpop.f32.mrf.mxu0 }
 0x364   : > { %v2245_v30 = vadd.f32 %v5810_v17, %v2195_v15 }
 0x365   : > { %3852 = vst [vmem:[%s4631_s11 + $0x2b0] sm:$0xff] %v2730_v29  ;;  %3151 = vmatmul.f32.gmra.mxu2 %v4515_v12 }
 0x366   : > { %v2357_v24 = vpop.f32.mrf.mxu1  ;;  %2827 = vmatmul.f32.gmra.mxu0 %v4490_v63 }
 0x367   : > { %v2407_v56 = vadd.f32 %v2357_v24, %v2245_v30  ;;  %3313 = vmatmul.f32.gmra.mxu3 %v5054_v58 }
 0x368   : > { %v2519_v48 = vpop.f32.mrf.mxu2 }
 0x369   : > { %v2569_v39 = vadd.f32 %v2519_v48, %v2407_v56  ;;  %2989 = vmatmul.f32.gmra.mxu1 %v5016_v2 }
 0x36a   : > { %v2681_v35 = vpop.f32.mrf.mxu3 }
 0x36b   : > { %v2731_v46 = vadd.f32 %v2681_v35, %v2569_v39  ;;  %v2198_v28 = vpop.f32.mrf.mxu0 }
 0x36c   : > { %v2246_v60 = vadd.f32 %v5810_v17, %v2198_v28  ;;  %v6080_v28 = vld [vmem:[#allocation3_spill] sm:$0xff] }
 0x36d   : > { %3853 = vst [vmem:[%s4631_s11 + $0x2b8] sm:$0xff] %v2731_v46  ;;  %3154 = vmatmul.f32.gmra.mxu2 %v4522_v18 }
 0x36e   : > { %v2360_v52 = vpop.f32.mrf.mxu1  ;;  %2830 = vmatmul.f32.gmra.mxu0 %v4497_v4 }
 0x36f   : > { %v2408_v63 = vadd.f32 %v2360_v52, %v2246_v60  ;;  %3316 = vmatmul.f32.gmra.mxu3 %v5065_v49 }
 0x370   : > { %v2522_v26 = vpop.f32.mrf.mxu2 }
 0x371   : > { %v2570_v42 = vadd.f32 %v2522_v26, %v2408_v63  ;;  %2992 = vmatmul.f32.gmra.mxu1 %v5027_v45 }
 0x372   : > { %v2684_v2 = vpop.f32.mrf.mxu3 }
 0x373   : > { %v2732_v44 = vadd.f32 %v2684_v2, %v2570_v42  ;;  %v2201_v16 = vpop.f32.mrf.mxu0 }
 0x374   : > { %v2247_v22 = vadd.f32 %v5810_v17, %v2201_v16 }
 0x375   : > { %3854 = vst [vmem:[%s4631_s11 + $0x2c0] sm:$0xff] %v2732_v44  ;;  %3157 = vmatmul.f32.gmra.mxu2 %v4540_v25  ;;  %v6081_v44 = vld [vmem:[#allocation4_spill] sm:$0xff] }
 0x376   : > { %v2363_v61 = vpop.f32.mrf.mxu1  ;;  %2833 = vmatmul.f32.gmra.mxu0 %v4515_v12 }
 0x377   : > { %v2409_v4 = vadd.f32 %v2363_v61, %v2247_v22  ;;  %3319 = vmatmul.f32.gmra.mxu3 %v5087_v13 }
 0x378   : > { %v2525_v10 = vpop.f32.mrf.mxu2 }
 0x379   : > { %v2571_v54 = vadd.f32 %v2525_v10, %v2409_v4  ;;  %2995 = vmatmul.f32.gmra.mxu1 %v5054_v58 }
 0x37a   : > { %v2687_v45 = vpop.f32.mrf.mxu3 }
 0x37b   : > { %v2733_v57 = vadd.f32 %v2687_v45, %v2571_v54  ;;  %v2204_v34 = vpop.f32.mrf.mxu0  ;;  %v6082_v45 = vld [vmem:[#allocation5_spill] sm:$0xff] }
 0x37c   : > { %v2248_v32 = vadd.f32 %v5810_v17, %v2204_v34 }
 0x37d   : > { %3855 = vst [vmem:[%s4631_s11 + $0x2c8] sm:$0xff] %v2733_v57  ;;  %3160 = vmatmul.f32.gmra.mxu2 %v4547_v33 }
 0x37e   : > { %v2366_v51 = vpop.f32.mrf.mxu1  ;;  %2836 = vmatmul.f32.gmra.mxu0 %v4522_v18 }
 0x37f   : > { %v2410_v12 = vadd.f32 %v2366_v51, %v2248_v32  ;;  %3322 = vmatmul.f32.gmra.mxu3 %v5098_v7 }
 0x380   : > { %v2528_v38 = vpop.f32.mrf.mxu2 }
 0x381   : > { %v2572_v8 = vadd.f32 %v2528_v38, %v2410_v12  ;;  %2998 = vmatmul.f32.gmra.mxu1 %v5065_v49 }
 0x382   : > { %v2690_v58 = vpop.f32.mrf.mxu3 }
 0x383   : > { %v2734_v6 = vadd.f32 %v2690_v58, %v2572_v8  ;;  %v2207_v29 = vpop.f32.mrf.mxu0  ;;  %v6083_v8 = vld [vmem:[#allocation6_spill] sm:$0xff] }
 0x384   : > { %v2249_v15 = vadd.f32 %v5810_v17, %v2207_v29 }
 0x385   : > { %3856 = vst [vmem:[%s4631_s11 + $0x2d0] sm:$0xff] %v2734_v6  ;;  %3163 = vmatmul.f32.gmra.mxu2 %v4565_v41 }
 0x386   : > { %v2369_v30 = vpop.f32.mrf.mxu1  ;;  %2839 = vmatmul.f32.gmra.mxu0 %v4540_v25 }
 0x387   : > { %v2411_v18 = vadd.f32 %v2369_v30, %v2249_v15  ;;  %3325 = vmatmul.f32.gmra.mxu3 %v5120_v9 }
 0x388   : > { %v2531_v24 = vpop.f32.mrf.mxu2 }
 0x389   : > { %v2573_v56 = vadd.f32 %v2531_v24, %v2411_v18  ;;  %3001 = vmatmul.f32.gmra.mxu1 %v5087_v13 }
 0x38a   : > { %v2693_v49 = vpop.f32.mrf.mxu3 }
 0x38b   : > { %v2735_v48 = vadd.f32 %v2693_v49, %v2573_v56  ;;  %v2210_v39 = vpop.f32.mrf.mxu0  ;;  %v6084_v56 = vld [vmem:[#allocation7_spill] sm:$0xff] }
 0x38c   : > { %v2250_v35 = vadd.f32 %v5810_v17, %v2210_v39 }
 0x38d   : > { %3857 = vst [vmem:[%s4631_s11 + $0x2d8] sm:$0xff] %v2735_v48  ;;  %3166 = vmatmul.f32.gmra.mxu2 %v4575_v47 }
 0x38e   : > { %v2372_v46 = vpop.f32.mrf.mxu1  ;;  %2842 = vmatmul.f32.gmra.mxu0 %v4547_v33 }
 0x38f   : > { %v2412_v25 = vadd.f32 %v2372_v46, %v2250_v35  ;;  %3328 = vmatmul.f32.gmra.mxu3 %v6080_v28 }
 0x390   : > { %v2534_v60 = vpop.f32.mrf.mxu2 }
 0x391   : > { %v2574_v52 = vadd.f32 %v2534_v60, %v2412_v25  ;;  %3004 = vmatmul.f32.gmra.mxu1 %v5098_v7  ;;  %v6085_v60 = vld [vmem:[#allocation8_spill] sm:$0xff] }
 0x392   : > { %v2696_v13 = vpop.f32.mrf.mxu3 }
 0x393   : > { %v2736_v63 = vadd.f32 %v2696_v13, %v2574_v52  ;;  %v2213_v26 = vpop.f32.mrf.mxu0 }
 0x394   : > { %v2251_v42 = vadd.f32 %v5810_v17, %v2213_v26 }
 0x395   : > { %3858 = vst [vmem:[%s4631_s11 + $0x2e0] sm:$0xff] %v2736_v63  ;;  %3169 = vmatmul.f32.gmra.mxu2 %v4593_v55 }
 0x396   : > { %v2375_v2 = vpop.f32.mrf.mxu1  ;;  %2845 = vmatmul.f32.gmra.mxu0 %v4565_v41 }
 0x397   : > { %v2413_v33 = vadd.f32 %v2375_v2, %v2251_v42  ;;  %3331 = vmatmul.f32.gmra.mxu3 %v6081_v44 }
 0x398   : > { %v2537_v16 = vpop.f32.mrf.mxu2 }
 0x399   : > { %v2575_v22 = vadd.f32 %v2537_v16, %v2413_v33  ;;  %3007 = vmatmul.f32.gmra.mxu1 %v5120_v9 }
 0x39a   : > { %v2699_v7 = vpop.f32.mrf.mxu3 }
 0x39b   : > { %v2737_v61 = vadd.f32 %v2699_v7, %v2575_v22  ;;  %v2216_v4 = vpop.f32.mrf.mxu0 }
 0x39c   : > { %v2252_v10 = vadd.f32 %v5810_v17, %v2216_v4 }
 0x39d   : > { %3859 = vst [vmem:[%s4631_s11 + $0x2e8] sm:$0xff] %v2737_v61  ;;  %3172 = vmatmul.f32.gmra.mxu2 %v4610_v1 }
 0x39e   : > { %v2378_v54 = vpop.f32.mrf.mxu1  ;;  %2848 = vmatmul.f32.gmra.mxu0 %v4575_v47 }
 0x39f   : > { %v2414_v41 = vadd.f32 %v2378_v54, %v2252_v10  ;;  %3334 = vmatmul.f32.gmra.mxu3 %v6082_v45 }
 0x3a0   : > { %v2540_v57 = vpop.f32.mrf.mxu2 }
 0x3a1   : > { %v2576_v34 = vadd.f32 %v2540_v57, %v2414_v41  ;;  %3010 = vmatmul.f32.gmra.mxu1 %v6080_v28  ;;  %v6087_v41 = vld [vmem:[#allocation10_spill] sm:$0xff] }
 0x3a2   : > { %v2702_v9 = vpop.f32.mrf.mxu3 }
 0x3a3   : > { %v2738_v32 = vadd.f32 %v2702_v9, %v2576_v34  ;;  %v2219_v51 = vpop.f32.mrf.mxu0 }
 0x3a4   : > { %v2253_v12 = vadd.f32 %v5810_v17, %v2219_v51 }
 0x3a5   : > { %3860 = vst [vmem:[%s4631_s11 + $0x2f0] sm:$0xff] %v2738_v32  ;;  %3175 = vmatmul.f32.gmra.mxu2 %v4635_v21 }
 0x3a6   : > { %v2381_v38 = vpop.f32.mrf.mxu1  ;;  %2851 = vmatmul.f32.gmra.mxu0 %v4593_v55 }
 0x3a7   : > { %v2415_v47 = vadd.f32 %v2381_v38, %v2253_v12  ;;  %3337 = vmatmul.f32.gmra.mxu3 %v6083_v8  ;;  %v6088_v38 = vld [vmem:[#allocation11_spill] sm:$0xff] }
 0x3a8   : > { %v2543_v58 = vpop.f32.mrf.mxu2 }
 0x3a9   : > { %v2577_v6 = vadd.f32 %v2543_v58, %v2415_v47  ;;  %3013 = vmatmul.f32.gmra.mxu1 %v6081_v44  ;;  %v6086_v44 = vld [vmem:[#allocation9_spill] sm:$0xff] }
 0x3aa   : > { %v2705_v29 = vpop.f32.mrf.mxu3 }
 0x3ab   : > { %v2739_v15 = vadd.f32 %v2705_v29, %v2577_v6  ;;  %v2807_v30 = vpop.f32.mrf.mxu0 }
 0x3ac   : > { %v2903_v18 = vadd.f32 %v5810_v17, %v2807_v30 }
 0x3ad   : > { %3861 = vst [vmem:[%s4631_s11 + $0x2f8] sm:$0xff] %v2739_v15  ;;  %3178 = vmatmul.f32.gmra.mxu2 %v4649_v40 }
 0x3ae   : > { %v2969_v24 = vpop.f32.mrf.mxu1  ;;  %2854 = vmatmul.f32.gmra.mxu0 %v4610_v1 }
 0x3af   : > { %v3065_v55 = vadd.f32 %v2969_v24, %v2903_v18  ;;  %3340 = vmatmul.f32.gmra.mxu3 %v6084_v56  ;;  %v6089_v18 = vld [vmem:[#allocation12_spill] sm:$0xff] }
 0x3b0   : > { %v3131_v49 = vpop.f32.mrf.mxu2 }
 0x3b1   : > { %v3227_v48 = vadd.f32 %v3131_v49, %v3065_v55  ;;  %3016 = vmatmul.f32.gmra.mxu1 %v6082_v45 }
 0x3b2   : > { %v3293_v39 = vpop.f32.mrf.mxu3 }
 0x3b3   : > { %v3389_v35 = vadd.f32 %v3293_v39, %v3227_v48  ;;  %v2810_v46 = vpop.f32.mrf.mxu0 }
 0x3b4   : > { %v2904_v25 = vadd.f32 %v5810_v17, %v2810_v46  ;;  %v6090_v46 = vld [vmem:[#allocation13_spill] sm:$0xff] }
 0x3b5   : > { %3926 = vst [vmem:[%s4631_s11 + $0x300] sm:$0xff] %v3389_v35  ;;  %3181 = vmatmul.f32.gmra.mxu2 %v4669_v0 }
 0x3b6   : > { %v2972_v28 = vpop.f32.mrf.mxu1  ;;  %2857 = vmatmul.f32.gmra.mxu0 %v4635_v21 }
 0x3b7   : > { %v3066_v1 = vadd.f32 %v2972_v28, %v2904_v25  ;;  %3343 = vmatmul.f32.gmra.mxu3 %v6085_v60 }
 0x3b8   : > { %v3134_v52 = vpop.f32.mrf.mxu2 }
 0x3b9   : > { %v3228_v13 = vadd.f32 %v3134_v52, %v3066_v1  ;;  %3019 = vmatmul.f32.gmra.mxu1 %v6083_v8 }
 0x3ba   : > { %v3296_v63 = vpop.f32.mrf.mxu3 }
 0x3bb   : > { %v3390_v26 = vadd.f32 %v3296_v63, %v3228_v13  ;;  %v2813_v42 = vpop.f32.mrf.mxu0 }
 0x3bc   : > { %v2905_v2 = vadd.f32 %v5810_v17, %v2813_v42 }
 0x3bd   : > { %3927 = vst [vmem:[%s4631_s11 + $0x308] sm:$0xff] %v3390_v26  ;;  %3184 = vmatmul.f32.gmra.mxu2 %v4683_v19  ;;  %v6091_v26 = vld [vmem:[#allocation14_spill] sm:$0xff] }
 0x3be   : > { %v2975_v33 = vpop.f32.mrf.mxu1  ;;  %2860 = vmatmul.f32.gmra.mxu0 %v4649_v40 }
 0x3bf   : > { %v3067_v21 = vadd.f32 %v2975_v33, %v2905_v2  ;;  %3346 = vmatmul.f32.gmra.mxu3 %v6086_v44 }
 0x3c0   : > { %v3137_v16 = vpop.f32.mrf.mxu2 }
 0x3c1   : > { %v3229_v22 = vadd.f32 %v3137_v16, %v3067_v21  ;;  %3022 = vmatmul.f32.gmra.mxu1 %v6084_v56 }
 0x3c2   : > { %v3299_v7 = vpop.f32.mrf.mxu3 }
 0x3c3   : > { %v3391_v61 = vadd.f32 %v3299_v7, %v3229_v22  ;;  %v2816_v4 = vpop.f32.mrf.mxu0  ;;  %v6092_v7 = vld [vmem:[#allocation15_spill] sm:$0xff] }
 0x3c4   : > { %v2906_v10 = vadd.f32 %v5810_v17, %v2816_v4 }
 0x3c5   : > { %3928 = vst [vmem:[%s4631_s11 + $0x310] sm:$0xff] %v3391_v61  ;;  %3187 = vmatmul.f32.gmra.mxu2 %v4703_v43 }
 0x3c6   : > { %v2978_v54 = vpop.f32.mrf.mxu1  ;;  %2863 = vmatmul.f32.gmra.mxu0 %v4669_v0 }
 0x3c7   : > { %v3068_v40 = vadd.f32 %v2978_v54, %v2906_v10  ;;  %3349 = vmatmul.f32.gmra.mxu3 %v6087_v41 }
 0x3c8   : > { %v3140_v45 = vpop.f32.mrf.mxu2 }
 0x3c9   : > { %v3230_v57 = vadd.f32 %v3140_v45, %v3068_v40  ;;  %3025 = vmatmul.f32.gmra.mxu1 %v6085_v60 }
 0x3ca   : > { %v3302_v34 = vpop.f32.mrf.mxu3 }
 0x3cb   : > { %v3392_v9 = vadd.f32 %v3302_v34, %v3230_v57  ;;  %v2819_v32 = vpop.f32.mrf.mxu0 }
 0x3cc   : > { %v2907_v51 = vadd.f32 %v5810_v17, %v2819_v32 }
 0x3cd   : > { %3929 = vst [vmem:[%s4631_s11 + $0x318] sm:$0xff] %v3392_v9  ;;  %3190 = vmatmul.f32.gmra.mxu2 %v4717_v5 }
 0x3ce   : > { %v2981_v12 = vpop.f32.mrf.mxu1  ;;  %2866 = vmatmul.f32.gmra.mxu0 %v4683_v19 }
 0x3cf   : > { %v3069_v0 = vadd.f32 %v2981_v12, %v2907_v51  ;;  %3352 = vmatmul.f32.gmra.mxu3 %v6088_v38 }
 0x3d0   : > { %v3143_v47 = vpop.f32.mrf.mxu2 }
 0x3d1   : > { %v3231_v8 = vadd.f32 %v3143_v47, %v3069_v0  ;;  %3028 = vmatmul.f32.gmra.mxu1 %v6086_v44  ;;  %v6093_v0 = vld [vmem:[#allocation2_spill] sm:$0xff]  ;;  %v6094_v47 = vld [vmem:[#allocation16_spill] sm:$0xff] }
 0x3d2   : > { %v3305_v58 = vpop.f32.mrf.mxu3 }
 0x3d3   : > { %v3393_v6 = vadd.f32 %v3305_v58, %v3231_v8  ;;  %v2822_v29 = vpop.f32.mrf.mxu0 }
 0x3d4   : > { %v2908_v15 = vadd.f32 %v5810_v17, %v2822_v29 }
 0x3d5   : > { %3930 = vst [vmem:[%s4631_s11 + $0x320] sm:$0xff] %v3393_v6  ;;  %3193 = vmatmul.f32.gmra.mxu2 %v4737_v27 }
 0x3d6   : > { %v2984_v30 = vpop.f32.mrf.mxu1  ;;  %2869 = vmatmul.f32.gmra.mxu0 %v4703_v43 }
 0x3d7   : > { %v3070_v19 = vadd.f32 %v2984_v30, %v2908_v15  ;;  %3355 = vmatmul.f32.gmra.mxu3 %v6089_v18 }
 0x3d8   : > { %v3146_v24 = vpop.f32.mrf.mxu2 }
 0x3d9   : > { %v3232_v55 = vadd.f32 %v3146_v24, %v3070_v19  ;;  %3031 = vmatmul.f32.gmra.mxu1 %v6087_v41 }
 0x3da   : > { %v3308_v56 = vpop.f32.mrf.mxu3 }
 0x3db   : > { %v3394_v49 = vadd.f32 %v3308_v56, %v3232_v55  ;;  %v2825_v48 = vpop.f32.mrf.mxu0 }
 0x3dc   : > { %v2909_v39 = vadd.f32 %v5810_v17, %v2825_v48 }
 0x3dd   : > { %3931 = vst [vmem:[%s4631_s11 + $0x328] sm:$0xff] %v3394_v49  ;;  %3196 = vmatmul.f32.gmra.mxu2 %v4751_v50 }
 0x3de   : > { %v2987_v35 = vpop.f32.mrf.mxu1  ;;  %2872 = vmatmul.f32.gmra.mxu0 %v4717_v5 }
 0x3df   : > { %v3071_v43 = vadd.f32 %v2987_v35, %v2909_v39  ;;  %3358 = vmatmul.f32.gmra.mxu3 %v6090_v46 }
 0x3e0   : > { %v3149_v25 = vpop.f32.mrf.mxu2 }
 0x3e1   : > { %v3233_v28 = vadd.f32 %v3149_v25, %v3071_v43  ;;  %3034 = vmatmul.f32.gmra.mxu1 %v6088_v38  ;;  %v6096_v43 = vld [vmem:[#allocation18_spill] sm:$0xff] }
 0x3e2   : > { %v3311_v1 = vpop.f32.mrf.mxu3 }
 0x3e3   : > { %v3395_v60 = vadd.f32 %v3311_v1, %v3233_v28  ;;  %v2828_v52 = vpop.f32.mrf.mxu0 }
 0x3e4   : > { %v2910_v13 = vadd.f32 %v5810_v17, %v2828_v52 }
 0x3e5   : > { %3932 = vst [vmem:[%s4631_s11 + $0x330] sm:$0xff] %v3395_v60  ;;  %3199 = vmatmul.f32.gmra.mxu2 %v4771_v11 }
 0x3e6   : > { %v2990_v63 = vpop.f32.mrf.mxu1  ;;  %2875 = vmatmul.f32.gmra.mxu0 %v4737_v27 }
 0x3e7   : > { %v3072_v5 = vadd.f32 %v2990_v63, %v2910_v13  ;;  %3361 = vmatmul.f32.gmra.mxu3 %v6091_v26  ;;  %v6097_v63 = vld [vmem:[#allocation19_spill] sm:$0xff] }
 0x3e8   : > { %v3152_v42 = vpop.f32.mrf.mxu2 }
 0x3e9   : > { %v3234_v2 = vadd.f32 %v3152_v42, %v3072_v5  ;;  %3037 = vmatmul.f32.gmra.mxu1 %v6089_v18  ;;  %v6095_v18 = vld [vmem:[#allocation17_spill] sm:$0xff]  ;;  %v6098_v5 = vld [vmem:[#allocation20_spill] sm:$0xff] }
 0x3ea   : > { %v3314_v33 = vpop.f32.mrf.mxu3 }
 0x3eb   : > { %v3396_v21 = vadd.f32 %v3314_v33, %v3234_v2  ;;  %v2831_v44 = vpop.f32.mrf.mxu0  ;;  %v688_v2 = vrot.slane %v5751_v14, 2 }
 0x3ec   : > { %v2911_v16 = vadd.f32 %v5810_v17, %v2831_v44 }
 0x3ed   : > { %3933 = vst [vmem:[%s4631_s11 + $0x338] sm:$0xff] %v3396_v21  ;;  %3202 = vmatmul.f32.gmra.mxu2 %v4785_v36 }
 0x3ee   : > { %v2993_v22 = vpop.f32.mrf.mxu1  ;;  %2878 = vmatmul.f32.gmra.mxu0 %v4751_v50 }
 0x3ef   : > { %v3073_v27 = vadd.f32 %v2993_v22, %v2911_v16  ;;  %3364 = vmatmul.f32.gmra.mxu3 %v6092_v7 }
 0x3f0   : > { %v3155_v61 = vpop.f32.mrf.mxu2 }
 0x3f1   : > { %v3235_v4 = vadd.f32 %v3155_v61, %v3073_v27  ;;  %3040 = vmatmul.f32.gmra.mxu1 %v6090_v46  ;;  %v690_v61 = vrot.slane %v5764_v37, 2 }
 0x3f2   : > { %v3317_v10 = vpop.f32.mrf.mxu3 }
 0x3f3   : > { %v3397_v54 = vadd.f32 %v3317_v10, %v3235_v4  ;;  %v2834_v40 = vpop.f32.mrf.mxu0 }
 0x3f4   : > { %v2912_v41 = vadd.f32 %v5810_v17, %v2834_v40 }
 0x3f5   : > { %3934 = vst [vmem:[%s4631_s11 + $0x340] sm:$0xff] %v3397_v54  ;;  %3205 = vmatmul.f32.gmra.mxu2 %v4805_v62 }
 0x3f6   : > { %v2996_v45 = vpop.f32.mrf.mxu1  ;;  %2881 = vmatmul.f32.gmra.mxu0 %v4771_v11 }
 0x3f7   : > { %v3074_v50 = vadd.f32 %v2996_v45, %v2912_v41  ;;  %3367 = vmatmul.f32.gmra.mxu3 %v5351_v59  ;;  %v691_v45 = vsel %vm601_vm1, %v688_v2, %v690_v61 }
 0x3f8   : > { %v3158_v57 = vpop.f32.mrf.mxu2 }
 0x3f9   : > { %v3236_v34 = vadd.f32 %v3158_v57, %v3074_v50  ;;  %3043 = vmatmul.f32.gmra.mxu1 %v6091_v26  ;;  %v687_v26 = vrot.slane %v6098_v5, 2 }
 0x3fa   : > { %v3320_v9 = vpop.f32.mrf.mxu3 }
 0x3fb   : > { %v3398_v32 = vadd.f32 %v3320_v9, %v3236_v34  ;;  %v2837_v51 = vpop.f32.mrf.mxu0  ;;  %v689_v27 = vsel %vm601_vm1, %v687_v26, %v688_v2 }
 0x3fc   : > { %v2913_v12 = vadd.f32 %v5810_v17, %v2837_v51 }
 0x3fd   : > { %3935 = vst [vmem:[%s4631_s11 + $0x348] sm:$0xff] %v3398_v32  ;;  %3208 = vmatmul.f32.gmra.mxu2 %v6093_v0 }
 0x3fe   : > { %v2999_v38 = vpop.f32.mrf.mxu1  ;;  %2884 = vmatmul.f32.gmra.mxu0 %v4785_v36 }
 0x3ff   : > { %v3075_v11 = vadd.f32 %v2999_v38, %v2913_v12  ;;  %3370 = vmatmul.f32.gmra.mxu3 %v6094_v47 }
 0x400   : > { %v3161_v8 = vpop.f32.mrf.mxu2 }
 0x401   : > { %v3237_v58 = vadd.f32 %v3161_v8, %v3075_v11  ;;  %3046 = vmatmul.f32.gmra.mxu1 %v6092_v7 }
 0x402   : > { %v3323_v6 = vpop.f32.mrf.mxu3 }
 0x403   : > { %v3399_v29 = vadd.f32 %v3323_v6, %v3237_v58  ;;  %v2840_v15 = vpop.f32.mrf.mxu0 }
 0x404   : > { %v2914_v30 = vadd.f32 %v5810_v17, %v2840_v15 }
 0x405   : > { %3936 = vst [vmem:[%s4631_s11 + $0x350] sm:$0xff] %v3399_v29  ;;  %3211 = vmatmul.f32.gmra.mxu2 %v4850_v53 }
 0x406   : > { %v3002_v19 = vpop.f32.mrf.mxu1  ;;  %2887 = vmatmul.f32.gmra.mxu0 %v4805_v62 }
 0x407   : > { %v3076_v36 = vadd.f32 %v3002_v19, %v2914_v30  ;;  %3373 = vmatmul.f32.gmra.mxu3 %v6095_v18 }
 0x408   : > { %v3164_v24 = vpop.f32.mrf.mxu2 }
 0x409   : > { %v3238_v55 = vadd.f32 %v3164_v24, %v3076_v36  ;;  %3049 = vmatmul.f32.gmra.mxu1 %v5351_v59 }
 0x40a   : > { %v3326_v56 = vpop.f32.mrf.mxu3 }
 0x40b   : > { %v3400_v49 = vadd.f32 %v3326_v56, %v3238_v55  ;;  %v2843_v48 = vpop.f32.mrf.mxu0 }
 0x40c   : > { %v2915_v39 = vadd.f32 %v5810_v17, %v2843_v48 }
 0x40d   : > { %3937 = vst [vmem:[%s4631_s11 + $0x358] sm:$0xff] %v3400_v49  ;;  %3214 = vmatmul.f32.gmra.mxu2 %v4861_v20 }
 0x40e   : > { %v3005_v35 = vpop.f32.mrf.mxu1  ;;  %2890 = vmatmul.f32.gmra.mxu0 %v6093_v0 }
 0x40f   : > { %v3077_v62 = vadd.f32 %v3005_v35, %v2915_v39  ;;  %3376 = vmatmul.f32.gmra.mxu3 %v6096_v43 }
 0x410   : > { %v3167_v46 = vpop.f32.mrf.mxu2 }
 0x411   : > { %v3239_v25 = vadd.f32 %v3167_v46, %v3077_v62  ;;  %3052 = vmatmul.f32.gmra.mxu1 %v6094_v47 }
 0x412   : > { %v3329_v59 = vpop.f32.mrf.mxu3 }
 0x413   : > { %v3401_v28 = vadd.f32 %v3329_v59, %v3239_v25  ;;  %v2846_v1 = vpop.f32.mrf.mxu0 }
 0x414   : > { %v2916_v60 = vadd.f32 %v5810_v17, %v2846_v1 }
 0x415   : > { %3938 = vst [vmem:[%s4631_s11 + $0x360] sm:$0xff] %v3401_v28  ;;  %3217 = vmatmul.f32.gmra.mxu2 %v4882_v3 }
 0x416   : > { %v3008_v52 = vpop.f32.mrf.mxu1  ;;  %2893 = vmatmul.f32.gmra.mxu0 %v4850_v53 }
 0x417   : > { %v3078_v13 = vadd.f32 %v3008_v52, %v2916_v60  ;;  %3379 = vmatmul.f32.gmra.mxu3 %v6097_v63 }
 0x418   : > { %v3170_v42 = vpop.f32.mrf.mxu2 }
 0x419   : > { %v3240_v33 = vadd.f32 %v3170_v42, %v3078_v13  ;;  %3055 = vmatmul.f32.gmra.mxu1 %v6095_v18 }
 0x41a   : > { %v3332_v21 = vpop.f32.mrf.mxu3 }
 0x41b   : > { %v3402_v44 = vadd.f32 %v3332_v21, %v3240_v33  ;;  %v2849_v16 = vpop.f32.mrf.mxu0 }
 0x41c   : > { %v2917_v22 = vadd.f32 %v5810_v17, %v2849_v16 }
 0x41d   : > { %3939 = vst [vmem:[%s4631_s11 + $0x368] sm:$0xff] %v3402_v44  ;;  %3220 = vmatmul.f32.gmra.mxu2 %v5759_v31 }
 0x41e   : > { %v3011_v53 = vpop.f32.mrf.mxu1  ;;  %2896 = vmatmul.f32.gmra.mxu0 %v4861_v20 }
 0x41f   : > { %v3079_v7 = vadd.f32 %v3011_v53, %v2917_v22  ;;  %3382 = vmatmul.f32.gmra.mxu3 %v689_v27 }
 0x420   : > { %v3173_v14 = vpop.f32.mrf.mxu2 }
 0x421   : > { %v3241_v4 = vadd.f32 %v3173_v14, %v3079_v7  ;;  %3058 = vmatmul.f32.gmra.mxu1 %v6096_v43 }
 0x422   : > { %v3335_v10 = vpop.f32.mrf.mxu3 }
 0x423   : > { %v3403_v54 = vadd.f32 %v3335_v10, %v3241_v4  ;;  %v2852_v40 = vpop.f32.mrf.mxu0 }
 0x424   : > { %v2918_v41 = vadd.f32 %v5810_v17, %v2852_v40 }
 0x425   : > { %3940 = vst [vmem:[%s4631_s11 + $0x370] sm:$0xff] %v3403_v54  ;;  %3223 = vmatmul.f32.gmra.mxu2 %v5771_v23 }
 0x426   : > { %v3014_v31 = vpop.f32.mrf.mxu1  ;;  %2899 = vmatmul.f32.gmra.mxu0 %v4882_v3 }
 0x427   : > { %v3080_v20 = vadd.f32 %v3014_v31, %v2918_v41  ;;  %3385 = vmatmul.f32.gmra.mxu3 %v691_v45 }
 0x428   : > { %v3176_v37 = vpop.f32.mrf.mxu2 }
 0x429   : > { %v3242_v50 = vadd.f32 %v3176_v37, %v3080_v20  ;;  %3061 = vmatmul.f32.gmra.mxu1 %v6097_v63 }
 0x42a   : > { %v3338_v57 = vpop.f32.mrf.mxu3 }
 0x42b   : > { %v3404_v34 = vadd.f32 %v3338_v57, %v3242_v50  ;;  %v2855_v9 = vpop.f32.mrf.mxu0 }
 0x42c   : > { %v2919_v32 = vadd.f32 %v5810_v17, %v2855_v9 }
 0x42d   : > { %3941 = vst [vmem:[%s4631_s11 + $0x378] sm:$0xff] %v3404_v34 }
 0x42e   : > { %v3017_v51 = vpop.f32.mrf.mxu1 }
 0x42f   : > { %v3081_v12 = vadd.f32 %v3017_v51, %v2919_v32 }
 0x430   : > { %v3179_v23 = vpop.f32.mrf.mxu2 }
 0x431   : > { %v3243_v0 = vadd.f32 %v3179_v23, %v3081_v12 }
 0x432   : > { %v3341_v38 = vpop.f32.mrf.mxu3 }
 0x433   : > { %v3405_v3 = vadd.f32 %v3341_v38, %v3243_v0  ;;  %v2858_v11 = vpop.f32.mrf.mxu0 }
 0x434   : > { %v2920_v47 = vadd.f32 %v5810_v17, %v2858_v11 }
 0x435   : > { %3942 = vst [vmem:[%s4631_s11 + $0x380] sm:$0xff] %v3405_v3 }
 0x436   : > { %v3020_v8 = vpop.f32.mrf.mxu1 }
 0x437   : > { %v3082_v58 = vadd.f32 %v3020_v8, %v2920_v47 }
 0x438   : > { %v3182_v6 = vpop.f32.mrf.mxu2 }
 0x439   : > { %v3244_v29 = vadd.f32 %v3182_v6, %v3082_v58 }
 0x43a   : > { %v3344_v15 = vpop.f32.mrf.mxu3 }
 0x43b   : > { %v3406_v30 = vadd.f32 %v3344_v15, %v3244_v29  ;;  %v2861_v19 = vpop.f32.mrf.mxu0 }
 0x43c   : > { %v2921_v36 = vadd.f32 %v5810_v17, %v2861_v19 }
 0x43d   : > { %3943 = vst [vmem:[%s4631_s11 + $0x388] sm:$0xff] %v3406_v30 }
 0x43e   : > { %v3023_v18 = vpop.f32.mrf.mxu1 }
 0x43f   : > { %v3083_v24 = vadd.f32 %v3023_v18, %v2921_v36 }
 0x440   : > { %v3185_v55 = vpop.f32.mrf.mxu2 }
 0x441   : > { %v3245_v56 = vadd.f32 %v3185_v55, %v3083_v24 }
 0x442   : > { %v3347_v49 = vpop.f32.mrf.mxu3 }
 0x443   : > { %v3407_v48 = vadd.f32 %v3347_v49, %v3245_v56  ;;  %v2864_v39 = vpop.f32.mrf.mxu0 }
 0x444   : > { %v2922_v35 = vadd.f32 %v5810_v17, %v2864_v39 }
 0x445   : > { %3944 = vst [vmem:[%s4631_s11 + $0x390] sm:$0xff] %v3407_v48 }
 0x446   : > { %v3026_v62 = vpop.f32.mrf.mxu1 }
 0x447   : > { %v3084_v43 = vadd.f32 %v3026_v62, %v2922_v35 }
 0x448   : > { %v3188_v46 = vpop.f32.mrf.mxu2 }
 0x449   : > { %v3246_v25 = vadd.f32 %v3188_v46, %v3084_v43 }
 0x44a   : > { %v3350_v59 = vpop.f32.mrf.mxu3 }
 0x44b   : > { %v3408_v28 = vadd.f32 %v3350_v59, %v3246_v25  ;;  %v2867_v1 = vpop.f32.mrf.mxu0 }
 0x44c   : > { %v2923_v60 = vadd.f32 %v5810_v17, %v2867_v1 }
 0x44d   : > { %3945 = vst [vmem:[%s4631_s11 + $0x398] sm:$0xff] %v3408_v28 }
 0x44e   : > { %v3029_v52 = vpop.f32.mrf.mxu1 }
 0x44f   : > { %v3085_v13 = vadd.f32 %v3029_v52, %v2923_v60 }
 0x450   : > { %v3191_v63 = vpop.f32.mrf.mxu2 }
 0x451   : > { %v3247_v5 = vadd.f32 %v3191_v63, %v3085_v13 }
 0x452   : > { %v3353_v26 = vpop.f32.mrf.mxu3 }
 0x453   : > { %v3409_v42 = vadd.f32 %v3353_v26, %v3247_v5  ;;  %v2870_v2 = vpop.f32.mrf.mxu0 }
 0x454   : > { %v2924_v33 = vadd.f32 %v5810_v17, %v2870_v2 }
 0x455   : > { %3946 = vst [vmem:[%s4631_s11 + $0x3a0] sm:$0xff] %v3409_v42 }
 0x456   : > { %v3032_v21 = vpop.f32.mrf.mxu1 }
 0x457   : > { %v3086_v44 = vadd.f32 %v3032_v21, %v2924_v33 }
 0x458   : > { %v3194_v16 = vpop.f32.mrf.mxu2 }
 0x459   : > { %v3248_v22 = vadd.f32 %v3194_v16, %v3086_v44 }
 0x45a   : > { %v3356_v27 = vpop.f32.mrf.mxu3 }
 0x45b   : > { %v3410_v53 = vadd.f32 %v3356_v27, %v3248_v22  ;;  %v2873_v7 = vpop.f32.mrf.mxu0 }
 0x45c   : > { %v2925_v14 = vadd.f32 %v5810_v17, %v2873_v7 }
 0x45d   : > { %3947 = vst [vmem:[%s4631_s11 + $0x3a8] sm:$0xff] %v3410_v53 }
 0x45e   : > { %v3035_v61 = vpop.f32.mrf.mxu1 }
 0x45f   : > { %v3087_v4 = vadd.f32 %v3035_v61, %v2925_v14 }
 0x460   : > { %v3197_v10 = vpop.f32.mrf.mxu2 }
 0x461   : > { %v3249_v54 = vadd.f32 %v3197_v10, %v3087_v4 }
 0x462   : > { %v3359_v40 = vpop.f32.mrf.mxu3 }
 0x463   : > { %v3411_v41 = vadd.f32 %v3359_v40, %v3249_v54  ;;  %v2876_v45 = vpop.f32.mrf.mxu0 }
 0x464   : > { %v2926_v31 = vadd.f32 %v5810_v17, %v2876_v45 }
 0x465   : > { %3948 = vst [vmem:[%s4631_s11 + $0x3b0] sm:$0xff] %v3411_v41 }
 0x466   : > { %v3038_v20 = vpop.f32.mrf.mxu1 }
 0x467   : > { %v3088_v37 = vadd.f32 %v3038_v20, %v2926_v31 }
 0x468   : > { %v3200_v50 = vpop.f32.mrf.mxu2 }
 0x469   : > { %v3250_v57 = vadd.f32 %v3200_v50, %v3088_v37 }
 0x46a   : > { %v3362_v34 = vpop.f32.mrf.mxu3 }
 0x46b   : > { %v3412_v9 = vadd.f32 %v3362_v34, %v3250_v57  ;;  %v2879_v32 = vpop.f32.mrf.mxu0 }
 0x46c   : > { %v2927_v51 = vadd.f32 %v5810_v17, %v2879_v32 }
 0x46d   : > { %3949 = vst [vmem:[%s4631_s11 + $0x3b8] sm:$0xff] %v3412_v9 }
 0x46e   : > { %v3041_v12 = vpop.f32.mrf.mxu1 }
 0x46f   : > { %v3089_v23 = vadd.f32 %v3041_v12, %v2927_v51 }
 0x470   : > { %v3203_v0 = vpop.f32.mrf.mxu2 }
 0x471   : > { %v3251_v38 = vadd.f32 %v3203_v0, %v3089_v23 }
 0x472   : > { %v3365_v3 = vpop.f32.mrf.mxu3 }
 0x473   : > { %v3413_v11 = vadd.f32 %v3365_v3, %v3251_v38  ;;  %v2882_v47 = vpop.f32.mrf.mxu0 }
 0x474   : > { %v2928_v8 = vadd.f32 %v5810_v17, %v2882_v47 }
 0x475   : > { %3950 = vst [vmem:[%s4631_s11 + $0x3c0] sm:$0xff] %v3413_v11 }
 0x476   : > { %v3044_v58 = vpop.f32.mrf.mxu1 }
 0x477   : > { %v3090_v6 = vadd.f32 %v3044_v58, %v2928_v8 }
 0x478   : > { %v3206_v29 = vpop.f32.mrf.mxu2 }
 0x479   : > { %v3252_v15 = vadd.f32 %v3206_v29, %v3090_v6 }
 0x47a   : > { %v3368_v30 = vpop.f32.mrf.mxu3 }
 0x47b   : > { %v3414_v19 = vadd.f32 %v3368_v30, %v3252_v15  ;;  %v2885_v36 = vpop.f32.mrf.mxu0 }
 0x47c   : > { %v2929_v18 = vadd.f32 %v5810_v17, %v2885_v36 }
 0x47d   : > { %3951 = vst [vmem:[%s4631_s11 + $0x3c8] sm:$0xff] %v3414_v19 }
 0x47e   : > { %v3047_v24 = vpop.f32.mrf.mxu1 }
 0x47f   : > { %v3091_v55 = vadd.f32 %v3047_v24, %v2929_v18 }
 0x480   : > { %v3209_v56 = vpop.f32.mrf.mxu2 }
 0x481   : > { %v3253_v49 = vadd.f32 %v3209_v56, %v3091_v55 }
 0x482   : > { %v3371_v48 = vpop.f32.mrf.mxu3 }
 0x483   : > { %v3415_v39 = vadd.f32 %v3371_v48, %v3253_v49  ;;  %v2888_v35 = vpop.f32.mrf.mxu0 }
 0x484   : > { %v2930_v62 = vadd.f32 %v5810_v17, %v2888_v35 }
 0x485   : > { %3952 = vst [vmem:[%s4631_s11 + $0x3d0] sm:$0xff] %v3415_v39 }
 0x486   : > { %v3050_v43 = vpop.f32.mrf.mxu1 }
 0x487   : > { %v3092_v46 = vadd.f32 %v3050_v43, %v2930_v62 }
 0x488   : > { %v3212_v25 = vpop.f32.mrf.mxu2 }
 0x489   : > { %v3254_v59 = vadd.f32 %v3212_v25, %v3092_v46 }
 0x48a   : > { %v3374_v28 = vpop.f32.mrf.mxu3 }
 0x48b   : > { %v3416_v1 = vadd.f32 %v3374_v28, %v3254_v59  ;;  %v2891_v60 = vpop.f32.mrf.mxu0 }
 0x48c   : > { %v2931_v52 = vadd.f32 %v5810_v17, %v2891_v60 }
 0x48d   : > { %3953 = vst [vmem:[%s4631_s11 + $0x3d8] sm:$0xff] %v3416_v1 }
 0x48e   : > { %v3053_v13 = vpop.f32.mrf.mxu1 }
 0x48f   : > { %v3093_v63 = vadd.f32 %v3053_v13, %v2931_v52 }
 0x490   : > { %v3215_v5 = vpop.f32.mrf.mxu2 }
 0x491   : > { %v3255_v26 = vadd.f32 %v3215_v5, %v3093_v63 }
 0x492   : > { %v3377_v42 = vpop.f32.mrf.mxu3 }
 0x493   : > { %v3417_v2 = vadd.f32 %v3377_v42, %v3255_v26  ;;  %v2894_v33 = vpop.f32.mrf.mxu0 }
 0x494   : > { %v2932_v21 = vadd.f32 %v5810_v17, %v2894_v33 }
 0x495   : > { %3954 = vst [vmem:[%s4631_s11 + $0x3e0] sm:$0xff] %v3417_v2 }
 0x496   : > { %v3056_v44 = vpop.f32.mrf.mxu1 }
 0x497   : > { %v3094_v16 = vadd.f32 %v3056_v44, %v2932_v21 }
 0x498   : > { %v3218_v22 = vpop.f32.mrf.mxu2 }
 0x499   : > { %v3256_v27 = vadd.f32 %v3218_v22, %v3094_v16 }
 0x49a   : > { %v3380_v53 = vpop.f32.mrf.mxu3 }
 0x49b   : > { %v3418_v7 = vadd.f32 %v3380_v53, %v3256_v27  ;;  %v2897_v14 = vpop.f32.mrf.mxu0 }
 0x49c   : > { %v2933_v61 = vadd.f32 %v5810_v17, %v2897_v14 }
 0x49d   : > { %3955 = vst [vmem:[%s4631_s11 + $0x3e8] sm:$0xff] %v3418_v7 }
 0x49e   : > { %v3059_v4 = vpop.f32.mrf.mxu1 }
 0x49f   : > { %v3095_v10 = vadd.f32 %v3059_v4, %v2933_v61 }
 0x4a0   : > { %v3221_v54 = vpop.f32.mrf.mxu2 }
 0x4a1   : > { %v3257_v40 = vadd.f32 %v3221_v54, %v3095_v10 }
 0x4a2   : > { %v3383_v41 = vpop.f32.mrf.mxu3 }
 0x4a3   : > { %v3419_v45 = vadd.f32 %v3383_v41, %v3257_v40  ;;  %v2900_v31 = vpop.f32.mrf.mxu0 }
 0x4a4   : > { %v2934_v20 = vadd.f32 %v5810_v17, %v2900_v31 }
 0x4a5   : > { %3956 = vst [vmem:[%s4631_s11 + $0x3f0] sm:$0xff] %v3419_v45 }
 0x4a6   : > { %v3062_v37 = vpop.f32.mrf.mxu1 }
 0x4a7   : > { %v3096_v50 = vadd.f32 %v3062_v37, %v2934_v20 }
 0x4a8   : > { %v3224_v57 = vpop.f32.mrf.mxu2 }
 0x4a9   : > { %v3258_v34 = vadd.f32 %v3224_v57, %v3096_v50 }
 0x4aa   : > { %v3386_v9 = vpop.f32.mrf.mxu3 }
 0x4ab   : > { %v3420_v32 = vadd.f32 %v3386_v9, %v3258_v34 }
 0x4ad   : > { %3957 = vst [vmem:[%s4631_s11 + $0x3f8] sm:$0xff] %v3420_v32 }
 0x4ae PF: > { %s14_s17 = sadd.s32 1, %s4099_s17   ;;  %s6099_s15 = smov %s4095_s16 }
 0x4af   : > { %p11_p5 = scmp.ge.s32.totalorder %s14_s17, 4   ;;  %s6100_s16 = smov %s6102_s18 }
 0x4b1   :  { %13 = sbr.rel (!%p11_p5) target bundleno = 2 (0x2), region = 93 }

</bundles_post_ra>
